<compile_context>
chip_gen: v6e
topology: v6e:2x2x1
jax: 0.10.0
libtpu: 0.0.40
codegen_flags: <defaults>
</compile_context>

<pallas_src>
import math

import jax
import jax.numpy as jnp
from jax.experimental import pallas as pl
from jax.experimental.pallas import tpu as pltpu


# ----------------------------------------------------------------------------
# Config helpers
# ----------------------------------------------------------------------------
def _compute_hidden_dim(dim: int, multiple_of: int, ffn_dim_multipler=None) -> int:
    hidden_dim = dim * 4
    hidden_dim = (
        int(2 * hidden_dim / 3)
        if ffn_dim_multipler is None
        else int(dim * ffn_dim_multipler)
    )
    hidden_dim = multiple_of * ((hidden_dim + multiple_of - 1) // multiple_of)
    return hidden_dim


def _round_up(x: int, m: int) -> int:
    return ((x + m - 1) // m) * m


def _device_kind() -> str:
    try:
        return jax.devices()[0].device_kind.lower()
    except Exception:
        return ""


def _chip_generation() -> str:
    kind = _device_kind()
    if "v5 lite" in kind or "v5e" in kind or "v5lite" in kind:
        return "v5e"
    if "v6" in kind:
        return "v6e"
    if "v7" in kind or "7x" in kind:
        return "v7x"
    return "unknown"


def _vmem_capacity_bytes() -> int:
    """Physical VMEM per TensorCore (not the scoped default)."""
    try:
        cap = getattr(pltpu.get_tpu_info(), "vmem_capacity_bytes", None)
        if cap:
            return int(cap)
    except Exception:
        pass
    # Fallback from device_kind: v7x has 64 MiB / TC, v5e & v6e have 128 MiB.
    return 64 * 1024 * 1024 if _chip_generation() == "v7x" else 128 * 1024 * 1024


# Per-generation (tm, tn) defaults.
#   v6e: needs ~640 flops/weight-byte to be compute-bound  -> large tm.
#   v7x: ~310 flops/byte roofline but only 64 MiB VMEM     -> mid tm, narrow tn.
#   v5e: ~240 flops/byte, single vst slot                   -> tm 256, tn 256.
_DEFAULT_TILES = {
    "v5e": (256, 256),
    "v6e": (768, 512),
    "v7x": (512, 256),
    "unknown": (256, 256),
}


def _choose_hidden_tile(hidden: int, requested: int) -> int:
    """Largest multiple of 128 that divides `hidden` and is <= requested."""
    tn = min(requested, hidden)
    if hidden % 128 != 0:
        # Full-extent block is always legal (correct but may relayout; the
        # LLaMA construction makes hidden a multiple of `multiple_of`).
        return hidden
    tn = max(128, (tn // 128) * 128)
    while hidden % tn != 0:
        tn -= 128
    return tn


def _vmem_footprint(tm, tn, dim, in_isz, out_isz, x_bufs, out_bufs):
    """Per-step VMEM footprint, including compiler-materialized intermediates."""
    x_b = x_bufs * tm * dim * in_isz                 # token tile (k-resident)
    w13_b = 2 * dim * 2 * tn * in_isz                # double-buffered weight stream
    w2_b = 2 * tn * dim * in_isz
    o_b = out_bufs * tm * dim * out_isz              # output tile (k-resident)
    acc_b = tm * dim * 4                             # f32 accumulator scratch
    inter_b = tm * 2 * tn * 4 + tm * tn * (4 + in_isz)  # h, gated, gated cast
    return x_b + w13_b + w2_b + o_b + acc_b + inter_b


# ----------------------------------------------------------------------------
# Kernel
# ----------------------------------------------------------------------------
def _ffn_kernel(x_ref, w13_ref, w2_ref, o_ref, acc_ref):
    # x_ref:   (tm, dim)      token tile (resident across the hidden axis)
    # w13_ref: (dim, 2*tn)    fused [gate | up] slice of the hidden dim
    # w2_ref:  (tn, dim)      down-projection slice
    # o_ref:   (tm, dim)      output tile (same block across the hidden axis)
    # acc_ref: (tm, dim) f32  VMEM accumulator
    k = pl.program_id(1)

    @pl.when(k == 0)
    def _():
        acc_ref[...] = jnp.zeros_like(acc_ref)

    tn = w2_ref.shape[0]
    x = x_ref[...]

    # One MXU pass produces both the gate and up projections for this tile.
    h = jnp.dot(x, w13_ref[...], preferred_element_type=jnp.float32)  # (tm, 2*tn)
    h1 = h[:, :tn]
    h3 = h[:, tn:]

    # SiLU + gating in f32 (sigmoid goes to the EUP).
    gated = (h1 * jax.nn.sigmoid(h1)) * h3

    acc_ref[...] += jnp.dot(
        gated.astype(w2_ref.dtype), w2_ref[...], preferred_element_type=jnp.float32
    )

    @pl.when(k == pl.num_programs(1) - 1)
    def _():
        o_ref[...] = acc_ref[...].astype(o_ref.dtype)


# ----------------------------------------------------------------------------
# Weight preparation (do once, outside the hot path)
# ----------------------------------------------------------------------------
def prepare_ffn_weights(w1, w2, w3, *, tn=512, compute_dtype=jnp.bfloat16):
    """w1/w3: (hidden, dim), w2: (dim, hidden)  — PyTorch nn.Linear layout.

    Returns (w13_fused, w2_t, tn) where, for hidden tile j, w13_fused columns
    [j*2*tn, (j+1)*2*tn) hold [w1 cols of tile j | w3 cols of tile j].
    Weights are cast to `compute_dtype` (default bf16) exactly once here.
    """
    hidden, dim = w1.shape
    assert w3.shape == (hidden, dim) and w2.shape == (dim, hidden)
    if compute_dtype is None:
        compute_dtype = jnp.bfloat16

    tn = _choose_hidden_tile(hidden, tn)
    gk = hidden // tn

    w1_t = jnp.asarray(w1, compute_dtype).T.reshape(dim, gk, tn)
    w3_t = jnp.asarray(w3, compute_dtype).T.reshape(dim, gk, tn)
    w13 = jnp.stack([w1_t, w3_t], axis=2).reshape(dim, 2 * hidden)  # (dim, 2*hidden)
    w2_t = jnp.asarray(w2, compute_dtype).T                          # (hidden, dim)
    return w13, w2_t, tn


# ----------------------------------------------------------------------------
# Pallas wrapper
# ----------------------------------------------------------------------------
def feed_forward_pallas_prepared(x, w13, w2_t, *, tn, tm=None):
    """x: (B, S, dim). w13: (dim, 2*hidden) fused, w2_t: (hidden, dim)."""
    B, S, dim = x.shape
    hidden = w2_t.shape[0]
    assert w13.shape == (dim, 2 * hidden) and hidden % tn == 0
    grid_k = hidden // tn
    out_dtype = x.dtype
    compute_dtype = w13.dtype
    in_isz = jnp.dtype(compute_dtype).itemsize
    out_isz = jnp.dtype(out_dtype).itemsize

    gen = _chip_generation()
    vmem_budget = int(_vmem_capacity_bytes() * 0.9)   # ~10% headroom (v7x ≈ 57 MiB)

    M = B * S
    if tm is None:
        tm = _DEFAULT_TILES.get(gen, _DEFAULT_TILES["unknown"])[0]

    # bf16 packs 16 rows per vreg sublane group; avoid half-packed tiles.
    row_align = 16 if in_isz < 4 else 8
    tm = max(row_align, min(_round_up(tm, row_align), _round_up(M, row_align)))

    # v7x has 2 TensorCores: make sure the "parallel" token axis has >= 2
    # tiles whenever there is enough work to split.
    if gen == "v7x" and _round_up(M, tm) // tm < 2 and M > row_align:
        tm = max(row_align, _round_up((M + 1) // 2, row_align))
    # TODO(synk): for true decode (M <= row_align) split the hidden axis across
    # the two v7x TensorCores (partial-sum outputs + add) instead of relying on
    # the token axis.

    # Shrink tm until the intermediate-inclusive footprint fits the budget.
    while (
        _vmem_footprint(tm, tn, dim, in_isz, out_isz, x_bufs=1, out_bufs=1)
        > vmem_budget
        and tm > row_align
    ):
        tm = max(row_align, _round_up(tm // 2, row_align))

    M_pad = _round_up(M, tm)
    grid_m = M_pad // tm

    x2d = x.reshape(M, dim).astype(compute_dtype)
    if M_pad != M:
        x2d = jnp.pad(x2d, ((0, M_pad - M), (0, 0)))

    # Declared VMEM limit: conservative (double-buffered x/out) footprint plus
    # slack, capped at the physical budget so it is always legal (v7x: 64 MiB).
    conservative = _vmem_footprint(tm, tn, dim, in_isz, out_isz, 2, 2)
    vmem_limit = int(min(max(int(conservative * 1.2), 32 * 1024 * 1024), vmem_budget))

    cost = pl.CostEstimate(
        flops=6 * M_pad * hidden * dim,               # three matmuls
        transcendentals=M_pad * hidden,               # sigmoid
        bytes_accessed=(
            M_pad * dim * (in_isz + out_isz)                          # x + out
            + grid_m * (dim * 2 * hidden + hidden * dim) * in_isz     # weight stream
        ),
    )

    def run(minimal_resident_buffers: bool):
        if minimal_resident_buffers:
            # x / output blocks are resident across the whole hidden (k) axis;
            # single-buffering them frees VMEM for larger token tiles.
            x_spec = pl.BlockSpec(
                (tm, dim), lambda i, k: (i, 0), pipeline_mode=pl.Buffered(1)
            )
            o_spec = pl.BlockSpec(
                (tm, dim), lambda i, k: (i, 0), pipeline_mode=pl.Buffered(1)
            )
        else:
            x_spec = pl.BlockSpec((tm, dim), lambda i, k: (i, 0))
            o_spec = pl.BlockSpec((tm, dim), lambda i, k: (i, 0))

        return pl.pallas_call(
            _ffn_kernel,
            out_shape=jax.ShapeDtypeStruct((M_pad, dim), out_dtype),
            grid_spec=pltpu.PrefetchScalarGridSpec(
                num_scalar_prefetch=0,
                grid=(grid_m, grid_k),
                in_specs=[
                    x_spec,                                             # x (k-resident)
                    pl.BlockSpec((dim, 2 * tn), lambda i, k: (0, k)),   # fused w1|w3 stream
                    pl.BlockSpec((tn, dim), lambda i, k: (k, 0)),       # w2 stream
                ],
                out_specs=o_spec,
                scratch_shapes=[pltpu.VMEM((tm, dim), jnp.float32)],
            ),
            compiler_params=pltpu.CompilerParams(
                dimension_semantics=("parallel", "arbitrary"),
                vmem_limit_bytes=vmem_limit,
            ),
            cost_estimate=cost,
        )(x2d, w13, w2_t)

    try:
        out2d = run(True)
    except Exception:
        # Fallback: default double-buffering if Buffered(1) is rejected.
        out2d = run(False)

    if M_pad != M:
        out2d = out2d[:M]
    return out2d.reshape(B, S, dim)


def feed_forward_pallas(x, w1, w2, w3, *, tm=None, tn=None, compute_dtype=jnp.bfloat16):
    """Convenience wrapper from PyTorch-layout weights.

    For real use, call prepare_ffn_weights() once and reuse its outputs so the
    transpose/fuse/cast does not run on every forward.
    """
    hidden, dim = w1.shape
    M = x.shape[0] * x.shape[1]
    if compute_dtype is None:
        compute_dtype = jnp.bfloat16
    in_isz = jnp.dtype(compute_dtype).itemsize
    vmem_budget = int(_vmem_capacity_bytes() * 0.9)

    if tn is None:
        gen = _chip_generation()
        tn = _DEFAULT_TILES.get(gen, _DEFAULT_TILES["unknown"])[1]
        if M <= 256:
            # Decode-shaped calls are weight-bandwidth bound: fewer, larger
            # hidden-dim steps amortize the per-step pipeline overhead.
            tn = max(tn, 1024)
        # Keep the double-buffered weight stream within ~half the VMEM budget.
        while tn > 128 and 2 * (dim * 2 * tn + tn * dim) * in_isz > vmem_budget // 2:
            tn -= 128

    w13, w2_t, tn = prepare_ffn_weights(w1, w2, w3, tn=tn, compute_dtype=compute_dtype)
    return feed_forward_pallas_prepared(x, w13, w2_t, tn=tn, tm=tm)


# ----------------------------------------------------------------------------
# References and test
# ----------------------------------------------------------------------------
def _init_linear_weight(key, out_features, in_features, dtype=jnp.float32):
    # nn.Linear default init: U(-1/sqrt(in), 1/sqrt(in)).
    bound = 1.0 / math.sqrt(in_features)
    return jax.random.uniform(
        key, (out_features, in_features), dtype=dtype, minval=-bound, maxval=bound
    )


def _reference_f32(x, w1, w2, w3):
    h1 = x @ w1.T
    swish = h1 * jax.nn.sigmoid(h1)
    h3 = x @ w3.T
    return (swish * h3) @ w2.T


def _reference_bf16(x, w1, w2, w3):
    # Mirrors the kernel's bf16-compute path: bf16 MXU operands, f32 math
    # for SiLU/gating, bf16 cast before the down projection, f32 accumulate.
    xb = x.astype(jnp.bfloat16)
    w1b, w2b, w3b = (w.astype(jnp.bfloat16) for w in (w1, w2, w3))
    h1 = jnp.dot(xb, w1b.T, preferred_element_type=jnp.float32)
    h3 = jnp.dot(xb, w3b.T, preferred_element_type=jnp.float32)
    gated = (h1 * jax.nn.sigmoid(h1)) * h3
    out = jnp.dot(gated.astype(jnp.bfloat16), w2b.T,
                  preferred_element_type=jnp.float32)
    return out.astype(x.dtype)


if __name__ == "__main__":
    # Small config consistent with the module (dim, multiple_of -> hidden).
    dim = 256
    multiple_of = 128
    hidden = _compute_hidden_dim(dim, multiple_of)  # -> 768
    batch, seq = 2, 9                               # M = 18 (exercises padding)

    key = jax.random.PRNGKey(0)
    kx, k1, k2, k3 = jax.random.split(key, 4)

    x = jax.random.normal(kx, (batch, seq, dim), dtype=jnp.float32)
    w1 = _init_linear_weight(k1, hidden, dim)   # (hidden, dim)
    w2 = _init_linear_weight(k2, dim, hidden)   # (dim, hidden)
    w3 = _init_linear_weight(k3, hidden, dim)   # (hidden, dim)

    # --- f32 path: small tiles exercise token padding + hidden-axis accumulation.
    out_f32 = feed_forward_pallas(x, w1, w2, w3, tm=16, tn=384,
                                  compute_dtype=jnp.float32)
    out_f32 = jax.block_until_ready(out_f32)
    ref_f32 = _reference_f32(x, w1, w2, w3)
    assert out_f32.shape == (batch, seq, dim)
    assert jnp.allclose(out_f32, ref_f32, atol=1e-3, rtol=1e-3), "f32 mismatch"

    # --- default path: bf16 MXU operands, chip-aware tile sizes.
    out_bf16 = feed_forward_pallas(x, w1, w2, w3)
    out_bf16 = jax.block_until_ready(out_bf16)
    ref_bf16 = _reference_bf16(x, w1, w2, w3)
    assert out_bf16.shape == (batch, seq, dim)
    assert jnp.allclose(out_bf16, ref_bf16, atol=2e-2, rtol=2e-2), "bf16 mismatch"

    print("KERNEL_OK")
</pallas_src>

<mosaic_0001>
module attributes {stable_mosaic.version = 11 : i64} {
  func.func @_ffn_kernel(%arg0: i32, %arg1: i32, %arg2: memref<16x256xf32, #tpu.memory_space<vmem>>, %arg3: memref<256x768xf32, #tpu.memory_space<vmem>>, %arg4: memref<384x256xf32, #tpu.memory_space<vmem>>, %arg5: memref<16x256xf32, #tpu.memory_space<vmem>>, %arg6: memref<16x256xf32, #tpu.memory_space<vmem>>) attributes {dimension_semantics = [#tpu.dimension_semantics<parallel>, #tpu.dimension_semantics<arbitrary>], iteration_bounds = array<i64: 2, 2>, scalar_prefetch = 0 : i64, scratch_operands = 1 : i64, tpu.core_type = #tpu.core_type<tc>, window_params = [{pipeline_mode = #tpu.pipeline_mode<synchronous>, transform_indices = @transform_0, window_bounds = array<i64: 16, 256>}, {transform_indices = @transform_1, window_bounds = array<i64: 256, 768>}, {transform_indices = @transform_2, window_bounds = array<i64: 384, 256>}, {pipeline_mode = #tpu.pipeline_mode<synchronous>, transform_indices = @transform_3, window_bounds = array<i64: 16, 256>}]} {
    %c0_i32 = arith.constant 0 : i32
    %0 = arith.cmpi eq, %arg1, %c0_i32 : i32
    %1 = arith.extui %0 : i1 to i32
    %c0_i32_0 = arith.constant 0 : i32
    %2 = arith.cmpi ne, %1, %c0_i32_0 : i32
    scf.if %2 {
      %cst_13 = arith.constant 0.000000e+00 : f32
      %23 = vector.broadcast %cst_13 : f32 to vector<16x256xf32>
      %c0_14 = arith.constant 0 : index
      %c0_15 = arith.constant 0 : index
      %24 = vector.load %arg6[%c0_14, %c0_15] : memref<16x256xf32, #tpu.memory_space<vmem>>, vector<16x256xf32>
      tpu.vector_store %arg6[%c0_14, %c0_15], %23 {strides = array<i32>} : memref<16x256xf32, #tpu.memory_space<vmem>>, vector<16x256xf32>,
    } else {
    }
    %c0 = arith.constant 0 : index
    %c0_1 = arith.constant 0 : index
    %3 = vector.load %arg2[%c0, %c0_1] : memref<16x256xf32, #tpu.memory_space<vmem>>, vector<16x256xf32>
    %c0_2 = arith.constant 0 : index
    %c0_3 = arith.constant 0 : index
    %4 = vector.load %arg3[%c0_2, %c0_3] : memref<256x768xf32, #tpu.memory_space<vmem>>, vector<256x768xf32>
    %cst = arith.constant dense<0.000000e+00> : vector<16x768xf32>
    %5 = tpu.matmul %3, %4, %cst {dimension_numbers = #tpu.dot_dimension_numbers<[1], [0], [0], [1], [0, 0, 1, 1], [], []>} : vector<16x256xf32>, vector<256x768xf32>, vector<16x768xf32> -> vector<16x768xf32>
    %6 = vector.extract_strided_slice %5 {offsets = [0, 0], sizes = [16, 384], strides = [1, 1]} : vector<16x768xf32> to vector<16x384xf32>
    %7 = vector.extract_strided_slice %5 {offsets = [0, 384], sizes = [16, 384], strides = [1, 1]} : vector<16x768xf32> to vector<16x384xf32>
    %8 = arith.negf %6 : vector<16x384xf32>
    %9 = math.exp %8 : vector<16x384xf32>
    %cst_4 = arith.constant 1.000000e+00 : f32
    %10 = vector.broadcast %cst_4 : f32 to vector<16x384xf32>
    %11 = arith.addf %10, %9 : vector<16x384xf32>
    %12 = arith.divf %10, %11 : vector<16x384xf32>
    %13 = arith.mulf %6, %12 : vector<16x384xf32>
    %14 = arith.mulf %13, %7 : vector<16x384xf32>
    %c0_5 = arith.constant 0 : index
    %c0_6 = arith.constant 0 : index
    %15 = vector.load %arg6[%c0_5, %c0_6] : memref<16x256xf32, #tpu.memory_space<vmem>>, vector<16x256xf32>
    %c0_7 = arith.constant 0 : index
    %c0_8 = arith.constant 0 : index
    %16 = vector.load %arg4[%c0_7, %c0_8] : memref<384x256xf32, #tpu.memory_space<vmem>>, vector<384x256xf32>
    %cst_9 = arith.constant dense<0.000000e+00> : vector<16x256xf32>
    %17 = tpu.matmul %14, %16, %cst_9 {dimension_numbers = #tpu.dot_dimension_numbers<[1], [0], [0], [1], [0, 0, 1, 1], [], []>} : vector<16x384xf32>, vector<384x256xf32>, vector<16x256xf32> -> vector<16x256xf32>
    %18 = arith.addf %15, %17 : vector<16x256xf32>
    %c0_10 = arith.constant 0 : index
    %c0_11 = arith.constant 0 : index
    %19 = vector.load %arg6[%c0_10, %c0_11] : memref<16x256xf32, #tpu.memory_space<vmem>>, vector<16x256xf32>
    tpu.vector_store %arg6[%c0_10, %c0_11], %18 {strides = array<i32>} : memref<16x256xf32, #tpu.memory_space<vmem>>, vector<16x256xf32>,
    %c1_i32 = arith.constant 1 : i32
    %20 = arith.cmpi eq, %arg1, %c1_i32 : i32
    %21 = arith.extui %20 : i1 to i32
    %c0_i32_12 = arith.constant 0 : i32
    %22 = arith.cmpi ne, %21, %c0_i32_12 : i32
    scf.if %22 {
      %c0_13 = arith.constant 0 : index
      %c0_14 = arith.constant 0 : index
      %23 = vector.load %arg6[%c0_13, %c0_14] : memref<16x256xf32, #tpu.memory_space<vmem>>, vector<16x256xf32>
      %c0_15 = arith.constant 0 : index
      %c0_16 = arith.constant 0 : index
      %24 = vector.load %arg5[%c0_15, %c0_16] : memref<16x256xf32, #tpu.memory_space<vmem>>, vector<16x256xf32>
      tpu.vector_store %arg5[%c0_15, %c0_16], %23 {strides = array<i32>} : memref<16x256xf32, #tpu.memory_space<vmem>>, vector<16x256xf32>,
    } else {
    }
    return
  }
  func.func @transform_0(%arg0: i32, %arg1: i32) -> (i32, i32) {
    %c0_i32 = arith.constant 0 : i32
    %c0_i32_0 = arith.constant 0 : i32
    return %arg0, %c0_i32 : i32, i32
  }
  func.func @transform_1(%arg0: i32, %arg1: i32) -> (i32, i32) {
    %c0_i32 = arith.constant 0 : i32
    %c0_i32_0 = arith.constant 0 : i32
    return %c0_i32, %arg1 : i32, i32
  }
  func.func @transform_2(%arg0: i32, %arg1: i32) -> (i32, i32) {
    %c0_i32 = arith.constant 0 : i32
    %c0_i32_0 = arith.constant 0 : i32
    return %arg1, %c0_i32 : i32, i32
  }
  func.func @transform_3(%arg0: i32, %arg1: i32) -> (i32, i32) {
    %c0_i32 = arith.constant 0 : i32
    %c0_i32_0 = arith.constant 0 : i32
    return %arg0, %c0_i32 : i32, i32
  }
}

module attributes {stable_mosaic.version = 11 : i64} {
  func.func @_ffn_kernel(%arg0: i32, %arg1: i32, %arg2: memref<16x256xf32, #tpu.memory_space<vmem>>, %arg3: memref<256x768xf32, #tpu.memory_space<vmem>>, %arg4: memref<384x256xf32, #tpu.memory_space<vmem>>, %arg5: memref<16x256xf32, #tpu.memory_space<vmem>>, %arg6: memref<16x256xf32, #tpu.memory_space<vmem>>) attributes {dimension_semantics = [#tpu.dimension_semantics<parallel>, #tpu.dimension_semantics<arbitrary>], iteration_bounds = array<i64: 2, 2>, scalar_prefetch = 0 : i64, scratch_operands = 1 : i64, tpu.core_type = #tpu.core_type<tc>, window_params = [{transform_indices = @transform_0, window_bounds = array<i64: 16, 256>}, {transform_indices = @transform_1, window_bounds = array<i64: 256, 768>}, {transform_indices = @transform_2, window_bounds = array<i64: 384, 256>}, {transform_indices = @transform_3, window_bounds = array<i64: 16, 256>}]} {
    %c0_i32 = arith.constant 0 : i32
    %0 = arith.cmpi eq, %arg1, %c0_i32 : i32
    %1 = arith.extui %0 : i1 to i32
    %c0_i32_0 = arith.constant 0 : i32
    %2 = arith.cmpi ne, %1, %c0_i32_0 : i32
    scf.if %2 {
      %cst_13 = arith.constant 0.000000e+00 : f32
      %23 = vector.broadcast %cst_13 : f32 to vector<16x256xf32>
      %c0_14 = arith.constant 0 : index
      %c0_15 = arith.constant 0 : index
      %24 = vector.load %arg6[%c0_14, %c0_15] : memref<16x256xf32, #tpu.memory_space<vmem>>, vector<16x256xf32>
      tpu.vector_store %arg6[%c0_14, %c0_15], %23 {strides = array<i32>} : memref<16x256xf32, #tpu.memory_space<vmem>>, vector<16x256xf32>,
    } else {
    }
    %c0 = arith.constant 0 : index
    %c0_1 = arith.constant 0 : index
    %3 = vector.load %arg2[%c0, %c0_1] : memref<16x256xf32, #tpu.memory_space<vmem>>, vector<16x256xf32>
    %c0_2 = arith.constant 0 : index
    %c0_3 = arith.constant 0 : index
    %4 = vector.load %arg3[%c0_2, %c0_3] : memref<256x768xf32, #tpu.memory_space<vmem>>, vector<256x768xf32>
    %cst = arith.constant dense<0.000000e+00> : vector<16x768xf32>
    %5 = tpu.matmul %3, %4, %cst {dimension_numbers = #tpu.dot_dimension_numbers<[1], [0], [0], [1], [0, 0, 1, 1], [], []>} : vector<16x256xf32>, vector<256x768xf32>, vector<16x768xf32> -> vector<16x768xf32>
    %6 = vector.extract_strided_slice %5 {offsets = [0, 0], sizes = [16, 384], strides = [1, 1]} : vector<16x768xf32> to vector<16x384xf32>
    %7 = vector.extract_strided_slice %5 {offsets = [0, 384], sizes = [16, 384], strides = [1, 1]} : vector<16x768xf32> to vector<16x384xf32>
    %8 = arith.negf %6 : vector<16x384xf32>
    %9 = math.exp %8 : vector<16x384xf32>
    %cst_4 = arith.constant 1.000000e+00 : f32
    %10 = vector.broadcast %cst_4 : f32 to vector<16x384xf32>
    %11 = arith.addf %10, %9 : vector<16x384xf32>
    %12 = arith.divf %10, %11 : vector<16x384xf32>
    %13 = arith.mulf %6, %12 : vector<16x384xf32>
    %14 = arith.mulf %13, %7 : vector<16x384xf32>
    %c0_5 = arith.constant 0 : index
    %c0_6 = arith.constant 0 : index
    %15 = vector.load %arg6[%c0_5, %c0_6] : memref<16x256xf32, #tpu.memory_space<vmem>>, vector<16x256xf32>
    %c0_7 = arith.constant 0 : index
    %c0_8 = arith.constant 0 : index
    %16 = vector.load %arg4[%c0_7, %c0_8] : memref<384x256xf32, #tpu.memory_space<vmem>>, vector<384x256xf32>
    %cst_9 = arith.constant dense<0.000000e+00> : vector<16x256xf32>
    %17 = tpu.matmul %14, %16, %cst_9 {dimension_numbers = #tpu.dot_dimension_numbers<[1], [0], [0], [1], [0, 0, 1, 1], [], []>} : vector<16x384xf32>, vector<384x256xf32>, vector<16x256xf32> -> vector<16x256xf32>
    %18 = arith.addf %15, %17 : vector<16x256xf32>
    %c0_10 = arith.constant 0 : index
    %c0_11 = arith.constant 0 : index
    %19 = vector.load %arg6[%c0_10, %c0_11] : memref<16x256xf32, #tpu.memory_space<vmem>>, vector<16x256xf32>
    tpu.vector_store %arg6[%c0_10, %c0_11], %18 {strides = array<i32>} : memref<16x256xf32, #tpu.memory_space<vmem>>, vector<16x256xf32>,
    %c1_i32 = arith.constant 1 : i32
    %20 = arith.cmpi eq, %arg1, %c1_i32 : i32
    %21 = arith.extui %20 : i1 to i32
    %c0_i32_12 = arith.constant 0 : i32
    %22 = arith.cmpi ne, %21, %c0_i32_12 : i32
    scf.if %22 {
      %c0_13 = arith.constant 0 : index
      %c0_14 = arith.constant 0 : index
      %23 = vector.load %arg6[%c0_13, %c0_14] : memref<16x256xf32, #tpu.memory_space<vmem>>, vector<16x256xf32>
      %c0_15 = arith.constant 0 : index
      %c0_16 = arith.constant 0 : index
      %24 = vector.load %arg5[%c0_15, %c0_16] : memref<16x256xf32, #tpu.memory_space<vmem>>, vector<16x256xf32>
      tpu.vector_store %arg5[%c0_15, %c0_16], %23 {strides = array<i32>} : memref<16x256xf32, #tpu.memory_space<vmem>>, vector<16x256xf32>,
    } else {
    }
    return
  }
  func.func @transform_0(%arg0: i32, %arg1: i32) -> (i32, i32) {
    %c0_i32 = arith.constant 0 : i32
    %c0_i32_0 = arith.constant 0 : i32
    return %arg0, %c0_i32 : i32, i32
  }
  func.func @transform_1(%arg0: i32, %arg1: i32) -> (i32, i32) {
    %c0_i32 = arith.constant 0 : i32
    %c0_i32_0 = arith.constant 0 : i32
    return %c0_i32, %arg1 : i32, i32
  }
  func.func @transform_2(%arg0: i32, %arg1: i32) -> (i32, i32) {
    %c0_i32 = arith.constant 0 : i32
    %c0_i32_0 = arith.constant 0 : i32
    return %arg1, %c0_i32 : i32, i32
  }
  func.func @transform_3(%arg0: i32, %arg1: i32) -> (i32, i32) {
    %c0_i32 = arith.constant 0 : i32
    %c0_i32_0 = arith.constant 0 : i32
    return %arg0, %c0_i32 : i32, i32
  }
}

</mosaic_0001>

<bundles_post_ra>
// kernel: tpu_custom_call.1
= control target key start
LH: loop header
LB: loop body
LE: loop exit
PB: predicated region body
PF: predicated region fallthrough
CT: control target
= control target key end

     0   :  { %s2275_s0 = inlined_call_operand.hbm [shape: f32[32,256], index: 0, kind: input, shape index: {}]   ;;  %s2276_s1 = inlined_call_operand.hbm [shape: f32[256,1536], index: 1, kind: input, shape index: {}]   ;;  %s2277_s2 = inlined_call_operand.hbm [shape: f32[768,256], index: 2, kind: input, shape index: {}]   ;;  %s2278_s3 = inlined_call_operand.hbm [shape: f32[32,256], index: 3, kind: output, shape index: {}]  }
   0x1   :  { %2294 = sst [smem:[#allocation19_spill]] %s2276_s1 }
   0x2   :  { %8 = vsyncpa [#allocation4], 0 }
   0x3   :  { %9 = vsyncpa [#allocation7], 0 }
   0x4   :  { %11 = vsyncpa [#allocation7 + $0x1], 0 }
   0x5   :  { %12 = vsyncpa [#allocation5], 0  ;;  %s1581_s12 = smov 0   ;;  %s1583_s13 = smov 0  }
   0x6   :  { %s1585_s14 = smov 0   ;;  %s1587_s15 = smov 0  }
   0x7   :  { %s1589_s16 = smov 0   ;;  %s1591_s17 = smov 0  }
   0x8   :  { %s1593_s18 = smov 0   ;;  %s1595_s19 = smov 0  }
   0x9   :  { %s1597_s20 = smov 0   ;;  %s1599_s21 = smov 0  }
   0xa   :  { %s1601_s22 = smov 0  }
   0xb LB: > { %2295 = sst [smem:[#allocation13_spill]] %s1522_s16  ;;  %s27_s23 = sadd.s32 1, %s1538_s20  ;;  %s1546_s22 = sphi %s1601_s22, %s18_s22   ;;  %s1542_s21 = sphi %s1599_s21, %s2321_s21   ;;  %s1538_s20 = sphi %s1597_s20, %s2326_s20   ;;  %s1534_s19 = sphi %s1595_s19, %s2319_s19   ;;  %s1530_s18 = sphi %s1593_s18, %s2325_s18   ;;  %s1526_s17 = sphi %s1591_s17, %s2318_s17   ;;  %s1522_s16 = sphi %s1589_s16, %s2317_s16   ;;  %s1518_s15 = sphi %s1587_s15, %s2316_s15   ;;  %s1514_s14 = sphi %s1585_s14, %s2324_s14   ;;  %s1510_s13 = sphi %s1583_s13, %s2323_s13   ;;  %s1506_s12 = sphi %s1581_s12, %s2322_s12  }
   0xc   : > { %2296 = sst [smem:[#allocation14_spill]] %s1526_s17  ;;  %s30_s24 = sadd.s32 1, %s1542_s21 }
   0xd   : > { %2297 = sst [smem:[#allocation15_spill]] %s1542_s21  ;;  %p28_p0 = scmp.ge.s32.totalorder %s27_s23, 2 }
   0xe   : > { %s63_s25 = sadd.s32 1, %s1514_s14  ;;  %p70_p1 = scmp.ne.s32.totalorder %s1514_s14, %s1510_s13 }
   0xf   : > { %p71_p2 = scmp.eq.s32.totalorder %s1546_s22, 0  ;;  %s2328_s23 = smov (%p28_p0, %s27_s23), 0 }
  0x10   : > { %2298 = sst [smem:[#allocation16_spill]] %s2328_s23  ;;  %s2330_s24 = smov (!%p28_p0, %s30_s24), %s1542_s21 }
  0x11   : > { %s60_s26 = ssub.s32 %s1538_s20, %s2328_s23  ;;  %p72_p3 = por %p71_p2, %p70_p1 }
  0x12   : > { %p32_p4 = scmp.ge.s32.totalorder %s2330_s24, 2  ;;  %p61_p5 = scmp.eq.s32.totalorder %s60_s26, 0 }
  0x13   : > { %p1214_p6 = scmp.lt.s32.totalorder %s1546_s22, 4  ;;  %s169_s28 = sand.u32 1, %s1546_s22  }
  0x14   : > { %s2332_s24 = smov (%p32_p4, %s2330_s24), 0  ;;  %s2279_s29 = sand.u32 1, %s1514_s14  }
  0x15   : > { %2299 = sst [smem:[#allocation17_spill]] %s2332_s24  ;;  %s1191_s30 = smul.u32 1536, %s2279_s29 }
  0x16   : > { %s1651_s27 = scalar_select %p61_p5, %s1514_s14, %s63_s25  }
  0x17   : > { %s1153_s4 = smul.u32 768, %s1538_s20  ;;  %p1658_p7 = pnand %p1214_p6, %p72_p3 }
  0x18   : > { %s2301_s1 = sld [smem:[#allocation19_spill]]  ;;  %s173_s9 = scalar_lea.vmem [#allocation6], %s1191_s30 }
  0x19   : > { %s2300_s5 = scalar_select %p1658_p7, 1, 0 }
  0x1a   : > { %s180_s10 = sshll.u32 %s173_s9, 4  ;;  %s1665_s11 = scalar_lea.sflag [#allocation7], %s169_s28  ;;  %s181_s10 = int_to_ptr.vmem [resolvable:$true] %s180_s10 }
  0x1b   : > { %p2286_p8 = pneg %p1658_p7  ;;  %s1351_s25 = scalar_lea.vmem %s181_s10, 24576 }
  0x1c   : > { %p1352_p9 = scmp.ne.s32.totalorder %s181_s10, %s1351_s25  ;;  %s1548_s26 = smov [#allocation6]  }
  0x1d   : > { %s1356_s29 = sshll.u32 %s1548_s26, 4  ;;  %s1357_s29 = int_to_ptr.vmem [resolvable:$false] %s1356_s29 }
  0x1e   : > { %s179_s8 = scalar_lea.hbm %s2301_s1, %s1153_s4  ;;  %p1354_p10 = pnand %p1352_p9, %p2286_p8 }
  0x1f   : > { %s1358_s6 = scalar_lea.vmem %s1357_s29, 49152  ;;  %p1359_p12 = scmp.lt.s32.totalorder %s181_s10, %s1357_s29 }
  0x20   : > { %p1355_p11 = pneg %p1354_p10  ;;  %p1360_p13 = scmp.lt.s32.totalorder %s1358_s6, %s1351_s25 }
  0x22   : > { %p1361_p0 = por %p1360_p13, %p1359_p12 }
  0x24   : > { %p1362_p1 = pnand %p1361_p0, %p1355_p11 }
  0x26   : > { %1365 = shalt.err (!%p1362_p1)
}
  0x27   : > { %s1549_s30 = smov 1536   ;;  %s1550_s28 = smov 768  }
  0x28   : > { %s1551_s29 = smov 48   ;;  %s1676_s4 = sadd.s32 4294967295, %s1546_s22  }
  0x29   : > { %1210 = dma.hbm_to_vmem [thread:$0]  (!%p1658_p7), %s179_s8, 24576, %s181_s10, %s1665_s11, %s1549_s30, %s1550_s28, %s1551_s29  }
  0x2a   : > { %s34_s7 = ssub.s32 %s1542_s21, %s2332_s24  ;;  %s37_s9 = sadd.s32 1, %s1526_s17 }
  0x2b   : > { %p35_p2 = scmp.eq.s32.totalorder %s34_s7, 0  ;;  %p50_p3 = scmp.ne.s32.totalorder %s1522_s16, %s1518_s15 }
  0x2c   : > { %p51_p4 = scmp.eq.s32.totalorder %s1676_s4, 0  ;;  %p76_p6 = scmp.ne.s32.totalorder %s1510_s13, %s1506_s12 }
  0x2d   : > { %s1685_s25 = scalar_select %p35_p2, %s1526_s17, %s37_s9  }
  0x2e   : > { %p1687_p5 = por %p51_p4, %p50_p3  ;;  %p125_p9 = scmp.ne.s32.totalorder %s1526_s17, %s1522_s16 }
  0x2f   : > { %2302 = sst [smem:[#allocation18_spill]] %s1685_s25  ;;  %p126_p10 = scmp.eq.s32.totalorder %s1676_s4, 3 }
  0x30   : > { %s2303_s26 = scalar_select %p1687_p5, 1, 0 }
  0x31   : > { %p1696_p11 = por %p76_p6, %p51_p4  ;;  %p1129_p12 = scmp.ge.s32.totalorder %s1546_s22, 1 }
  0x32   : > { %p1701_p13 = por %p126_p10, %p125_p9  ;;  %p139_p0 = scmp.lt.s32.totalorder %s1546_s22, 5 }
  0x33   : > { %s2304_s8 = scalar_select %p1696_p11, 1, 0 }
  0x34   : > { %s2305_s15 = scalar_select %p1701_p13, 1, 0 }
  0x35   : > { %s2281_s10 = sshll.u32 %s1534_s19, 9  ;;  %p1707_p1 = pnand %p1129_p12, %p139_p0 }
  0x36   : > { %s1716_s28 = scalar_lea.hbm %s2275_s0, %s2281_s10  ;;  %s1552_s29 = smov [#allocation3]  }
  0x37   : > { %s2306_s6 = scalar_select %p1707_p1, 1, 0 }
  0x38   : > { %s155_s7 = sshll.u32 %s1552_s29, 4  ;;  %p1203_p2 = pneg %p1707_p1  ;;  %s1720_s7 = int_to_ptr.vmem [resolvable:$true] %s155_s7 }
  0x39   : > { %s2307_s9 = sand.u32 1, %s1514_s14   ;;  %s1158_s12 = smul.u32 12288, %s1538_s20 }
  0x3a   : > { %s1724_s1 = smul.u32 768, %s2307_s9  ;;  %p1728_p3 = pnand %p1203_p2, %p1687_p5 }
  0x3b   : > { %s1736_s23 = scalar_lea.hbm %s2277_s2, %s1158_s12  ;;  %s1366_s29 = scalar_lea.hbm %s1716_s28, 512 }
  0x3c   : > { %p1367_p4 = scmp.ne.s32.totalorder %s1716_s28, %s1366_s29  ;;  %p1368_p6 = pneg %p1728_p3 }
  0x3d   : > { %s1371_s25 = scalar_lea.hbm %s2275_s0, 1024  ;;  %p1372_p12 = scmp.lt.s32.totalorder %s1716_s28, %s2275_s0 }
  0x3e   : > { %p1369_p9 = pnand %p1368_p6, %p1367_p4  ;;  %p1373_p0 = scmp.lt.s32.totalorder %s1371_s25, %s1366_s29 }
  0x40   : > { %p1370_p10 = pneg %p1369_p9  ;;  %p1374_p2 = por %p1373_p0, %p1372_p12 }
  0x42   : > { %p1375_p8 = pnand %p1374_p2, %p1370_p10 }
  0x44   : > { %1378 = shalt.err (!%p1375_p8)
}
  0x45   : > { %s1379_s10 = scalar_lea.vmem %s1720_s7, 512  ;;  %p1387_p9 = scmp.lt.s32.totalorder %s1720_s7, %s1720_s7 }
  0x46   : > { %p1380_p13 = scmp.ne.s32.totalorder %s1720_s7, %s1379_s10  ;;  %p1388_p5 = scmp.lt.s32.totalorder %s1379_s10, %s1379_s10 }
  0x48   : > { %p1382_p11 = pnand %p1380_p13, %p1368_p6  ;;  %p1389_p1 = por %p1388_p5, %p1387_p9 }
  0x4a   : > { %p1383_p4 = pneg %p1382_p11 }
  0x4c   : > { %p1390_p7 = pnand %p1389_p1, %p1383_p4 }
  0x4e   : > { %1393 = shalt.err (!%p1390_p7)
}
  0x4f   : > { %s1553_s21 = smov 256   ;;  %s1554_s16 = smov 16  }
  0x50   : > { %1206 = dma.hbm_to_vmem [thread:$0]  (!%p1728_p3), %s1716_s28, 512, %s1720_s7, [#allocation4], %s1553_s21, %s1553_s21, %s1554_s16  }
  0x51   : > { %s194_s17 = scalar_lea.vmem [#allocation8], %s1724_s1  ;;  %p2309_p11 = scmp.ne.s32.totalorder %s2300_s5, 0 }
  0x52   : > { %s202_s25 = sshll.u32 %s194_s17, 4  ;;  %s1555_s30 = smov [#allocation8]   ;;  %s203_s25 = int_to_ptr.vmem [resolvable:$true] %s202_s25 }
  0x53   : > { %s1407_s12 = scalar_lea.vmem %s203_s25, 12288  ;;  %p2310_p13 = pneg %p2309_p11 }
  0x54   : > { %p1408_p8 = scmp.ne.s32.totalorder %s203_s25, %s1407_s12  ;;  %s1412_s29 = sshll.u32 %s1555_s30, 4  ;;  %s1413_s29 = int_to_ptr.vmem [resolvable:$false] %s1412_s29 }
  0x55   : > { %s1414_s9 = scalar_lea.vmem %s1413_s29, 24576  ;;  %p1415_p7 = scmp.lt.s32.totalorder %s203_s25, %s1413_s29 }
  0x56   : > { %p1410_p6 = pnand %p1408_p8, %p2310_p13  ;;  %p1416_p1 = scmp.lt.s32.totalorder %s1414_s9, %s1407_s12 }
  0x58   : > { %p1411_p5 = pneg %p1410_p6  ;;  %p1417_p10 = por %p1416_p1, %p1415_p7 }
  0x5a   : > { %p1418_p12 = pnand %p1417_p10, %p1411_p5 }
  0x5c   : > { %1421 = shalt.err (!%p1418_p12)
}
  0x5d   : > { %1213 = dma.hbm_to_vmem [thread:$0]  (!%p2309_p11), %s1736_s23, 12288, %s203_s25, %s1665_s11, %s1553_s21, %s1553_s21, %s1554_s16  }
  0x5e   : > { %p2311_p3 = scmp.ne.s32.totalorder %s2306_s6, 0 }
  0x5f   : > { %p2312_p0 = scmp.ne.s32.totalorder (!%p2311_p3), %s2303_s26, 0 }
  0x60   : > { %214 = sbr.rel (%p2311_p3) target bundleno = 708 (0x2c4), region = 32 }
  0x65   : > { %1493 = dma.done.wait (%p2312_p0), [#allocation4], 512  }
  0x66   : > { %1495 = vsyncadd (%p2312_p0), [#allocation4], 4294966784  ;;  %s220_s1 = sand.u32 1, %s1676_s4   ;;  %s222_s24 = sand.u32 1, %s1510_s13  }
  0x67   : > { %s1193_s28 = smul.u32 1536, %s222_s24  ;;  %s221_s7 = scalar_lea.sflag [#allocation7], %s220_s1 }
  0x68   : > { %p2313_p2 = scmp.ne.s32.totalorder %s2304_s8, 0 }
  0x69   : > { %s1773_s5 = scalar_lea.vmem [#allocation6], %s1193_s28 }
  0x6a   : > { %1497 = dma.done.wait (%p2313_p2), %s221_s7, 36864  }
  0x6b   : > { %1499 = vsyncadd (%p2313_p2), %s221_s7, 4294930432  ;;  %s1194_s23 = smul.u32 768, %s222_s24  ;;  %p1138_p4 = scmp.ne.s32.totalorder %s1530_s18, 0 }
  0x6d   : > { %s1779_s11 = scalar_lea.vmem [#allocation8], %s1194_s23  ;;  %263 = sbr.rel (%p1138_p4) target bundleno = 117 (0x75), region = 48 }
  0x72   : > { %v1556_v0 = vmov 0.0  }
  0x73   : > { %264 = vst [vmem:[#allocation2 + $0x10] sm:$0xff] %v1556_v0  ;;  %265 = vst [vmem:[#allocation2] sm:$0xff] %v1556_v0 }
  0x74   : > { %266 = vst [vmem:[#allocation2 + $0x18] sm:$0xff] %v1556_v0  ;;  %267 = vst [vmem:[#allocation2 + $0x8] sm:$0xff] %v1556_v0 }
  0x75 PF: > { %v363_v1 = vld [vmem:[%s1773_s5 + $0x2d8] sm:$0xff]  ;;  %v362_v2 = vld [vmem:[%s1773_s5 + $0x2d0] sm:$0xff]  ;;  %v357_v3 = vld [vmem:[%s1773_s5 + $0x2a8] sm:$0xff]  ;;  %p1145_p9 = scmp.ne.s32.totalorder %s1530_s18, 1 }
  0x76   : > { %464 = vmatprep.subr.mxu0 %v363_v1  ;;  %v356_v4 = vld [vmem:[%s1773_s5 + $0x2a0] sm:$0xff]  ;;  %v351_v5 = vld [vmem:[%s1773_s5 + $0x278] sm:$0xff]  ;;  %v350_v6 = vld [vmem:[%s1773_s5 + $0x270] sm:$0xff] }
  0x77   : > { %465 = vmatpush1.msra.mxu0 %v362_v2  ;;  %v345_v7 = vld [vmem:[%s1773_s5 + $0x248] sm:$0xff]  ;;  %v344_v8 = vld [vmem:[%s1773_s5 + $0x240] sm:$0xff]  ;;  %v339_v9 = vld [vmem:[%s1773_s5 + $0x218] sm:$0xff] }
  0x78   : > { %466 = vmatprep.subr.mxu0 %v357_v3  ;;  %v338_v10 = vld [vmem:[%s1773_s5 + $0x210] sm:$0xff]  ;;  %v333_v11 = vld [vmem:[%s1773_s5 + $0x1e8] sm:$0xff]  ;;  %v332_v12 = vld [vmem:[%s1773_s5 + $0x1e0] sm:$0xff] }
  0x79   : > { %467 = vmatpush1.msra.mxu0 %v356_v4  ;;  %v365_v13 = vld [vmem:[%s1773_s5 + $0x2e8] sm:$0xff]  ;;  %v364_v14 = vld [vmem:[%s1773_s5 + $0x2e0] sm:$0xff]  ;;  %v327_v15 = vld [vmem:[%s1773_s5 + $0x1b8] sm:$0xff] }
  0x7a   : > { %468 = vmatprep.subr.mxu0 %v351_v5  ;;  %541 = vmatprep.subr.mxu1 %v365_v13  ;;  %v359_v16 = vld [vmem:[%s1773_s5 + $0x2b8] sm:$0xff]  ;;  %v326_v17 = vld [vmem:[%s1773_s5 + $0x1b0] sm:$0xff]  ;;  %v353_v19 = vld [vmem:[%s1773_s5 + $0x288] sm:$0xff] }
  0x7b   : > { %469 = vmatpush1.msra.mxu0 %v350_v6  ;;  %542 = vmatpush1.msra.mxu1 %v364_v14  ;;  %v358_v18 = vld [vmem:[%s1773_s5 + $0x2b0] sm:$0xff]  ;;  %v321_v20 = vld [vmem:[%s1773_s5 + $0x188] sm:$0xff]  ;;  %v352_v21 = vld [vmem:[%s1773_s5 + $0x280] sm:$0xff] }
  0x7c   : > { %470 = vmatprep.subr.mxu0 %v345_v7  ;;  %543 = vmatprep.subr.mxu1 %v359_v16  ;;  %v320_v22 = vld [vmem:[%s1773_s5 + $0x180] sm:$0xff]  ;;  %v347_v23 = vld [vmem:[%s1773_s5 + $0x258] sm:$0xff]  ;;  %v346_v25 = vld [vmem:[%s1773_s5 + $0x250] sm:$0xff] }
  0x7d   : > { %471 = vmatpush1.msra.mxu0 %v344_v8  ;;  %544 = vmatpush1.msra.mxu1 %v358_v18  ;;  %v315_v24 = vld [vmem:[%s1773_s5 + $0x158] sm:$0xff]  ;;  %v314_v26 = vld [vmem:[%s1773_s5 + $0x150] sm:$0xff]  ;;  %v341_v27 = vld [vmem:[%s1773_s5 + $0x228] sm:$0xff] }
  0x7e   : > { %472 = vmatprep.subr.mxu0 %v339_v9  ;;  %545 = vmatprep.subr.mxu1 %v353_v19  ;;  %v309_v28 = vld [vmem:[%s1773_s5 + $0x128] sm:$0xff]  ;;  %v340_v29 = vld [vmem:[%s1773_s5 + $0x220] sm:$0xff]  ;;  %v335_v31 = vld [vmem:[%s1773_s5 + $0x1f8] sm:$0xff] }
  0x7f   : > { %473 = vmatpush1.msra.mxu0 %v338_v10  ;;  %546 = vmatpush1.msra.mxu1 %v352_v21  ;;  %v308_v30 = vld [vmem:[%s1773_s5 + $0x120] sm:$0xff]  ;;  %v303_v32 = vld [vmem:[%s1773_s5 + $0xf8] sm:$0xff]  ;;  %v334_v33 = vld [vmem:[%s1773_s5 + $0x1f0] sm:$0xff] }
  0x80   : > { %474 = vmatprep.subr.mxu0 %v333_v11  ;;  %547 = vmatprep.subr.mxu1 %v347_v23  ;;  %v302_v34 = vld [vmem:[%s1773_s5 + $0xf0] sm:$0xff]  ;;  %v329_v35 = vld [vmem:[%s1773_s5 + $0x1c8] sm:$0xff]  ;;  %v328_v37 = vld [vmem:[%s1773_s5 + $0x1c0] sm:$0xff] }
  0x81   : > { %475 = vmatpush1.msra.mxu0 %v332_v12  ;;  %548 = vmatpush1.msra.mxu1 %v346_v25  ;;  %v297_v36 = vld [vmem:[%s1773_s5 + $0xc8] sm:$0xff]  ;;  %v296_v38 = vld [vmem:[%s1773_s5 + $0xc0] sm:$0xff]  ;;  %v323_v39 = vld [vmem:[%s1773_s5 + $0x198] sm:$0xff] }
  0x82   : > { %476 = vmatprep.subr.mxu0 %v327_v15  ;;  %549 = vmatprep.subr.mxu1 %v341_v27  ;;  %v291_v40 = vld [vmem:[%s1773_s5 + $0x98] sm:$0xff]  ;;  %v322_v41 = vld [vmem:[%s1773_s5 + $0x190] sm:$0xff]  ;;  %v317_v43 = vld [vmem:[%s1773_s5 + $0x168] sm:$0xff] }
  0x83   : > { %477 = vmatpush1.msra.mxu0 %v326_v17  ;;  %550 = vmatpush1.msra.mxu1 %v340_v29  ;;  %v290_v42 = vld [vmem:[%s1773_s5 + $0x90] sm:$0xff]  ;;  %v285_v44 = vld [vmem:[%s1773_s5 + $0x68] sm:$0xff]  ;;  %v316_v45 = vld [vmem:[%s1773_s5 + $0x160] sm:$0xff] }
  0x84   : > { %478 = vmatprep.subr.mxu0 %v321_v20  ;;  %551 = vmatprep.subr.mxu1 %v335_v31  ;;  %v284_v46 = vld [vmem:[%s1773_s5 + $0x60] sm:$0xff]  ;;  %v311_v47 = vld [vmem:[%s1773_s5 + $0x138] sm:$0xff]  ;;  %v310_v49 = vld [vmem:[%s1773_s5 + $0x130] sm:$0xff] }
  0x85   : > { %479 = vmatpush1.msra.mxu0 %v320_v22  ;;  %552 = vmatpush1.msra.mxu1 %v334_v33  ;;  %v279_v48 = vld [vmem:[%s1773_s5 + $0x38] sm:$0xff]  ;;  %v278_v50 = vld [vmem:[%s1773_s5 + $0x30] sm:$0xff]  ;;  %v305_v51 = vld [vmem:[%s1773_s5 + $0x108] sm:$0xff] }
  0x86   : > { %480 = vmatprep.subr.mxu0 %v315_v24  ;;  %553 = vmatprep.subr.mxu1 %v329_v35  ;;  %v273_v52 = vld [vmem:[%s1773_s5 + $0x8] sm:$0xff]  ;;  %v304_v53 = vld [vmem:[%s1773_s5 + $0x100] sm:$0xff]  ;;  %v299_v55 = vld [vmem:[%s1773_s5 + $0xd8] sm:$0xff] }
  0x87   : > { %481 = vmatpush1.msra.mxu0 %v314_v26  ;;  %554 = vmatpush1.msra.mxu1 %v328_v37  ;;  %v272_v54 = vld [vmem:[%s1773_s5] sm:$0xff]  ;;  %v459_v56 = vld [vmem:[%s1773_s5 + $0x5d8] sm:$0xff]  ;;  %v298_v57 = vld [vmem:[%s1773_s5 + $0xd0] sm:$0xff] }
  0x88   : > { %482 = vmatprep.subr.mxu0 %v309_v28  ;;  %555 = vmatprep.subr.mxu1 %v323_v39  ;;  %v458_v58 = vld [vmem:[%s1773_s5 + $0x5d0] sm:$0xff]  ;;  %v293_v59 = vld [vmem:[%s1773_s5 + $0xa8] sm:$0xff]  ;;  %v292_v61 = vld [vmem:[%s1773_s5 + $0xa0] sm:$0xff] }
  0x89   : > { %483 = vmatpush1.msra.mxu0 %v308_v30  ;;  %556 = vmatpush1.msra.mxu1 %v322_v41  ;;  %v453_v60 = vld [vmem:[%s1773_s5 + $0x5a8] sm:$0xff]  ;;  %v452_v62 = vld [vmem:[%s1773_s5 + $0x5a0] sm:$0xff]  ;;  %v287_v63 = vld [vmem:[%s1773_s5 + $0x78] sm:$0xff] }
  0x8a   : > { %484 = vmatprep.subr.mxu0 %v303_v32  ;;  %557 = vmatprep.subr.mxu1 %v317_v43  ;;  %v447_v0 = vld [vmem:[%s1773_s5 + $0x578] sm:$0xff]  ;;  %v286_v1 = vld [vmem:[%s1773_s5 + $0x70] sm:$0xff]  ;;  %v281_v3 = vld [vmem:[%s1773_s5 + $0x48] sm:$0xff] }
  0x8b   : > { %485 = vmatpush1.msra.mxu0 %v302_v34  ;;  %558 = vmatpush1.msra.mxu1 %v316_v45  ;;  %v446_v2 = vld [vmem:[%s1773_s5 + $0x570] sm:$0xff]  ;;  %v441_v4 = vld [vmem:[%s1773_s5 + $0x548] sm:$0xff]  ;;  %v280_v5 = vld [vmem:[%s1773_s5 + $0x40] sm:$0xff] }
  0x8c   : > { %486 = vmatprep.subr.mxu0 %v297_v36  ;;  %559 = vmatprep.subr.mxu1 %v311_v47  ;;  %v440_v6 = vld [vmem:[%s1773_s5 + $0x540] sm:$0xff]  ;;  %v275_v7 = vld [vmem:[%s1773_s5 + $0x18] sm:$0xff]  ;;  %v274_v9 = vld [vmem:[%s1773_s5 + $0x10] sm:$0xff] }
  0x8d   : > { %487 = vmatpush1.msra.mxu0 %v296_v38  ;;  %560 = vmatpush1.msra.mxu1 %v310_v49  ;;  %v435_v8 = vld [vmem:[%s1773_s5 + $0x518] sm:$0xff]  ;;  %v434_v10 = vld [vmem:[%s1773_s5 + $0x510] sm:$0xff]  ;;  %v461_v11 = vld [vmem:[%s1773_s5 + $0x5e8] sm:$0xff] }
  0x8e   : > { %488 = vmatprep.subr.mxu0 %v291_v40  ;;  %561 = vmatprep.subr.mxu1 %v305_v51  ;;  %v429_v12 = vld [vmem:[%s1773_s5 + $0x4e8] sm:$0xff]  ;;  %v460_v13 = vld [vmem:[%s1773_s5 + $0x5e0] sm:$0xff]  ;;  %v455_v15 = vld [vmem:[%s1773_s5 + $0x5b8] sm:$0xff] }
  0x8f   : > { %489 = vmatpush1.msra.mxu0 %v290_v42  ;;  %562 = vmatpush1.msra.mxu1 %v304_v53  ;;  %v428_v14 = vld [vmem:[%s1773_s5 + $0x4e0] sm:$0xff]  ;;  %v423_v16 = vld [vmem:[%s1773_s5 + $0x4b8] sm:$0xff]  ;;  %v454_v17 = vld [vmem:[%s1773_s5 + $0x5b0] sm:$0xff] }
  0x90   : > { %490 = vmatprep.subr.mxu0 %v285_v44  ;;  %563 = vmatprep.subr.mxu1 %v299_v55  ;;  %v422_v18 = vld [vmem:[%s1773_s5 + $0x4b0] sm:$0xff]  ;;  %v449_v19 = vld [vmem:[%s1773_s5 + $0x588] sm:$0xff]  ;;  %v416_v22 = vld [vmem:[%s1773_s5 + $0x480] sm:$0xff] }
  0x91   : > { %491 = vmatpush1.msra.mxu0 %v284_v46  ;;  %564 = vmatpush1.msra.mxu1 %v298_v57  ;;  %v417_v20 = vld [vmem:[%s1773_s5 + $0x488] sm:$0xff]  ;;  %v448_v23 = vld [vmem:[%s1773_s5 + $0x580] sm:$0xff]  ;;  %v411_v24 = vld [vmem:[%s1773_s5 + $0x458] sm:$0xff] }
  0x92   : > { %492 = vmatprep.subr.mxu0 %v279_v48  ;;  %565 = vmatprep.subr.mxu1 %v293_v59  ;;  %v1866_v21 = vld [vmem:[#allocation3 + $0x8] sm:$0xff]  ;;  %v443_v25 = vld [vmem:[%s1773_s5 + $0x558] sm:$0xff]  ;;  %v410_v26 = vld [vmem:[%s1773_s5 + $0x450] sm:$0xff] }
  0x93   : > { %493 = vmatpush1.msra.mxu0 %v278_v50  ;;  %566 = vmatpush1.msra.mxu1 %v292_v61  ;;  %v442_v27 = vld [vmem:[%s1773_s5 + $0x550] sm:$0xff]  ;;  %v405_v28 = vld [vmem:[%s1773_s5 + $0x428] sm:$0xff]  ;;  %v404_v30 = vld [vmem:[%s1773_s5 + $0x420] sm:$0xff] }
  0x94   : > { %494 = vmatprep.subr.mxu0 %v273_v52  ;;  %567 = vmatprep.subr.mxu1 %v287_v63  ;;  %v437_v29 = vld [vmem:[%s1773_s5 + $0x528] sm:$0xff]  ;;  %v436_v31 = vld [vmem:[%s1773_s5 + $0x520] sm:$0xff]  ;;  %v399_v32 = vld [vmem:[%s1773_s5 + $0x3f8] sm:$0xff] }
  0x95   : > { %495 = vmatpush1.msra.mxu0 %v272_v54  ;;  %568 = vmatpush1.msra.mxu1 %v286_v1  ;;  %v431_v33 = vld [vmem:[%s1773_s5 + $0x4f8] sm:$0xff]  ;;  %v398_v34 = vld [vmem:[%s1773_s5 + $0x3f0] sm:$0xff]  ;;  %v393_v36 = vld [vmem:[%s1773_s5 + $0x3c8] sm:$0xff] }
  0x96   : > { %496 = vmatprep.subr.mxu0 %v459_v56  ;;  %569 = vmatprep.subr.mxu1 %v281_v3  ;;  %v430_v35 = vld [vmem:[%s1773_s5 + $0x4f0] sm:$0xff]  ;;  %v425_v37 = vld [vmem:[%s1773_s5 + $0x4c8] sm:$0xff]  ;;  %v392_v38 = vld [vmem:[%s1773_s5 + $0x3c0] sm:$0xff] }
  0x97   : > { %497 = vmatpush2.msra.mxu0 %v458_v58  ;;  %570 = vmatpush1.msra.mxu1 %v280_v5  ;;  %v424_v39 = vld [vmem:[%s1773_s5 + $0x4c0] sm:$0xff]  ;;  %v387_v40 = vld [vmem:[%s1773_s5 + $0x398] sm:$0xff]  ;;  %v386_v42 = vld [vmem:[%s1773_s5 + $0x390] sm:$0xff] }
  0x98   : > { %498 = vmatprep.subr.mxu0 %v453_v60  ;;  %571 = vmatprep.subr.mxu1 %v275_v7  ;;  %v419_v41 = vld [vmem:[%s1773_s5 + $0x498] sm:$0xff]  ;;  %v418_v43 = vld [vmem:[%s1773_s5 + $0x490] sm:$0xff]  ;;  %v381_v44 = vld [vmem:[%s1773_s5 + $0x368] sm:$0xff] }
  0x99   : > { %499 = vmatpush2.msra.mxu0 %v452_v62  ;;  %572 = vmatpush1.msra.mxu1 %v274_v9  ;;  %v413_v45 = vld [vmem:[%s1773_s5 + $0x468] sm:$0xff]  ;;  %v380_v46 = vld [vmem:[%s1773_s5 + $0x360] sm:$0xff]  ;;  %v375_v48 = vld [vmem:[%s1773_s5 + $0x338] sm:$0xff] }
  0x9a   : > { %500 = vmatprep.subr.mxu0 %v447_v0  ;;  %573 = vmatprep.subr.mxu1 %v461_v11  ;;  %v412_v47 = vld [vmem:[%s1773_s5 + $0x460] sm:$0xff]  ;;  %v407_v49 = vld [vmem:[%s1773_s5 + $0x438] sm:$0xff]  ;;  %v374_v50 = vld [vmem:[%s1773_s5 + $0x330] sm:$0xff] }
  0x9b   : > { %501 = vmatpush2.msra.mxu0 %v446_v2  ;;  %574 = vmatpush2.msra.mxu1 %v460_v13  ;;  %v406_v51 = vld [vmem:[%s1773_s5 + $0x430] sm:$0xff]  ;;  %v369_v52 = vld [vmem:[%s1773_s5 + $0x308] sm:$0xff]  ;;  %v368_v54 = vld [vmem:[%s1773_s5 + $0x300] sm:$0xff] }
  0x9c   : > { %502 = vmatprep.subr.mxu0 %v441_v4  ;;  %575 = vmatprep.subr.mxu1 %v455_v15  ;;  %v401_v53 = vld [vmem:[%s1773_s5 + $0x408] sm:$0xff]  ;;  %v400_v55 = vld [vmem:[%s1773_s5 + $0x400] sm:$0xff]  ;;  %v367_v57 = vld [vmem:[%s1773_s5 + $0x2f8] sm:$0xff] }
  0x9d   : > { %503 = vmatpush2.msra.mxu0 %v440_v6  ;;  %576 = vmatpush2.msra.mxu1 %v454_v17  ;;  %v1903_v56 = vld [vmem:[#allocation3] sm:$0xff]  ;;  %v366_v58 = vld [vmem:[%s1773_s5 + $0x2f0] sm:$0xff]  ;;  %v395_v59 = vld [vmem:[%s1773_s5 + $0x3d8] sm:$0xff] }
  0x9e   : > { %504 = vmatprep.subr.mxu0 %v435_v8  ;;  %577 = vmatprep.subr.mxu1 %v449_v19  ;;  %v361_v60 = vld [vmem:[%s1773_s5 + $0x2c8] sm:$0xff]  ;;  %v394_v61 = vld [vmem:[%s1773_s5 + $0x3d0] sm:$0xff]  ;;  %v360_v62 = vld [vmem:[%s1773_s5 + $0x2c0] sm:$0xff] }
  0x9f   : > { %505 = vmatpush2.msra.mxu0 %v434_v10  ;;  %528 = vmatprep.mubr.f32.mxu0 %v1866_v21  ;;  %v389_v63 = vld [vmem:[%s1773_s5 + $0x3a8] sm:$0xff]  ;;  %v355_v0 = vld [vmem:[%s1773_s5 + $0x298] sm:$0xff]  ;;  %v388_v1 = vld [vmem:[%s1773_s5 + $0x3a0] sm:$0xff] }
  0xa0   : > { %506 = vmatprep.subr.mxu0 %v429_v12  ;;  %578 = vmatpush2.msra.mxu1 %v448_v23  ;;  %v354_v2 = vld [vmem:[%s1773_s5 + $0x290] sm:$0xff]  ;;  %v1916_v3 = vld [vmem:[#allocation3 + $0x18] sm:$0xff]  ;;  %v349_v4 = vld [vmem:[%s1773_s5 + $0x268] sm:$0xff] }
  0xa1   : > { %507 = vmatpush2.msra.mxu0 %v428_v14  ;;  %579 = vmatprep.subr.mxu1 %v443_v25  ;;  %v383_v5 = vld [vmem:[%s1773_s5 + $0x378] sm:$0xff]  ;;  %v348_v6 = vld [vmem:[%s1773_s5 + $0x260] sm:$0xff]  ;;  %v382_v7 = vld [vmem:[%s1773_s5 + $0x370] sm:$0xff] }
  0xa2   : > { %508 = vmatprep.subr.mxu0 %v423_v16  ;;  %580 = vmatpush2.msra.mxu1 %v442_v27  ;;  %v343_v8 = vld [vmem:[%s1773_s5 + $0x238] sm:$0xff]  ;;  %v1924_v9 = vld [vmem:[#allocation3 + $0x10] sm:$0xff]  ;;  %v377_v11 = vld [vmem:[%s1773_s5 + $0x348] sm:$0xff] }
  0xa3   : > { %509 = vmatpush2.msra.mxu0 %v422_v18  ;;  %581 = vmatprep.subr.mxu1 %v437_v29  ;;  %v342_v10 = vld [vmem:[%s1773_s5 + $0x230] sm:$0xff]  ;;  %v337_v12 = vld [vmem:[%s1773_s5 + $0x208] sm:$0xff]  ;;  %v376_v13 = vld [vmem:[%s1773_s5 + $0x340] sm:$0xff] }
  0xa4   : > { %510 = vmatprep.subr.mxu0 %v417_v20  ;;  %582 = vmatpush2.msra.mxu1 %v436_v31  ;;  %v336_v14 = vld [vmem:[%s1773_s5 + $0x200] sm:$0xff]  ;;  %v371_v15 = vld [vmem:[%s1773_s5 + $0x318] sm:$0xff]  ;;  %v370_v17 = vld [vmem:[%s1773_s5 + $0x310] sm:$0xff] }
  0xa5   : > { %511 = vmatpush2.msra.mxu0 %v416_v22  ;;  %583 = vmatprep.subr.mxu1 %v431_v33  ;;  %v331_v16 = vld [vmem:[%s1773_s5 + $0x1d8] sm:$0xff]  ;;  %v330_v18 = vld [vmem:[%s1773_s5 + $0x1d0] sm:$0xff]  ;;  %v325_v19 = vld [vmem:[%s1773_s5 + $0x1a8] sm:$0xff] }
  0xa6   : > { %512 = vmatprep.subr.mxu0 %v411_v24  ;;  %584 = vmatpush2.msra.mxu1 %v430_v35  ;;  %v324_v20 = vld [vmem:[%s1773_s5 + $0x1a0] sm:$0xff]  ;;  %v319_v22 = vld [vmem:[%s1773_s5 + $0x178] sm:$0xff]  ;;  %v318_v23 = vld [vmem:[%s1773_s5 + $0x170] sm:$0xff] }
  0xa7   : > { %513 = vmatpush2.msra.mxu0 %v410_v26  ;;  %585 = vmatprep.subr.mxu1 %v425_v37  ;;  %v313_v24 = vld [vmem:[%s1773_s5 + $0x148] sm:$0xff]  ;;  %v312_v25 = vld [vmem:[%s1773_s5 + $0x140] sm:$0xff]  ;;  %v307_v26 = vld [vmem:[%s1773_s5 + $0x118] sm:$0xff] }
  0xa8   : > { %514 = vmatprep.subr.mxu0 %v405_v28  ;;  %586 = vmatpush2.msra.mxu1 %v424_v39  ;;  %v306_v27 = vld [vmem:[%s1773_s5 + $0x110] sm:$0xff]  ;;  %v301_v28 = vld [vmem:[%s1773_s5 + $0xe8] sm:$0xff]  ;;  %v300_v29 = vld [vmem:[%s1773_s5 + $0xe0] sm:$0xff] }
  0xa9   : > { %515 = vmatpush2.msra.mxu0 %v404_v30  ;;  %587 = vmatprep.subr.mxu1 %v419_v41  ;;  %v295_v30 = vld [vmem:[%s1773_s5 + $0xb8] sm:$0xff]  ;;  %v289_v31 = vld [vmem:[%s1773_s5 + $0x88] sm:$0xff] }
  0xaa   : > { %516 = vmatprep.subr.mxu0 %v399_v32  ;;  %588 = vmatpush2.msra.mxu1 %v418_v43  ;;  %v288_v32 = vld [vmem:[%s1773_s5 + $0x80] sm:$0xff]  ;;  %v283_v33 = vld [vmem:[%s1773_s5 + $0x58] sm:$0xff]  ;;  %v277_v35 = vld [vmem:[%s1773_s5 + $0x28] sm:$0xff] }
  0xab   : > { %517 = vmatpush2.msra.mxu0 %v398_v34  ;;  %589 = vmatprep.subr.mxu1 %v413_v45  ;;  %v282_v34 = vld [vmem:[%s1773_s5 + $0x50] sm:$0xff]  ;;  %v463_v37 = vld [vmem:[%s1773_s5 + $0x5f8] sm:$0xff]  ;;  %v457_v39 = vld [vmem:[%s1773_s5 + $0x5c8] sm:$0xff] }
  0xac   : > { %518 = vmatprep.subr.mxu0 %v393_v36  ;;  %590 = vmatpush2.msra.mxu1 %v412_v47  ;;  %v276_v36 = vld [vmem:[%s1773_s5 + $0x20] sm:$0xff]  ;;  %v451_v41 = vld [vmem:[%s1773_s5 + $0x598] sm:$0xff]  ;;  %v445_v43 = vld [vmem:[%s1773_s5 + $0x568] sm:$0xff] }
  0xad   : > { %519 = vmatpush2.msra.mxu0 %v392_v38  ;;  %591 = vmatprep.subr.mxu1 %v407_v49  ;;  %v462_v38 = vld [vmem:[%s1773_s5 + $0x5f0] sm:$0xff]  ;;  %v439_v45 = vld [vmem:[%s1773_s5 + $0x538] sm:$0xff]  ;;  %v433_v47 = vld [vmem:[%s1773_s5 + $0x508] sm:$0xff] }
  0xae   : > { %520 = vmatprep.subr.mxu0 %v387_v40  ;;  %592 = vmatpush2.msra.mxu1 %v406_v51  ;;  %v456_v40 = vld [vmem:[%s1773_s5 + $0x5c0] sm:$0xff]  ;;  %v427_v49 = vld [vmem:[%s1773_s5 + $0x4d8] sm:$0xff]  ;;  %v421_v51 = vld [vmem:[%s1773_s5 + $0x4a8] sm:$0xff] }
  0xaf   : > { %521 = vmatpush2.msra.mxu0 %v386_v42  ;;  %593 = vmatprep.subr.mxu1 %v401_v53  ;;  %v450_v42 = vld [vmem:[%s1773_s5 + $0x590] sm:$0xff]  ;;  %v415_v53 = vld [vmem:[%s1773_s5 + $0x478] sm:$0xff] }
  0xb0   : > { %522 = vmatprep.subr.mxu0 %v381_v44  ;;  %594 = vmatpush2.msra.mxu1 %v400_v55  ;;  %v444_v44 = vld [vmem:[%s1773_s5 + $0x560] sm:$0xff]  ;;  %v409_v55 = vld [vmem:[%s1773_s5 + $0x448] sm:$0xff] }
  0xb1   : > { %523 = vmatpush2.msra.mxu0 %v380_v46  ;;  %595 = vmatprep.subr.mxu1 %v395_v59  ;;  %v438_v46 = vld [vmem:[%s1773_s5 + $0x530] sm:$0xff] }
  0xb2   : > { %524 = vmatprep.subr.mxu0 %v375_v48  ;;  %596 = vmatpush2.msra.mxu1 %v394_v61  ;;  %v432_v48 = vld [vmem:[%s1773_s5 + $0x500] sm:$0xff]  ;;  %v402_v59 = vld [vmem:[%s1773_s5 + $0x410] sm:$0xff] }
  0xb3   : > { %525 = vmatpush2.msra.mxu0 %v374_v50  ;;  %597 = vmatprep.subr.mxu1 %v389_v63  ;;  %v426_v50 = vld [vmem:[%s1773_s5 + $0x4d0] sm:$0xff]  ;;  %v396_v61 = vld [vmem:[%s1773_s5 + $0x3e0] sm:$0xff] }
  0xb4   : > { %526 = vmatprep.subr.mxu0 %v369_v52  ;;  %598 = vmatpush2.msra.mxu1 %v388_v1  ;;  %v420_v52 = vld [vmem:[%s1773_s5 + $0x4a0] sm:$0xff]  ;;  %v390_v63 = vld [vmem:[%s1773_s5 + $0x3b0] sm:$0xff] }
  0xb5   : > { %527 = vmatpush2.msra.mxu0 %v368_v54  ;;  %599 = vmatprep.subr.mxu1 %v383_v5  ;;  %v414_v54 = vld [vmem:[%s1773_s5 + $0x470] sm:$0xff]  ;;  %v384_v1 = vld [vmem:[%s1773_s5 + $0x380] sm:$0xff]  ;;  %v373_v5 = vld [vmem:[%s1773_s5 + $0x328] sm:$0xff] }
  0xb6   : > { %529 = vmatmul.mubr.f32.vlgmr.msra.gmra.mxu0 %v1903_v56  ;;  %618 = vmatprep.subr.mxu0 %v367_v57  ;;  %v408_v57 = vld [vmem:[%s1773_s5 + $0x440] sm:$0xff] }
  0xb7   : > { %619 = vmatpush1.msra.mxu0 %v366_v58  ;;  %534 = vmatprep.mubr.f32.mxu0 %v1916_v3  ;;  %v403_v58 = vld [vmem:[%s1773_s5 + $0x418] sm:$0xff] }
  0xb8   : > { %620 = vmatprep.subr.mxu0 %v361_v60  ;;  %600 = vmatpush2.msra.mxu1 %v382_v7  ;;  %v397_v60 = vld [vmem:[%s1773_s5 + $0x3e8] sm:$0xff]  ;;  %v778_v7 = vld [vmem:[%s1779_s11 + $0xf8] sm:$0xff] }
  0xb9   : > { %621 = vmatpush1.msra.mxu0 %v360_v62  ;;  %601 = vmatprep.subr.mxu1 %v377_v11  ;;  %v391_v62 = vld [vmem:[%s1773_s5 + $0x3b8] sm:$0xff]  ;;  %v775_v11 = vld [vmem:[%s1779_s11 + $0xe0] sm:$0xff] }
  0xba   : > { %622 = vmatprep.subr.mxu0 %v355_v0  ;;  %535 = vmatmul.mubr.f32.gmra.mxu0 %v1924_v9  ;;  %v385_v0 = vld [vmem:[%s1773_s5 + $0x388] sm:$0xff] }
  0xbb   : > { %623 = vmatpush1.msra.mxu0 %v354_v2  ;;  %602 = vmatpush2.msra.mxu1 %v376_v13  ;;  %v379_v2 = vld [vmem:[%s1773_s5 + $0x358] sm:$0xff]  ;;  %v771_v13 = vld [vmem:[%s1779_s11 + $0xc0] sm:$0xff] }
  0xbc   : > { %624 = vmatprep.subr.mxu0 %v349_v4  ;;  %603 = vmatprep.subr.mxu1 %v371_v15  ;;  %v378_v4 = vld [vmem:[%s1773_s5 + $0x350] sm:$0xff]  ;;  %v768_v15 = vld [vmem:[%s1779_s11 + $0xa8] sm:$0xff] }
  0xbd   : > { %625 = vmatpush1.msra.mxu0 %v348_v6  ;;  %604 = vmatpush2.msra.mxu1 %v370_v17  ;;  %v372_v6 = vld [vmem:[%s1773_s5 + $0x320] sm:$0xff]  ;;  %v766_v17 = vld [vmem:[%s1779_s11 + $0x98] sm:$0xff] }
  0xbe   : > { %626 = vmatprep.subr.mxu0 %v343_v8  ;;  %605 = vmatprep.mubr.f32.mxu1 %v1866_v21  ;;  %v777_v8 = vld [vmem:[%s1779_s11 + $0xf0] sm:$0xff] }
  0xbf   : > { %627 = vmatpush1.msra.mxu0 %v342_v10  ;;  %606 = vmatmul.mubr.f32.vlgmr.msra.gmra.mxu1 %v1903_v56  ;;  %v776_v10 = vld [vmem:[%s1779_s11 + $0xe8] sm:$0xff] }
  0xc0   : > { %628 = vmatprep.subr.mxu0 %v337_v12  ;;  %611 = vmatprep.mubr.f32.mxu1 %v1916_v3  ;;  %v774_v12 = vld [vmem:[%s1779_s11 + $0xd8] sm:$0xff] }
  0xc1   : > { %629 = vmatpush1.msra.mxu0 %v336_v14  ;;  %682 = vmatprep.mubr.f32.mxu0 %v1866_v21  ;;  %v294_v21 = vld [vmem:[%s1773_s5 + $0xb0] sm:$0xff] }
  0xc2   : > { %630 = vmatprep.subr.mxu0 %v331_v16  ;;  %843 = vmatprep.subr.mxu1 %v778_v7  ;;  %v769_v14 = vld [vmem:[%s1779_s11 + $0xb0] sm:$0xff]  ;;  %v767_v16 = vld [vmem:[%s1779_s11 + $0xa0] sm:$0xff] }
  0xc3   : > { %631 = vmatpush1.msra.mxu0 %v330_v18  ;;  %612 = vmatmul.mubr.f32.gmra.mxu1 %v1924_v9  ;;  %v765_v18 = vld [vmem:[%s1779_s11 + $0x90] sm:$0xff] }
  0xc4   : > { %632 = vmatprep.subr.mxu0 %v325_v19  ;;  %844 = vmatpush1.msra.mxu1 %v777_v8  ;;  %v764_v19 = vld [vmem:[%s1779_s11 + $0x88] sm:$0xff]  ;;  %v793_v7 = vld [vmem:[%s1779_s11 + $0x170] sm:$0xff]  ;;  %v2105_v8 = vld [vmem:[%s1779_s11 + $0x280] sm:$0xff] }
  0xc5   : > { %633 = vmatpush1.msra.mxu0 %v324_v20  ;;  %845 = vmatprep.subr.mxu1 %v776_v10  ;;  %v763_v20 = vld [vmem:[%s1779_s11 + $0x80] sm:$0xff]  ;;  %v792_v10 = vld [vmem:[%s1779_s11 + $0x168] sm:$0xff] }
  0xc6   : > { %634 = vmatprep.subr.mxu0 %v319_v22  ;;  %846 = vmatpush1.msra.mxu1 %v775_v11  ;;  %v762_v22 = vld [vmem:[%s1779_s11 + $0x78] sm:$0xff] }
  0xc7   : > { %635 = vmatpush1.msra.mxu0 %v318_v23  ;;  %847 = vmatprep.subr.mxu1 %v774_v12  ;;  %v761_v23 = vld [vmem:[%s1779_s11 + $0x70] sm:$0xff]  ;;  %v2110_v11 = vld [vmem:[%s1779_s11 + $0x278] sm:$0xff]  ;;  %v791_v12 = vld [vmem:[%s1779_s11 + $0x160] sm:$0xff] }
  0xc8   : > { %636 = vmatprep.subr.mxu0 %v313_v24  ;;  %v760_v24 = vld [vmem:[%s1779_s11 + $0x68] sm:$0xff] }
  0xc9   : > { %637 = vmatpush1.msra.mxu0 %v312_v25  ;;  %v759_v25 = vld [vmem:[%s1779_s11 + $0x60] sm:$0xff] }
  0xca   : > { %638 = vmatprep.subr.mxu0 %v307_v26  ;;  %v758_v26 = vld [vmem:[%s1779_s11 + $0x58] sm:$0xff] }
  0xcb   : > { %639 = vmatpush1.msra.mxu0 %v306_v27  ;;  %v757_v27 = vld [vmem:[%s1779_s11 + $0x50] sm:$0xff] }
  0xcc   : > { %640 = vmatprep.subr.mxu0 %v301_v28  ;;  %v756_v28 = vld [vmem:[%s1779_s11 + $0x48] sm:$0xff] }
  0xcd   : > { %641 = vmatpush1.msra.mxu0 %v300_v29  ;;  %v755_v29 = vld [vmem:[%s1779_s11 + $0x40] sm:$0xff] }
  0xce   : > { %642 = vmatprep.subr.mxu0 %v295_v30  ;;  %v754_v30 = vld [vmem:[%s1779_s11 + $0x38] sm:$0xff] }
  0xcf   : > { %643 = vmatpush1.msra.mxu0 %v294_v21  ;;  %v753_v21 = vld [vmem:[%s1779_s11 + $0x30] sm:$0xff] }
  0xd0   : > { %644 = vmatprep.subr.mxu0 %v289_v31  ;;  %v752_v31 = vld [vmem:[%s1779_s11 + $0x28] sm:$0xff] }
  0xd1   : > { %645 = vmatpush1.msra.mxu0 %v288_v32  ;;  %v751_v32 = vld [vmem:[%s1779_s11 + $0x20] sm:$0xff] }
  0xd2   : > { %646 = vmatprep.subr.mxu0 %v283_v33  ;;  %v750_v33 = vld [vmem:[%s1779_s11 + $0x18] sm:$0xff] }
  0xd3   : > { %647 = vmatpush1.msra.mxu0 %v282_v34  ;;  %v749_v34 = vld [vmem:[%s1779_s11 + $0x10] sm:$0xff] }
  0xd4   : > { %648 = vmatprep.subr.mxu0 %v277_v35  ;;  %v748_v35 = vld [vmem:[%s1779_s11 + $0x8] sm:$0xff] }
  0xd5   : > { %649 = vmatpush1.msra.mxu0 %v276_v36  ;;  %v747_v36 = vld [vmem:[%s1779_s11] sm:$0xff] }
  0xd6   : > { %650 = vmatprep.subr.mxu0 %v463_v37  ;;  %v810_v37 = vld [vmem:[%s1779_s11 + $0x1f8] sm:$0xff] }
  0xd7   : > { %651 = vmatpush2.msra.mxu0 %v462_v38  ;;  %v809_v38 = vld [vmem:[%s1779_s11 + $0x1f0] sm:$0xff] }
  0xd8   : > { %652 = vmatprep.subr.mxu0 %v457_v39  ;;  %v808_v39 = vld [vmem:[%s1779_s11 + $0x1e8] sm:$0xff] }
  0xd9   : > { %653 = vmatpush2.msra.mxu0 %v456_v40  ;;  %v2030_v40 = vld [vmem:[%s1779_s11 + $0x2f8] sm:$0xff] }
  0xda   : > { %654 = vmatprep.subr.mxu0 %v451_v41  ;;  %v807_v41 = vld [vmem:[%s1779_s11 + $0x1e0] sm:$0xff] }
  0xdb   : > { %655 = vmatpush2.msra.mxu0 %v450_v42  ;;  %v2035_v42 = vld [vmem:[%s1779_s11 + $0x2f0] sm:$0xff] }
  0xdc   : > { %656 = vmatprep.subr.mxu0 %v445_v43  ;;  %v806_v43 = vld [vmem:[%s1779_s11 + $0x1d8] sm:$0xff] }
  0xdd   : > { %657 = vmatpush2.msra.mxu0 %v444_v44  ;;  %v2040_v44 = vld [vmem:[%s1779_s11 + $0x2e8] sm:$0xff] }
  0xde   : > { %658 = vmatprep.subr.mxu0 %v439_v45  ;;  %v805_v45 = vld [vmem:[%s1779_s11 + $0x1d0] sm:$0xff] }
  0xdf   : > { %659 = vmatpush2.msra.mxu0 %v438_v46  ;;  %v2045_v46 = vld [vmem:[%s1779_s11 + $0x2e0] sm:$0xff] }
  0xe0   : > { %660 = vmatprep.subr.mxu0 %v433_v47  ;;  %v804_v47 = vld [vmem:[%s1779_s11 + $0x1c8] sm:$0xff] }
  0xe1   : > { %661 = vmatpush2.msra.mxu0 %v432_v48  ;;  %v2050_v48 = vld [vmem:[%s1779_s11 + $0x2d8] sm:$0xff] }
  0xe2   : > { %662 = vmatprep.subr.mxu0 %v427_v49  ;;  %v803_v49 = vld [vmem:[%s1779_s11 + $0x1c0] sm:$0xff] }
  0xe3   : > { %663 = vmatpush2.msra.mxu0 %v426_v50  ;;  %v2055_v50 = vld [vmem:[%s1779_s11 + $0x2d0] sm:$0xff] }
  0xe4   : > { %664 = vmatprep.subr.mxu0 %v421_v51  ;;  %v802_v51 = vld [vmem:[%s1779_s11 + $0x1b8] sm:$0xff] }
  0xe5   : > { %665 = vmatpush2.msra.mxu0 %v420_v52  ;;  %v2060_v52 = vld [vmem:[%s1779_s11 + $0x2c8] sm:$0xff] }
  0xe6   : > { %666 = vmatprep.subr.mxu0 %v415_v53  ;;  %v801_v53 = vld [vmem:[%s1779_s11 + $0x1b0] sm:$0xff] }
  0xe7   : > { %667 = vmatpush2.msra.mxu0 %v414_v54  ;;  %v2065_v54 = vld [vmem:[%s1779_s11 + $0x2c0] sm:$0xff] }
  0xe8   : > { %668 = vmatprep.subr.mxu0 %v409_v55  ;;  %v800_v55 = vld [vmem:[%s1779_s11 + $0x1a8] sm:$0xff] }
  0xe9   : > { %669 = vmatpush2.msra.mxu0 %v408_v57  ;;  %v2070_v57 = vld [vmem:[%s1779_s11 + $0x2b8] sm:$0xff] }
  0xea   : > { %670 = vmatprep.subr.mxu0 %v403_v58  ;;  %v799_v58 = vld [vmem:[%s1779_s11 + $0x1a0] sm:$0xff] }
  0xeb   : > { %671 = vmatpush2.msra.mxu0 %v402_v59  ;;  %v2075_v59 = vld [vmem:[%s1779_s11 + $0x2b0] sm:$0xff] }
  0xec   : > { %672 = vmatprep.subr.mxu0 %v397_v60  ;;  %v798_v60 = vld [vmem:[%s1779_s11 + $0x198] sm:$0xff] }
  0xed   : > { %673 = vmatpush2.msra.mxu0 %v396_v61  ;;  %v2080_v61 = vld [vmem:[%s1779_s11 + $0x2a8] sm:$0xff] }
  0xee   : > { %674 = vmatprep.subr.mxu0 %v391_v62  ;;  %v797_v62 = vld [vmem:[%s1779_s11 + $0x190] sm:$0xff] }
  0xef   : > { %675 = vmatpush2.msra.mxu0 %v390_v63  ;;  %v2085_v63 = vld [vmem:[%s1779_s11 + $0x2a0] sm:$0xff] }
  0xf0   : > { %676 = vmatprep.subr.mxu0 %v385_v0  ;;  %v796_v0 = vld [vmem:[%s1779_s11 + $0x188] sm:$0xff] }
  0xf1   : > { %677 = vmatpush2.msra.mxu0 %v384_v1  ;;  %v2090_v1 = vld [vmem:[%s1779_s11 + $0x298] sm:$0xff] }
  0xf2   : > { %678 = vmatprep.subr.mxu0 %v379_v2  ;;  %v795_v2 = vld [vmem:[%s1779_s11 + $0x180] sm:$0xff] }
  0xf3   : > { %679 = vmatpush2.msra.mxu0 %v378_v4  ;;  %v2095_v4 = vld [vmem:[%s1779_s11 + $0x290] sm:$0xff] }
  0xf4   : > { %680 = vmatprep.subr.mxu0 %v373_v5  ;;  %v794_v5 = vld [vmem:[%s1779_s11 + $0x178] sm:$0xff] }
  0xf5   : > { %681 = vmatpush2.msra.mxu0 %v372_v6  ;;  %v2100_v6 = vld [vmem:[%s1779_s11 + $0x288] sm:$0xff] }
  0xf6   : > { %683 = vmatmul.mubr.f32.vlgmr.msra.gmra.mxu0 %v1903_v56  ;;  %v773_v56 = vld [vmem:[%s1779_s11 + $0xd0] sm:$0xff]  ;;  %920 = vmatprep.subr.mxu0 %v2030_v40 }
  0xf7   : > { %688 = vmatprep.mubr.f32.mxu0 %v1916_v3  ;;  %848 = vmatpush1.msra.mxu1 %v773_v56  ;;  %v772_v3 = vld [vmem:[%s1779_s11 + $0xc8] sm:$0xff]  ;;  %v2115_v56 = vld [vmem:[%s1779_s11 + $0x270] sm:$0xff] }
  0xf8   : > { %849 = vmatprep.subr.mxu1 %v772_v3  ;;  %921 = vmatpush1.msra.mxu0 %v2035_v42  ;;  %v790_v3 = vld [vmem:[%s1779_s11 + $0x158] sm:$0xff] }
  0xf9   : > { %850 = vmatpush1.msra.mxu1 %v771_v13  ;;  %922 = vmatprep.subr.mxu0 %v2040_v44  ;;  %v2119_v13 = vld [vmem:[%s1779_s11 + $0x268] sm:$0xff] }
  0xfa   : > { %689 = vmatmul.mubr.f32.gmra.mxu0 %v1924_v9  ;;  %v770_v9 = vld [vmem:[%s1779_s11 + $0xb8] sm:$0xff] }
  0xfb   : > { %851 = vmatprep.subr.mxu1 %v770_v9  ;;  %923 = vmatpush1.msra.mxu0 %v2045_v46  ;;  %v789_v9 = vld [vmem:[%s1779_s11 + $0x150] sm:$0xff] }
  0xfc   : > { %852 = vmatpush1.msra.mxu1 %v769_v14  ;;  %924 = vmatprep.subr.mxu0 %v2050_v48  ;;  %v2124_v14 = vld [vmem:[%s1779_s11 + $0x260] sm:$0xff] }
  0xfd   : > { %853 = vmatprep.subr.mxu1 %v768_v15  ;;  %925 = vmatpush1.msra.mxu0 %v2055_v50  ;;  %v788_v15 = vld [vmem:[%s1779_s11 + $0x148] sm:$0xff] }
  0xfe   : > { %854 = vmatpush1.msra.mxu1 %v767_v16  ;;  %926 = vmatprep.subr.mxu0 %v2060_v52  ;;  %v2129_v16 = vld [vmem:[%s1779_s11 + $0x258] sm:$0xff] }
  0xff   : > { %855 = vmatprep.subr.mxu1 %v766_v17  ;;  %927 = vmatpush1.msra.mxu0 %v2065_v54  ;;  %v787_v17 = vld [vmem:[%s1779_s11 + $0x140] sm:$0xff] }
 0x100   : > { %856 = vmatpush1.msra.mxu1 %v765_v18  ;;  %928 = vmatprep.subr.mxu0 %v2070_v57  ;;  %v2133_v18 = vld [vmem:[%s1779_s11 + $0x250] sm:$0xff] }
 0x101   : > { %857 = vmatprep.subr.mxu1 %v764_v19  ;;  %929 = vmatpush1.msra.mxu0 %v2075_v59  ;;  %v786_v19 = vld [vmem:[%s1779_s11 + $0x138] sm:$0xff] }
 0x102   : > { %858 = vmatpush1.msra.mxu1 %v763_v20  ;;  %930 = vmatprep.subr.mxu0 %v2080_v61  ;;  %v2138_v20 = vld [vmem:[%s1779_s11 + $0x248] sm:$0xff] }
 0x103   : > { %859 = vmatprep.subr.mxu1 %v762_v22  ;;  %931 = vmatpush1.msra.mxu0 %v2085_v63  ;;  %v785_v22 = vld [vmem:[%s1779_s11 + $0x130] sm:$0xff] }
 0x104   : > { %860 = vmatpush1.msra.mxu1 %v761_v23  ;;  %932 = vmatprep.subr.mxu0 %v2090_v1  ;;  %v2143_v23 = vld [vmem:[%s1779_s11 + $0x240] sm:$0xff] }
 0x105   : > { %861 = vmatprep.subr.mxu1 %v760_v24  ;;  %933 = vmatpush1.msra.mxu0 %v2095_v4  ;;  %v784_v24 = vld [vmem:[%s1779_s11 + $0x128] sm:$0xff] }
 0x106   : > { %862 = vmatpush1.msra.mxu1 %v759_v25  ;;  %934 = vmatprep.subr.mxu0 %v2100_v6  ;;  %v2148_v25 = vld [vmem:[%s1779_s11 + $0x238] sm:$0xff] }
 0x107   : > { %863 = vmatprep.subr.mxu1 %v758_v26  ;;  %935 = vmatpush1.msra.mxu0 %v2105_v8  ;;  %v783_v26 = vld [vmem:[%s1779_s11 + $0x120] sm:$0xff] }
 0x108   : > { %864 = vmatpush1.msra.mxu1 %v757_v27  ;;  %936 = vmatprep.subr.mxu0 %v2110_v11  ;;  %v2153_v27 = vld [vmem:[%s1779_s11 + $0x230] sm:$0xff] }
 0x109   : > { %865 = vmatprep.subr.mxu1 %v756_v28  ;;  %937 = vmatpush1.msra.mxu0 %v2115_v56  ;;  %v782_v28 = vld [vmem:[%s1779_s11 + $0x118] sm:$0xff] }
 0x10a   : > { %866 = vmatpush1.msra.mxu1 %v755_v29  ;;  %938 = vmatprep.subr.mxu0 %v2119_v13  ;;  %v2158_v29 = vld [vmem:[%s1779_s11 + $0x228] sm:$0xff] }
 0x10b   : > { %867 = vmatprep.subr.mxu1 %v754_v30  ;;  %939 = vmatpush1.msra.mxu0 %v2124_v14  ;;  %v781_v30 = vld [vmem:[%s1779_s11 + $0x110] sm:$0xff] }
 0x10c   : > { %868 = vmatpush1.msra.mxu1 %v753_v21  ;;  %940 = vmatprep.subr.mxu0 %v2129_v16  ;;  %v2165_v21 = vld [vmem:[%s1779_s11 + $0x220] sm:$0xff] }
 0x10d   : > { %869 = vmatprep.subr.mxu1 %v752_v31  ;;  %941 = vmatpush1.msra.mxu0 %v2133_v18  ;;  %v780_v31 = vld [vmem:[%s1779_s11 + $0x108] sm:$0xff] }
 0x10e   : > { %870 = vmatpush1.msra.mxu1 %v751_v32  ;;  %942 = vmatprep.subr.mxu0 %v2138_v20  ;;  %v2170_v32 = vld [vmem:[%s1779_s11 + $0x218] sm:$0xff] }
 0x10f   : > { %871 = vmatprep.subr.mxu1 %v750_v33  ;;  %943 = vmatpush1.msra.mxu0 %v2143_v23  ;;  %v779_v33 = vld [vmem:[%s1779_s11 + $0x100] sm:$0xff] }
 0x110   : > { %872 = vmatpush1.msra.mxu1 %v749_v34  ;;  %944 = vmatprep.subr.mxu0 %v2148_v25  ;;  %v2175_v34 = vld [vmem:[%s1779_s11 + $0x210] sm:$0xff] }
 0x111   : > { %873 = vmatprep.subr.mxu1 %v748_v35  ;;  %945 = vmatpush1.msra.mxu0 %v2153_v27  ;;  %v2179_v35 = vld [vmem:[%s1779_s11 + $0x208] sm:$0xff] }
 0x112   : > { %874 = vmatpush1.msra.mxu1 %v747_v36  ;;  %946 = vmatprep.subr.mxu0 %v2158_v29  ;;  %v2184_v36 = vld [vmem:[%s1779_s11 + $0x200] sm:$0xff] }
 0x113   : > { %875 = vmatprep.subr.mxu1 %v810_v37  ;;  %947 = vmatpush1.msra.mxu0 %v2165_v21  ;;  %v1557_v37 = vmov 0.0  }
 0x114   : > { %876 = vmatpush2.msra.mxu1 %v809_v38  ;;  %948 = vmatprep.subr.mxu0 %v2170_v32 }
 0x115   : > { %877 = vmatprep.subr.mxu1 %v808_v39  ;;  %949 = vmatpush1.msra.mxu0 %v2175_v34 }
 0x116   : > { %878 = vmatpush2.msra.mxu1 %v807_v41  ;;  %950 = vmatprep.subr.mxu0 %v2179_v35 }
 0x117   : > { %879 = vmatprep.subr.mxu1 %v806_v43  ;;  %951 = vmatpush1.msra.mxu0 %v2184_v36 }
 0x118   : > { %880 = vmatpush2.msra.mxu1 %v805_v45  ;;  %984 = vmatprep.mubr.f32.mxu0 %v1557_v37 }
 0x119   : > { %881 = vmatprep.subr.mxu1 %v804_v47 }
 0x11a   : > { %882 = vmatpush2.msra.mxu1 %v803_v49 }
 0x11b   : > { %883 = vmatprep.subr.mxu1 %v802_v51 }
 0x11c   : > { %884 = vmatpush2.msra.mxu1 %v801_v53 }
 0x11d   : > { %885 = vmatprep.subr.mxu1 %v800_v55 }
 0x11e   : > { %886 = vmatpush2.msra.mxu1 %v799_v58 }
 0x11f   : > { %887 = vmatprep.subr.mxu1 %v798_v60 }
 0x120   : > { %888 = vmatpush2.msra.mxu1 %v797_v62 }
 0x121   : > { %889 = vmatprep.subr.mxu1 %v796_v0 }
 0x122   : > { %890 = vmatpush2.msra.mxu1 %v795_v2 }
 0x123   : > { %891 = vmatprep.subr.mxu1 %v794_v5 }
 0x124   : > { %892 = vmatpush2.msra.mxu1 %v793_v7 }
 0x125   : > { %893 = vmatprep.subr.mxu1 %v792_v10 }
 0x126   : > { %894 = vmatpush2.msra.mxu1 %v791_v12 }
 0x127   : > { %895 = vmatprep.subr.mxu1 %v790_v3 }
 0x128   : > { %896 = vmatpush2.msra.mxu1 %v789_v9 }
 0x129   : > { %897 = vmatprep.subr.mxu1 %v788_v15 }
 0x12a   : > { %898 = vmatpush2.msra.mxu1 %v787_v17 }
 0x12b   : > { %899 = vmatprep.subr.mxu1 %v786_v19 }
 0x12c   : > { %900 = vmatpush2.msra.mxu1 %v785_v22 }
 0x12d   : > { %901 = vmatprep.subr.mxu1 %v784_v24 }
 0x12e   : > { %902 = vmatpush2.msra.mxu1 %v783_v26 }
 0x12f   : > { %903 = vmatprep.subr.mxu1 %v782_v28 }
 0x130   : > { %904 = vmatpush2.msra.mxu1 %v781_v30 }
 0x131   : > { %905 = vmatprep.subr.mxu1 %v780_v31 }
 0x132   : > { %906 = vmatpush2.msra.mxu1 %v779_v33 }
 0x133   : > { %1159 = vmatprep.subr.mxu1 %v2030_v40 }
 0x176   : > { %v530_v38 = vpop.f32.mrf.mxu0 }
 0x177   : > { %v1139_v43 = vmul.f32 -1.442695, %v530_v38 }
 0x178   : > { %v532_v39 = vpop.f32.mrf.mxu0 }
 0x179   : > { %v1140_v47 = vmul.f32 -1.442695, %v532_v39  ;;  %1314 = vpow2.f32 %v1139_v43 }
 0x17a   : > { %v536_v41 = vpop.f32.mrf.mxu0 }
 0x17b   : > { %v1142_v53 = vmul.f32 -1.442695, %v536_v41  ;;  %1316 = vpow2.f32 %v1140_v47 }
 0x17c   : > { %v538_v49 = vpop.f32.mrf.mxu0 }
 0x17d   : > { %v1143_v40 = vmul.f32 -1.442695, %v538_v49 }
 0x17f   : > { %v607_v45 = vpop.f32.mrf.mxu1 }
 0x180   : > { %v1141_v51 = vmul.f32 -1.442695, %v607_v45 }
 0x181   : > { %v609_v3 = vpop.f32.mrf.mxu1 }
 0x182   : > { %1318 = vpow2.f32 %v1141_v51 }
 0x183   : > { %1320 = vpow2.f32 %v1142_v53  ;;  %v613_v9 = vpop.f32.mrf.mxu1 }
 0x184   : > { %1322 = vpow2.f32 %v1143_v40  ;;  %v1144_v15 = vmul.f32 -1.442695, %v613_v9 }
 0x186   : > { %v1315_v55 = vpop.eup %1314 }
 0x187   : > { %v713_v62 = vadd.f32 1.0, %v1315_v55  ;;  %v615_v55 = vpop.f32.mrf.mxu1 }
 0x188   : > { %v1317_v58 = vpop.eup %1316 }
 0x189   : > { %v714_v2 = vadd.f32 1.0, %v1317_v58  ;;  %1324 = vrcp.f32 %v713_v62 }
 0x18b   : > { %1326 = vrcp.f32 %v714_v2 }
 0x18f   : > { %v1319_v60 = vpop.eup %1318 }
 0x190   : > { %v1321_v0 = vpop.eup %1320  ;;  %v715_v7 = vadd.f32 1.0, %v1319_v60 }
 0x191   : > { %v1323_v5 = vpop.eup %1322  ;;  %v716_v10 = vadd.f32 1.0, %v1321_v0 }
 0x192   : > { %v717_v12 = vadd.f32 1.0, %v1323_v5  ;;  %1328 = vrcp.f32 %v715_v7 }
 0x193   : > { %1330 = vrcp.f32 %v716_v10 }
 0x194   : > { %1332 = vrcp.f32 %v717_v12 }
 0x195   : > { %1334 = vpow2.f32 %v1144_v15 }
 0x196   : > { %v1325_v17 = vpop.eup %1324 }
 0x197   : > { %v731_v24 = vmul.f32 %v1325_v17, %v530_v38 }
 0x198   : > { %v1327_v19 = vpop.eup %1326 }
 0x199   : > { %v732_v28 = vmul.f32 %v1327_v19, %v532_v39  ;;  %v737_v51 = vmul.f32 %v731_v24, %v609_v3 }
 0x19f   : > { %v1329_v22 = vpop.eup %1328 }
 0x1a0   : > { %v1331_v26 = vpop.eup %1330  ;;  %v733_v33 = vmul.f32 %v1329_v22, %v607_v45 }
 0x1a1   : > { %v1333_v30 = vpop.eup %1332  ;;  %v734_v47 = vmul.f32 %v1331_v26, %v536_v41 }
 0x1a2   : > { %v735_v40 = vmul.f32 %v1333_v30, %v538_v49  ;;  %v1335_v39 = vpop.eup %1334 }
 0x1a3   : > { %v740_v38 = vmul.f32 %v734_v47, %v615_v55 }
 0x1b6   : > { %v684_v31 = vpop.f32.mrf.mxu0 }
 0x1b7   : > { %v738_v43 = vmul.f32 %v732_v28, %v684_v31 }
 0x1b8   : > { %v686_v53 = vpop.f32.mrf.mxu0 }
 0x1b9   : > { %v739_v58 = vmul.f32 %v733_v33, %v686_v53  ;;  %907 = vmatprep.mubr.f32.mxu1 %v738_v43 }
 0x1ba   : > { %v690_v60 = vpop.f32.mrf.mxu0  ;;  %908 = vmatmul.mubr.f32.vlgmr.msra.gmra.mxu1 %v737_v51 }
 0x1bb   : > { %v741_v62 = vmul.f32 %v735_v40, %v690_v60  ;;  %1175 = vmatpush1.msra.mxu1 %v2035_v42  ;;  %985 = vmatmul.mubr.f32.vlgmr.msra.gmra.mxu0 %v739_v58  ;;  %v718_v42 = vadd.f32 1.0, %v1335_v39 }
 0x1bc   : > { %1160 = vmatprep.subr.mxu1 %v2040_v44 }
 0x1bd   : > { %1176 = vmatpush1.msra.mxu1 %v2045_v46  ;;  %913 = vmatprep.mubr.f32.mxu1 %v741_v62  ;;  %1336 = vrcp.f32 %v718_v42  ;;  %v692_v46 = vpop.f32.mrf.mxu0 }
 0x1be   : > { %1161 = vmatprep.subr.mxu1 %v2050_v48  ;;  %914 = vmatmul.mubr.f32.gmra.mxu1 %v740_v38 }
 0x1bf   : > { %1177 = vmatpush1.msra.mxu1 %v2055_v50  ;;  %990 = vmatprep.mubr.f32.mxu1 %v1557_v37 }
 0x1c0   : > { %1162 = vmatprep.subr.mxu1 %v2060_v52 }
 0x1c1   : > { %1178 = vmatpush1.msra.mxu1 %v2065_v54  ;;  %v743_v54 = vld [vmem:[#allocation2 + $0x10] sm:$0xff] }
 0x1c2   : > { %1163 = vmatprep.subr.mxu1 %v2070_v57 }
 0x1c3   : > { %1179 = vmatpush1.msra.mxu1 %v2075_v59 }
 0x1c4   : > { %1164 = vmatprep.subr.mxu1 %v2080_v61 }
 0x1c5   : > { %1180 = vmatpush1.msra.mxu1 %v2085_v63  ;;  %v744_v63 = vld [vmem:[#allocation2] sm:$0xff] }
 0x1c6   : > { %1165 = vmatprep.subr.mxu1 %v2090_v1 }
 0x1c7   : > { %1181 = vmatpush1.msra.mxu1 %v2095_v4 }
 0x1c8   : > { %1166 = vmatprep.subr.mxu1 %v2100_v6 }
 0x1c9   : > { %1182 = vmatpush1.msra.mxu1 %v2105_v8 }
 0x1ca   : > { %1167 = vmatprep.subr.mxu1 %v2110_v11  ;;  %v1337_v44 = vpop.eup %1336 }
 0x1cb   : > { %1183 = vmatpush1.msra.mxu1 %v2115_v56  ;;  %v736_v48 = vmul.f32 %v1337_v44, %v613_v9 }
 0x1cc   : > { %1168 = vmatprep.subr.mxu1 %v2119_v13  ;;  %v745_v13 = vld [vmem:[#allocation2 + $0x18] sm:$0xff] }
 0x1cd   : > { %1184 = vmatpush1.msra.mxu1 %v2124_v14  ;;  %v742_v50 = vmul.f32 %v736_v48, %v692_v46 }
 0x1ce   : > { %1169 = vmatprep.subr.mxu1 %v2129_v16 }
 0x1cf   : > { %1185 = vmatpush1.msra.mxu1 %v2133_v18  ;;  %v746_v18 = vld [vmem:[#allocation2 + $0x8] sm:$0xff] }
 0x1d0   : > { %1170 = vmatprep.subr.mxu1 %v2138_v20 }
 0x1d1   : > { %1186 = vmatpush1.msra.mxu1 %v2143_v23 }
 0x1d2   : > { %1171 = vmatprep.subr.mxu1 %v2148_v25 }
 0x1d3   : > { %1187 = vmatpush1.msra.mxu1 %v2153_v27 }
 0x1d4   : > { %1172 = vmatprep.subr.mxu1 %v2158_v29 }
 0x1d5   : > { %1188 = vmatpush1.msra.mxu1 %v2165_v21 }
 0x1d6   : > { %1173 = vmatprep.subr.mxu1 %v2170_v32 }
 0x1d7   : > { %1189 = vmatpush1.msra.mxu1 %v2175_v34 }
 0x1d8   : > { %1174 = vmatprep.subr.mxu1 %v2179_v35 }
 0x1d9   : > { %1190 = vmatpush1.msra.mxu1 %v2184_v36 }
 0x1da   : > { %991 = vmatmul.mubr.f32.vlgmr.msra.gmra.mxu1 %v742_v50 }
 0x27a   : > { %v909_v52 = vpop.f32.mrf.mxu1 }
 0x27b   : > { %v986_v57 = vpop.f32.mrf.mxu0 }
 0x27c   : > { %v987_v59 = vadd.f32 %v986_v57, %v909_v52  ;;  %v911_v61 = vpop.f32.mrf.mxu1 }
 0x27d   : > { %v988_v1 = vpop.f32.mrf.mxu0 }
 0x27e   : > { %v997_v4 = vadd.f32 %v987_v59, %v743_v54  ;;  %v989_v6 = vadd.f32 %v988_v1, %v911_v61  ;;  %v915_v11 = vpop.f32.mrf.mxu1 }
 0x280   : > { %1001 = vst [vmem:[#allocation2 + $0x10] sm:$0xff] %v997_v4  ;;  %v998_v8 = vadd.f32 %v989_v6, %v744_v63  ;;  %v917_v56 = vpop.f32.mrf.mxu1 }
 0x282   : > { %1002 = vst [vmem:[#allocation2] sm:$0xff] %v998_v8 }
 0x29a   : > { %v992_v14 = vpop.f32.mrf.mxu1 }
 0x29b   : > { %v993_v16 = vadd.f32 %v992_v14, %v915_v11 }
 0x29c   : > { %v994_v20 = vpop.f32.mrf.mxu1 }
 0x29d   : > { %v999_v23 = vadd.f32 %v993_v16, %v745_v13  ;;  %v995_v25 = vadd.f32 %v994_v20, %v917_v56  ;;  %1008 = sbr.rel (%p1145_p9) target bundleno = 682 (0x2aa), region = 52 }
 0x29f   : > { %1003 = vst [vmem:[#allocation2 + $0x18] sm:$0xff] %v999_v23  ;;  %v1000_v27 = vadd.f32 %v995_v25, %v746_v18 }
 0x2a1   : > { %1004 = vst [vmem:[#allocation2 + $0x8] sm:$0xff] %v1000_v27 }
 0x2a2   : > { %v1009_v29 = vld [vmem:[#allocation2 + $0x10] sm:$0xff]  ;;  %v1010_v21 = vld [vmem:[#allocation2] sm:$0xff] }
 0x2a3   : > { %1013 = vst [vmem:[#allocation9] sm:$0xff] %v1009_v29  ;;  %1014 = vst [vmem:[#allocation9 + $0x8] sm:$0xff] %v1010_v21 }
 0x2a6   : > { %v1011_v32 = vld [vmem:[#allocation2 + $0x18] sm:$0xff] }
 0x2a7   : > { %1015 = vst [vmem:[#allocation9 + $0x10] sm:$0xff] %v1011_v32 }
 0x2a8   : > { %v1012_v34 = vld [vmem:[#allocation2 + $0x8] sm:$0xff] }
 0x2a9   : > { %1016 = vst [vmem:[#allocation9 + $0x18] sm:$0xff] %v1012_v34 }
 0x2aa PF: > { %s2314_s4 = sshll.u32 %s1534_s19, 9  ;;  %s1558_s10 = smov [#allocation9]  }
 0x2ab   : > { %s1026_s6 = scalar_lea.hbm %s2278_s3, %s2314_s4  ;;  %s1027_s21 = sshll.u32 %s1558_s10, 4  ;;  %s1028_s21 = int_to_ptr.vmem [resolvable:$true] %s1027_s21 }
 0x2ac   : > { %s1422_s18 = scalar_lea.vmem %s1028_s21, 512  ;;  %p2315_p11 = scmp.ne.s32.totalorder %s2305_s15, 0 }
 0x2ad   : > { %p1423_p8 = scmp.ne.s32.totalorder %s1028_s21, %s1422_s18  ;;  %p1429_p5 = scmp.lt.s32.totalorder %s1028_s21, %s1028_s21 }
 0x2ae   : > { %p1430_p7 = scmp.lt.s32.totalorder %s1422_s18, %s1422_s18 }
 0x2af   : > { %p1424_p13 = pnand %p1423_p8, %p2315_p11 }
 0x2b0   : > { %p1431_p1 = por %p1430_p7, %p1429_p5 }
 0x2b1   : > { %p1425_p6 = pneg %p1424_p13 }
 0x2b3   : > { %p1432_p10 = pnand %p1431_p1, %p1425_p6 }
 0x2b5   : > { %1435 = shalt.err (!%p1432_p10)
}
 0x2b6   : > { %s1436_s16 = scalar_lea.hbm %s1026_s6, 512  ;;  %s1440_s25 = scalar_lea.hbm %s2278_s3, 1024 }
 0x2b7   : > { %p1437_p12 = scmp.ne.s32.totalorder %s1026_s6, %s1436_s16  ;;  %p1441_p2 = scmp.lt.s32.totalorder %s1026_s6, %s2278_s3 }
 0x2b8   : > { %p1442_p4 = scmp.lt.s32.totalorder %s1440_s25, %s1436_s16 }
 0x2b9   : > { %p1438_p3 = pnand %p1437_p12, %p2315_p11 }
 0x2ba   : > { %p1443_p9 = por %p1442_p4, %p1441_p2 }
 0x2bb   : > { %p1439_p0 = pneg %p1438_p3 }
 0x2bd   : > { %p1444_p8 = pnand %p1443_p9, %p1439_p0 }
 0x2bf   : > { %1447 = shalt.err (!%p1444_p8)
}
 0x2c0   : > { %s1559_s29 = smov 256   ;;  %s1560_s9 = smov 16  }
 0x2c1   : > { %1201 = dma.vmem_to_hbm [thread:$0]  (%p2315_p11), %s1028_s21, 512, %s1026_s6, [#allocation5], %s1559_s29, %s1559_s29, %s1560_s9  }
 0x2c2   : > { %1501 = dma.done.wait (%p2315_p11), [#allocation5], 512  }
 0x2c3   : > { %1503 = vsyncadd (%p2315_p11), [#allocation5], 4294966784 }
 0x2c4 PF: > { %s18_s22 = sadd.s32 1, %s1546_s22   ;;  %s2316_s15 = sld [smem:[#allocation13_spill]] }
 0x2c5   : > { %p15_p13 = scmp.ge.s32.totalorder %s18_s22, 6   ;;  %s2317_s16 = sld [smem:[#allocation14_spill]] }
 0x2c6   : > { %s2318_s17 = sld [smem:[#allocation18_spill]]  ;;  %s2322_s12 = smov %s1510_s13 }
 0x2c7   : > { %s2319_s19 = sld [smem:[#allocation15_spill]]  ;;  %s2323_s13 = smov %s1514_s14 }
 0x2c8   : > { %s2320_s1 = sld [smem:[#allocation16_spill]]  ;;  %s2324_s14 = smov %s1651_s27 }
 0x2c9   : > { %s2321_s21 = sld [smem:[#allocation17_spill]]  ;;  %s2325_s18 = smov %s1538_s20 }
 0x2ca   :  { %17 = sbr.rel (!%p15_p13) target bundleno = 11 (0xb), region = 95 }
 0x2ce   : > { %s2326_s20 = smov %s2320_s1 }
 0x2cf   :  { %1043 = vsyncpa [#allocation4], 1 }
 0x2d0   :  { %1045 = vsyncpa [#allocation4 + $0x1], 1 }
 0x2d1   :  { %1046 = vsyncpa [#allocation7], 1 }
 0x2d2   :  { %1048 = vsyncpa [#allocation7 + $0x1], 1 }
 0x2d3   :  { %1049 = vsyncpa [#allocation5], 1 }
 0x2d4   :  { %1051 = vsyncpa [#allocation5 + $0x1], 1 }

// kernel: tpu_custom_call.1
= control target key start
LH: loop header
LB: loop body
LE: loop exit
PB: predicated region body
PF: predicated region fallthrough
CT: control target
= control target key end

     0   :  { %s2377_s0 = inlined_call_operand.hbm [shape: f32[32,256], index: 0, kind: input, shape index: {}]   ;;  %s2378_s1 = inlined_call_operand.hbm [shape: f32[256,1536], index: 1, kind: input, shape index: {}]   ;;  %s2379_s2 = inlined_call_operand.hbm [shape: f32[768,256], index: 2, kind: input, shape index: {}]   ;;  %s2380_s3 = inlined_call_operand.hbm [shape: f32[32,256], index: 3, kind: output, shape index: {}]  }
   0x1   :  { %2393 = sst [smem:[#allocation22_spill]] %s2377_s0 }
   0x2   :  { %2394 = sst [smem:[#allocation23_spill]] %s2378_s1 }
   0x3   :  { %2395 = sst [smem:[#allocation24_spill]] %s2380_s3 }
   0x4   :  { %8 = vsyncpa [#allocation4], 0 }
   0x5   :  { %10 = vsyncpa [#allocation4 + $0x1], 0 }
   0x6   :  { %11 = vsyncpa [#allocation7], 0 }
   0x7   :  { %13 = vsyncpa [#allocation7 + $0x1], 0 }
   0x8   :  { %14 = vsyncpa [#allocation5], 0 }
   0x9   :  { %16 = vsyncpa [#allocation5 + $0x1], 0  ;;  %s1643_s12 = smov 0   ;;  %s1645_s13 = smov 0  }
   0xa   :  { %s1647_s14 = smov 0   ;;  %s1649_s15 = smov 0  }
   0xb   :  { %s1651_s16 = smov 0   ;;  %s1653_s17 = smov 0  }
   0xc   :  { %s1655_s18 = smov 0   ;;  %s1657_s19 = smov 0  }
   0xd   :  { %s1659_s20 = smov 0   ;;  %s1661_s21 = smov 0  }
   0xe   :  { %s1663_s22 = smov 0  }
   0xf LB: > { %2396 = sst [smem:[#allocation13_spill]] %s1576_s14  ;;  %s31_s23 = sadd.s32 1, %s1600_s20  ;;  %s1608_s22 = sphi %s1663_s22, %s22_s22   ;;  %s1604_s21 = sphi %s1661_s21, %s2429_s21   ;;  %s1600_s20 = sphi %s1659_s20, %s2435_s20   ;;  %s1596_s19 = sphi %s1657_s19, %s2427_s19   ;;  %s1592_s18 = sphi %s1655_s18, %s2434_s18   ;;  %s1588_s17 = sphi %s1653_s17, %s2426_s17   ;;  %s1584_s16 = sphi %s1651_s16, %s2433_s16   ;;  %s1580_s15 = sphi %s1649_s15, %s2432_s15   ;;  %s1576_s14 = sphi %s1647_s14, %s2424_s14   ;;  %s1572_s13 = sphi %s1645_s13, %s2431_s13   ;;  %s1568_s12 = sphi %s1643_s12, %s2430_s12  }
  0x10   : > { %2397 = sst [smem:[#allocation14_spill]] %s1588_s17  ;;  %p49_p0 = scmp.eq.s32.totalorder %s1608_s22, 0 }
  0x11   : > { %2398 = sst [smem:[#allocation15_spill]] %s1604_s21  ;;  %p1700_p1 = scmp.ge.s32.totalorder %s31_s23, 2 }
  0x12   : > { %s67_s25 = sadd.s32 1, %s1576_s14  ;;  %p74_p2 = scmp.ne.s32.totalorder %s1576_s14, %s1572_s13 }
  0x13   : > { %p80_p3 = scmp.ne.s32.totalorder %s1572_s13, %s1568_s12  ;;  %s2437_s23 = smov (%p1700_p1, %s31_s23), 0 }
  0x14   : > { %2400 = sst [smem:[#allocation16_spill]] %s2437_s23  ;;  %p76_p4 = por %p74_p2, %p49_p0 }
  0x15   : > { %s64_s26 = ssub.s32 %s1600_s20, %s2437_s23  ;;  %p2384_p5 = scmp.lt.s32.totalorder %s1608_s22, 4 }
  0x16   : > { %p65_p6 = scmp.eq.s32.totalorder %s64_s26, 0  ;;  %s178_s27 = sand.u32 1, %s1608_s22  }
  0x17   : > { %s2381_s28 = sand.u32 1, %s1576_s14   ;;  %p1727_p7 = pnand %p2384_p5, %p76_p4 }
  0x18   : > { %s1721_s29 = scalar_select %p65_p6, %s1576_s14, %s67_s25  }
  0x19   : > { %s1251_s30 = smul.u32 1536, %s2381_s28  ;;  %s2403_s1 = sld [smem:[#allocation23_spill]] }
  0x1a   : > { %2401 = sst [smem:[#allocation17_spill]] %s1721_s29  ;;  %s1213_s5 = smul.u32 768, %s1600_s20 }
  0x1b   : > { %s182_s9 = scalar_lea.vmem [#allocation6], %s1251_s30  ;;  %p1194_p8 = scmp.ge.s32.totalorder %s1608_s22, 1 }
  0x1c   : > { %s189_s10 = sshll.u32 %s182_s9, 4  ;;  %s1736_s11 = scalar_lea.sflag [#allocation7], %s178_s27  ;;  %s190_s10 = int_to_ptr.vmem [resolvable:$true] %s189_s10 }
  0x1d   : > { %p2383_p9 = pneg %p1727_p7  ;;  %s1413_s25 = scalar_lea.vmem %s190_s10, 24576 }
  0x1e   : > { %p1414_p10 = scmp.ne.s32.totalorder %s190_s10, %s1413_s25  ;;  %s1610_s26 = smov [#allocation6]  }
  0x1f   : > { %s188_s8 = scalar_lea.hbm %s2403_s1, %s1213_s5  ;;  %s1418_s28 = sshll.u32 %s1610_s26, 4  ;;  %s1419_s28 = int_to_ptr.vmem [resolvable:$false] %s1418_s28 }
  0x20   : > { %p1416_p11 = pnand %p1414_p10, %p2383_p9  ;;  %s1420_s23 = scalar_lea.vmem %s1419_s28, 49152 }
  0x21   : > { %p1421_p13 = scmp.lt.s32.totalorder %s190_s10, %s1419_s28  ;;  %p1422_p2 = scmp.lt.s32.totalorder %s1420_s23, %s1413_s25 }
  0x22   : > { %p1417_p12 = pneg %p1416_p11 }
  0x23   : > { %p1423_p4 = por %p1422_p2, %p1421_p13 }
  0x25   : > { %p1424_p6 = pnand %p1423_p4, %p1417_p12 }
  0x27   : > { %1427 = shalt.err (!%p1424_p6)
}
  0x28   : > { %s1611_s30 = smov 1536   ;;  %s1612_s23 = smov 768  }
  0x29   : > { %s1613_s27 = smov 48   ;;  %p219_p10 = scmp.lt.s32.totalorder %s1608_s22, 5 }
  0x2a   : > { %1269 = dma.hbm_to_vmem [thread:$0]  (!%p1727_p7), %s188_s8, 24576, %s190_s10, %s1736_s11, %s1611_s30, %s1612_s23, %s1613_s27  }
  0x2b   : > { %p1749_p11 = pnand %p1194_p8, %p219_p10  ;;  %s1754_s5 = sadd.s32 4294967295, %s1608_s22  }
  0x2c   : > { %s1184_s6 = sadd.s32 4294967294, %s1608_s22   ;;  %s34_s7 = sadd.s32 1, %s1604_s21 }
  0x2d   : > { %s41_s9 = sadd.s32 1, %s1588_s17  ;;  %s2439_s7 = smov (!%p1700_p1, %s34_s7), %s1604_s21 }
  0x2e   : > { %p48_p12 = scmp.ne.s32.totalorder %s1588_s17, %s1584_s16  ;;  %p54_p13 = scmp.ne.s32.totalorder %s1584_s16, %s1580_s15 }
  0x2f   : > { %p36_p8 = scmp.ge.s32.totalorder %s2439_s7, 2  ;;  %p55_p2 = scmp.eq.s32.totalorder %s1754_s5, 0 }
  0x30   : > { %p1769_p4 = por %p49_p0, %p48_p12  ;;  %p130_p6 = scmp.eq.s32.totalorder %s1754_s5, 3 }
  0x31   : > { %s2441_s7 = smov (%p36_p8, %s2439_s7), 0  ;;  %p1779_p1 = por %p55_p2, %p54_p13 }
  0x32   : > { %2406 = sst [smem:[#allocation18_spill]] %s2441_s7  ;;  %p1786_p10 = por %p80_p3, %p55_p2 }
  0x33   : > { %s38_s25 = ssub.s32 %s1604_s21, %s2441_s7  ;;  %p1792_p0 = por %p130_p6, %p48_p12 }
  0x34   : > { %p39_p9 = scmp.eq.s32.totalorder %s38_s25, 0  ;;  %p136_p8 = scmp.eq.s32.totalorder %s1184_s6, 3 }
  0x35   : > { %s2409_s26 = scalar_select %p1792_p0, 1, 0 }
  0x36   : > { %s156_s30 = sand.u32 1, %s1588_s17   ;;  %s1212_s23 = sshll.u32 %s1604_s21, 9 }
  0x37   : > { %2410 = sst [smem:[#allocation19_spill]] %s2409_s26  ;;  %p1804_p5 = por %p136_p8, %p54_p13 }
  0x38   : > { %s1799_s27 = scalar_select %p39_p9, %s1588_s17, %s41_s9  }
  0x39   : > { %s2412_s1 = scalar_select %p1804_p5, 1, 0 }
  0x3a   : > { %2411 = sst [smem:[#allocation20_spill]] %s1799_s27  ;;  %s1187_s12 = sshll.u32 %s156_s30, 5 }
  0x3b   : > { %2413 = sst [smem:[#allocation21_spill]] %s2412_s1  ;;  %p2415_p3 = scmp.lt.s32.totalorder %s1608_s22, 4 }
  0x3c   : > { %s2414_s0 = sld [smem:[#allocation22_spill]]  ;;  %s160_s6 = scalar_lea.vmem [#allocation3], %s1187_s12 }
  0x3d   : > { %p1815_p12 = pnand %p2415_p3, %p1769_p4  ;;  %s168_s9 = sshll.u32 %s160_s6, 4  ;;  %s169_s9 = int_to_ptr.vmem [resolvable:$true] %s168_s9 }
  0x3e   : > { %s2417_s25 = sand.u32 1, %s1576_s14   ;;  %s157_s27 = scalar_lea.sflag [#allocation4], %s156_s30 }
  0x3f   : > { %s1252_s21 = smul.u32 768, %s2417_s25  ;;  %p1430_p9 = pneg %p1815_p12 }
  0x40   : > { %s1441_s17 = scalar_lea.vmem %s169_s9, 512  ;;  %s1614_s3 = smov [#allocation3]  }
  0x41   : > { %p1442_p13 = scmp.ne.s32.totalorder %s169_s9, %s1441_s17  ;;  %s1446_s29 = sshll.u32 %s1614_s3, 4  ;;  %s1447_s29 = int_to_ptr.vmem [resolvable:$false] %s1446_s29 }
  0x42   : > { %s167_s7 = scalar_lea.hbm %s2414_s0, %s1212_s23  ;;  %s1448_s8 = scalar_lea.vmem %s1447_s29, 1024 }
  0x43   : > { %p1444_p2 = pnand %p1442_p13, %p1430_p9  ;;  %p1449_p4 = scmp.lt.s32.totalorder %s169_s9, %s1447_s29 }
  0x44   : > { %p1450_p8 = scmp.lt.s32.totalorder %s1448_s8, %s1441_s17 }
  0x45   : > { %p1445_p6 = pneg %p1444_p2 }
  0x46   : > { %p1451_p3 = por %p1450_p8, %p1449_p4 }
  0x48   : > { %p1452_p5 = pnand %p1451_p3, %p1445_p6 }
  0x4a   : > { %1455 = shalt.err (!%p1452_p5)
}
  0x4b   : > { %s1615_s23 = smov 256   ;;  %s1616_s30 = smov 16  }
  0x4c   : > { %1266 = dma.hbm_to_vmem [thread:$0]  (!%p1815_p12), %s167_s7, 512, %s169_s9, %s157_s27, %s1615_s23, %s1615_s23, %s1616_s30  }
  0x4d   : > { %s1218_s12 = smul.u32 12288, %s1600_s20  ;;  %s203_s6 = scalar_lea.vmem [#allocation8], %s1252_s21 }
  0x4e   : > { %s211_s25 = sshll.u32 %s203_s6, 4  ;;  %p2418_p13 = pneg %p1727_p7  ;;  %s212_s25 = int_to_ptr.vmem [resolvable:$true] %s211_s25 }
  0x4f   : > { %s210_s3 = scalar_lea.hbm %s2379_s2, %s1218_s12  ;;  %s1469_s29 = scalar_lea.vmem %s212_s25, 12288 }
  0x50   : > { %p1470_p9 = scmp.ne.s32.totalorder %s212_s25, %s1469_s29  ;;  %s1617_s17 = smov [#allocation8]  }
  0x51   : > { %s1474_s8 = sshll.u32 %s1617_s17, 4  ;;  %s1475_s8 = int_to_ptr.vmem [resolvable:$false] %s1474_s8 }
  0x52   : > { %p1472_p5 = pnand %p1470_p9, %p2418_p13  ;;  %s1476_s1 = scalar_lea.vmem %s1475_s8, 24576 }
  0x53   : > { %p1477_p6 = scmp.lt.s32.totalorder %s212_s25, %s1475_s8  ;;  %p1478_p12 = scmp.lt.s32.totalorder %s1476_s1, %s1469_s29 }
  0x54   : > { %p1473_p2 = pneg %p1472_p5 }
  0x55   : > { %p1479_p4 = por %p1478_p12, %p1477_p6 }
  0x57   : > { %p1480_p8 = pnand %p1479_p4, %p1473_p2 }
  0x59   : > { %1483 = shalt.err (!%p1480_p8)
}
  0x5a   : > { %1272 = dma.hbm_to_vmem [thread:$0]  (!%p1727_p7), %s210_s3, 12288, %s212_s25, %s1736_s11, %s1615_s23, %s1615_s23, %s1616_s30  }
  0x5b   : > { %223 = sbr.rel (%p1749_p11) target bundleno = 702 (0x2be), region = 32  ;;  %s1838_s0 = sand.u32 (!%p1749_p11), 1, %s1584_s16  }
  0x5c   : > { %s1195_s14 = sshll.u32 (!%p1749_p11), %s1838_s0, 5  ;;  %s226_s21 = scalar_lea.sflag (!%p1749_p11), [#allocation4], %s1838_s0 }
  0x5d   : > { %s1842_s7 = scalar_lea.vmem (!%p1749_p11), [#allocation3], %s1195_s14 }
  0x60   : > { %1555 = dma.done.wait (%p1779_p1), %s226_s21, 512  }
  0x61   : > { %1557 = vsyncadd (%p1779_p1), %s226_s21, 4294966784  ;;  %s234_s1 = sand.u32 1, %s1754_s5   ;;  %s236_s4 = sand.u32 1, %s1572_s13  }
  0x62   : > { %s1253_s11 = smul.u32 1536, %s236_s4  ;;  %s235_s28 = scalar_lea.sflag [#allocation7], %s234_s1 }
  0x64   : > { %s1850_s26 = scalar_lea.vmem [#allocation6], %s1253_s11 }
  0x65   : > { %1559 = dma.done.wait (%p1786_p10), %s235_s28, 36864  }
  0x66   : > { %1561 = vsyncadd (%p1786_p10), %s235_s28, 4294930432  ;;  %s1254_s27 = smul.u32 768, %s236_s4  ;;  %s1858_s23 = scalar_lea.vmem [#allocation9], %s1195_s14 }
  0x67   : > { %p1197_p7 = scmp.ne.s32.totalorder %s1592_s18, 0 }
  0x68   : > { %s1856_s9 = scalar_lea.vmem [#allocation8], %s1254_s27 }
  0x69   : > { %287 = sbr.rel (%p1197_p7) target bundleno = 113 (0x71), region = 48 }
  0x6e   : > { %v1618_v0 = vmov 0.0  }
  0x6f   : > { %288 = vst [vmem:[#allocation2 + $0x10] sm:$0xff] %v1618_v0  ;;  %289 = vst [vmem:[#allocation2] sm:$0xff] %v1618_v0 }
  0x70   : > { %290 = vst [vmem:[#allocation2 + $0x18] sm:$0xff] %v1618_v0  ;;  %291 = vst [vmem:[#allocation2 + $0x8] sm:$0xff] %v1618_v0 }
  0x71 PF: > { %v387_v1 = vld [vmem:[%s1850_s26 + $0x2d8] sm:$0xff]  ;;  %v386_v2 = vld [vmem:[%s1850_s26 + $0x2d0] sm:$0xff]  ;;  %v381_v3 = vld [vmem:[%s1850_s26 + $0x2a8] sm:$0xff]  ;;  %p1204_p11 = scmp.ne.s32.totalorder %s1592_s18, 1 }
  0x72   : > { %488 = vmatprep.subr.mxu0 %v387_v1  ;;  %v380_v4 = vld [vmem:[%s1850_s26 + $0x2a0] sm:$0xff]  ;;  %v375_v5 = vld [vmem:[%s1850_s26 + $0x278] sm:$0xff]  ;;  %v374_v6 = vld [vmem:[%s1850_s26 + $0x270] sm:$0xff] }
  0x73   : > { %489 = vmatpush1.msra.mxu0 %v386_v2  ;;  %v369_v7 = vld [vmem:[%s1850_s26 + $0x248] sm:$0xff]  ;;  %v368_v8 = vld [vmem:[%s1850_s26 + $0x240] sm:$0xff]  ;;  %v363_v9 = vld [vmem:[%s1850_s26 + $0x218] sm:$0xff] }
  0x74   : > { %490 = vmatprep.subr.mxu0 %v381_v3  ;;  %v362_v10 = vld [vmem:[%s1850_s26 + $0x210] sm:$0xff]  ;;  %v357_v11 = vld [vmem:[%s1850_s26 + $0x1e8] sm:$0xff]  ;;  %v356_v12 = vld [vmem:[%s1850_s26 + $0x1e0] sm:$0xff] }
  0x75   : > { %491 = vmatpush1.msra.mxu0 %v380_v4  ;;  %v389_v13 = vld [vmem:[%s1850_s26 + $0x2e8] sm:$0xff]  ;;  %v388_v14 = vld [vmem:[%s1850_s26 + $0x2e0] sm:$0xff]  ;;  %v351_v15 = vld [vmem:[%s1850_s26 + $0x1b8] sm:$0xff] }
  0x76   : > { %492 = vmatprep.subr.mxu0 %v375_v5  ;;  %565 = vmatprep.subr.mxu1 %v389_v13  ;;  %v383_v16 = vld [vmem:[%s1850_s26 + $0x2b8] sm:$0xff]  ;;  %v350_v17 = vld [vmem:[%s1850_s26 + $0x1b0] sm:$0xff]  ;;  %v377_v19 = vld [vmem:[%s1850_s26 + $0x288] sm:$0xff] }
  0x77   : > { %493 = vmatpush1.msra.mxu0 %v374_v6  ;;  %566 = vmatpush1.msra.mxu1 %v388_v14  ;;  %v382_v18 = vld [vmem:[%s1850_s26 + $0x2b0] sm:$0xff]  ;;  %v345_v20 = vld [vmem:[%s1850_s26 + $0x188] sm:$0xff]  ;;  %v376_v21 = vld [vmem:[%s1850_s26 + $0x280] sm:$0xff] }
  0x78   : > { %494 = vmatprep.subr.mxu0 %v369_v7  ;;  %567 = vmatprep.subr.mxu1 %v383_v16  ;;  %v344_v22 = vld [vmem:[%s1850_s26 + $0x180] sm:$0xff]  ;;  %v371_v23 = vld [vmem:[%s1850_s26 + $0x258] sm:$0xff]  ;;  %v370_v25 = vld [vmem:[%s1850_s26 + $0x250] sm:$0xff] }
  0x79   : > { %495 = vmatpush1.msra.mxu0 %v368_v8  ;;  %568 = vmatpush1.msra.mxu1 %v382_v18  ;;  %v339_v24 = vld [vmem:[%s1850_s26 + $0x158] sm:$0xff]  ;;  %v338_v26 = vld [vmem:[%s1850_s26 + $0x150] sm:$0xff]  ;;  %v365_v27 = vld [vmem:[%s1850_s26 + $0x228] sm:$0xff] }
  0x7a   : > { %496 = vmatprep.subr.mxu0 %v363_v9  ;;  %569 = vmatprep.subr.mxu1 %v377_v19  ;;  %v333_v28 = vld [vmem:[%s1850_s26 + $0x128] sm:$0xff]  ;;  %v364_v29 = vld [vmem:[%s1850_s26 + $0x220] sm:$0xff]  ;;  %v359_v31 = vld [vmem:[%s1850_s26 + $0x1f8] sm:$0xff] }
  0x7b   : > { %497 = vmatpush1.msra.mxu0 %v362_v10  ;;  %570 = vmatpush1.msra.mxu1 %v376_v21  ;;  %v332_v30 = vld [vmem:[%s1850_s26 + $0x120] sm:$0xff]  ;;  %v327_v32 = vld [vmem:[%s1850_s26 + $0xf8] sm:$0xff]  ;;  %v358_v33 = vld [vmem:[%s1850_s26 + $0x1f0] sm:$0xff] }
  0x7c   : > { %498 = vmatprep.subr.mxu0 %v357_v11  ;;  %571 = vmatprep.subr.mxu1 %v371_v23  ;;  %v326_v34 = vld [vmem:[%s1850_s26 + $0xf0] sm:$0xff]  ;;  %v353_v35 = vld [vmem:[%s1850_s26 + $0x1c8] sm:$0xff]  ;;  %v352_v37 = vld [vmem:[%s1850_s26 + $0x1c0] sm:$0xff] }
  0x7d   : > { %499 = vmatpush1.msra.mxu0 %v356_v12  ;;  %572 = vmatpush1.msra.mxu1 %v370_v25  ;;  %v321_v36 = vld [vmem:[%s1850_s26 + $0xc8] sm:$0xff]  ;;  %v320_v38 = vld [vmem:[%s1850_s26 + $0xc0] sm:$0xff]  ;;  %v347_v39 = vld [vmem:[%s1850_s26 + $0x198] sm:$0xff] }
  0x7e   : > { %500 = vmatprep.subr.mxu0 %v351_v15  ;;  %573 = vmatprep.subr.mxu1 %v365_v27  ;;  %v315_v40 = vld [vmem:[%s1850_s26 + $0x98] sm:$0xff]  ;;  %v346_v41 = vld [vmem:[%s1850_s26 + $0x190] sm:$0xff]  ;;  %v341_v43 = vld [vmem:[%s1850_s26 + $0x168] sm:$0xff] }
  0x7f   : > { %501 = vmatpush1.msra.mxu0 %v350_v17  ;;  %574 = vmatpush1.msra.mxu1 %v364_v29  ;;  %v314_v42 = vld [vmem:[%s1850_s26 + $0x90] sm:$0xff]  ;;  %v309_v44 = vld [vmem:[%s1850_s26 + $0x68] sm:$0xff]  ;;  %v340_v45 = vld [vmem:[%s1850_s26 + $0x160] sm:$0xff] }
  0x80   : > { %502 = vmatprep.subr.mxu0 %v345_v20  ;;  %575 = vmatprep.subr.mxu1 %v359_v31  ;;  %v308_v46 = vld [vmem:[%s1850_s26 + $0x60] sm:$0xff]  ;;  %v335_v47 = vld [vmem:[%s1850_s26 + $0x138] sm:$0xff]  ;;  %v334_v49 = vld [vmem:[%s1850_s26 + $0x130] sm:$0xff] }
  0x81   : > { %503 = vmatpush1.msra.mxu0 %v344_v22  ;;  %576 = vmatpush1.msra.mxu1 %v358_v33  ;;  %v303_v48 = vld [vmem:[%s1850_s26 + $0x38] sm:$0xff]  ;;  %v302_v50 = vld [vmem:[%s1850_s26 + $0x30] sm:$0xff]  ;;  %v329_v51 = vld [vmem:[%s1850_s26 + $0x108] sm:$0xff] }
  0x82   : > { %504 = vmatprep.subr.mxu0 %v339_v24  ;;  %577 = vmatprep.subr.mxu1 %v353_v35  ;;  %v297_v52 = vld [vmem:[%s1850_s26 + $0x8] sm:$0xff]  ;;  %v328_v53 = vld [vmem:[%s1850_s26 + $0x100] sm:$0xff]  ;;  %v323_v55 = vld [vmem:[%s1850_s26 + $0xd8] sm:$0xff] }
  0x83   : > { %505 = vmatpush1.msra.mxu0 %v338_v26  ;;  %578 = vmatpush1.msra.mxu1 %v352_v37  ;;  %v296_v54 = vld [vmem:[%s1850_s26] sm:$0xff]  ;;  %v483_v56 = vld [vmem:[%s1850_s26 + $0x5d8] sm:$0xff]  ;;  %v322_v57 = vld [vmem:[%s1850_s26 + $0xd0] sm:$0xff] }
  0x84   : > { %506 = vmatprep.subr.mxu0 %v333_v28  ;;  %579 = vmatprep.subr.mxu1 %v347_v39  ;;  %v482_v58 = vld [vmem:[%s1850_s26 + $0x5d0] sm:$0xff]  ;;  %v317_v59 = vld [vmem:[%s1850_s26 + $0xa8] sm:$0xff]  ;;  %v316_v61 = vld [vmem:[%s1850_s26 + $0xa0] sm:$0xff] }
  0x85   : > { %507 = vmatpush1.msra.mxu0 %v332_v30  ;;  %580 = vmatpush1.msra.mxu1 %v346_v41  ;;  %v477_v60 = vld [vmem:[%s1850_s26 + $0x5a8] sm:$0xff]  ;;  %v476_v62 = vld [vmem:[%s1850_s26 + $0x5a0] sm:$0xff]  ;;  %v311_v63 = vld [vmem:[%s1850_s26 + $0x78] sm:$0xff] }
  0x86   : > { %508 = vmatprep.subr.mxu0 %v327_v32  ;;  %581 = vmatprep.subr.mxu1 %v341_v43  ;;  %v471_v0 = vld [vmem:[%s1850_s26 + $0x578] sm:$0xff]  ;;  %v310_v1 = vld [vmem:[%s1850_s26 + $0x70] sm:$0xff]  ;;  %v305_v3 = vld [vmem:[%s1850_s26 + $0x48] sm:$0xff] }
  0x87   : > { %509 = vmatpush1.msra.mxu0 %v326_v34  ;;  %582 = vmatpush1.msra.mxu1 %v340_v45  ;;  %v470_v2 = vld [vmem:[%s1850_s26 + $0x570] sm:$0xff]  ;;  %v465_v4 = vld [vmem:[%s1850_s26 + $0x548] sm:$0xff]  ;;  %v304_v5 = vld [vmem:[%s1850_s26 + $0x40] sm:$0xff] }
  0x88   : > { %510 = vmatprep.subr.mxu0 %v321_v36  ;;  %583 = vmatprep.subr.mxu1 %v335_v47  ;;  %v464_v6 = vld [vmem:[%s1850_s26 + $0x540] sm:$0xff]  ;;  %v299_v7 = vld [vmem:[%s1850_s26 + $0x18] sm:$0xff]  ;;  %v298_v9 = vld [vmem:[%s1850_s26 + $0x10] sm:$0xff] }
  0x89   : > { %511 = vmatpush1.msra.mxu0 %v320_v38  ;;  %584 = vmatpush1.msra.mxu1 %v334_v49  ;;  %v459_v8 = vld [vmem:[%s1850_s26 + $0x518] sm:$0xff]  ;;  %v458_v10 = vld [vmem:[%s1850_s26 + $0x510] sm:$0xff]  ;;  %v485_v11 = vld [vmem:[%s1850_s26 + $0x5e8] sm:$0xff] }
  0x8a   : > { %512 = vmatprep.subr.mxu0 %v315_v40  ;;  %585 = vmatprep.subr.mxu1 %v329_v51  ;;  %v453_v12 = vld [vmem:[%s1850_s26 + $0x4e8] sm:$0xff]  ;;  %v484_v13 = vld [vmem:[%s1850_s26 + $0x5e0] sm:$0xff]  ;;  %v479_v15 = vld [vmem:[%s1850_s26 + $0x5b8] sm:$0xff] }
  0x8b   : > { %513 = vmatpush1.msra.mxu0 %v314_v42  ;;  %586 = vmatpush1.msra.mxu1 %v328_v53  ;;  %v452_v14 = vld [vmem:[%s1850_s26 + $0x4e0] sm:$0xff]  ;;  %v447_v16 = vld [vmem:[%s1850_s26 + $0x4b8] sm:$0xff]  ;;  %v478_v17 = vld [vmem:[%s1850_s26 + $0x5b0] sm:$0xff] }
  0x8c   : > { %514 = vmatprep.subr.mxu0 %v309_v44  ;;  %587 = vmatprep.subr.mxu1 %v323_v55  ;;  %v446_v18 = vld [vmem:[%s1850_s26 + $0x4b0] sm:$0xff]  ;;  %v473_v19 = vld [vmem:[%s1850_s26 + $0x588] sm:$0xff]  ;;  %v440_v22 = vld [vmem:[%s1850_s26 + $0x480] sm:$0xff] }
  0x8d   : > { %515 = vmatpush1.msra.mxu0 %v308_v46  ;;  %588 = vmatpush1.msra.mxu1 %v322_v57  ;;  %v441_v20 = vld [vmem:[%s1850_s26 + $0x488] sm:$0xff]  ;;  %v472_v23 = vld [vmem:[%s1850_s26 + $0x580] sm:$0xff]  ;;  %v435_v24 = vld [vmem:[%s1850_s26 + $0x458] sm:$0xff] }
  0x8e   : > { %516 = vmatprep.subr.mxu0 %v303_v48  ;;  %589 = vmatprep.subr.mxu1 %v317_v59  ;;  %v1946_v21 = vld [vmem:[%s1842_s7 + $0x8] sm:$0xff]  ;;  %v467_v25 = vld [vmem:[%s1850_s26 + $0x558] sm:$0xff]  ;;  %v434_v26 = vld [vmem:[%s1850_s26 + $0x450] sm:$0xff] }
  0x8f   : > { %517 = vmatpush1.msra.mxu0 %v302_v50  ;;  %590 = vmatpush1.msra.mxu1 %v316_v61  ;;  %v466_v27 = vld [vmem:[%s1850_s26 + $0x550] sm:$0xff]  ;;  %v429_v28 = vld [vmem:[%s1850_s26 + $0x428] sm:$0xff]  ;;  %v428_v30 = vld [vmem:[%s1850_s26 + $0x420] sm:$0xff] }
  0x90   : > { %518 = vmatprep.subr.mxu0 %v297_v52  ;;  %591 = vmatprep.subr.mxu1 %v311_v63  ;;  %v461_v29 = vld [vmem:[%s1850_s26 + $0x528] sm:$0xff]  ;;  %v460_v31 = vld [vmem:[%s1850_s26 + $0x520] sm:$0xff]  ;;  %v423_v32 = vld [vmem:[%s1850_s26 + $0x3f8] sm:$0xff] }
  0x91   : > { %519 = vmatpush1.msra.mxu0 %v296_v54  ;;  %592 = vmatpush1.msra.mxu1 %v310_v1  ;;  %v455_v33 = vld [vmem:[%s1850_s26 + $0x4f8] sm:$0xff]  ;;  %v422_v34 = vld [vmem:[%s1850_s26 + $0x3f0] sm:$0xff]  ;;  %v417_v36 = vld [vmem:[%s1850_s26 + $0x3c8] sm:$0xff] }
  0x92   : > { %520 = vmatprep.subr.mxu0 %v483_v56  ;;  %593 = vmatprep.subr.mxu1 %v305_v3  ;;  %v454_v35 = vld [vmem:[%s1850_s26 + $0x4f0] sm:$0xff]  ;;  %v449_v37 = vld [vmem:[%s1850_s26 + $0x4c8] sm:$0xff]  ;;  %v416_v38 = vld [vmem:[%s1850_s26 + $0x3c0] sm:$0xff] }
  0x93   : > { %521 = vmatpush2.msra.mxu0 %v482_v58  ;;  %594 = vmatpush1.msra.mxu1 %v304_v5  ;;  %v448_v39 = vld [vmem:[%s1850_s26 + $0x4c0] sm:$0xff]  ;;  %v411_v40 = vld [vmem:[%s1850_s26 + $0x398] sm:$0xff]  ;;  %v410_v42 = vld [vmem:[%s1850_s26 + $0x390] sm:$0xff] }
  0x94   : > { %522 = vmatprep.subr.mxu0 %v477_v60  ;;  %595 = vmatprep.subr.mxu1 %v299_v7  ;;  %v443_v41 = vld [vmem:[%s1850_s26 + $0x498] sm:$0xff]  ;;  %v442_v43 = vld [vmem:[%s1850_s26 + $0x490] sm:$0xff]  ;;  %v405_v44 = vld [vmem:[%s1850_s26 + $0x368] sm:$0xff] }
  0x95   : > { %523 = vmatpush2.msra.mxu0 %v476_v62  ;;  %596 = vmatpush1.msra.mxu1 %v298_v9  ;;  %v437_v45 = vld [vmem:[%s1850_s26 + $0x468] sm:$0xff]  ;;  %v404_v46 = vld [vmem:[%s1850_s26 + $0x360] sm:$0xff]  ;;  %v399_v48 = vld [vmem:[%s1850_s26 + $0x338] sm:$0xff] }
  0x96   : > { %524 = vmatprep.subr.mxu0 %v471_v0  ;;  %597 = vmatprep.subr.mxu1 %v485_v11  ;;  %v436_v47 = vld [vmem:[%s1850_s26 + $0x460] sm:$0xff]  ;;  %v431_v49 = vld [vmem:[%s1850_s26 + $0x438] sm:$0xff]  ;;  %v398_v50 = vld [vmem:[%s1850_s26 + $0x330] sm:$0xff] }
  0x97   : > { %525 = vmatpush2.msra.mxu0 %v470_v2  ;;  %598 = vmatpush2.msra.mxu1 %v484_v13  ;;  %v430_v51 = vld [vmem:[%s1850_s26 + $0x430] sm:$0xff]  ;;  %v393_v52 = vld [vmem:[%s1850_s26 + $0x308] sm:$0xff]  ;;  %v392_v54 = vld [vmem:[%s1850_s26 + $0x300] sm:$0xff] }
  0x98   : > { %526 = vmatprep.subr.mxu0 %v465_v4  ;;  %599 = vmatprep.subr.mxu1 %v479_v15  ;;  %v425_v53 = vld [vmem:[%s1850_s26 + $0x408] sm:$0xff]  ;;  %v424_v55 = vld [vmem:[%s1850_s26 + $0x400] sm:$0xff]  ;;  %v391_v57 = vld [vmem:[%s1850_s26 + $0x2f8] sm:$0xff] }
  0x99   : > { %527 = vmatpush2.msra.mxu0 %v464_v6  ;;  %600 = vmatpush2.msra.mxu1 %v478_v17  ;;  %v1984_v56 = vld [vmem:[%s1842_s7] sm:$0xff]  ;;  %v390_v58 = vld [vmem:[%s1850_s26 + $0x2f0] sm:$0xff]  ;;  %v419_v59 = vld [vmem:[%s1850_s26 + $0x3d8] sm:$0xff] }
  0x9a   : > { %528 = vmatprep.subr.mxu0 %v459_v8  ;;  %601 = vmatprep.subr.mxu1 %v473_v19  ;;  %v385_v60 = vld [vmem:[%s1850_s26 + $0x2c8] sm:$0xff]  ;;  %v418_v61 = vld [vmem:[%s1850_s26 + $0x3d0] sm:$0xff]  ;;  %v384_v62 = vld [vmem:[%s1850_s26 + $0x2c0] sm:$0xff] }
  0x9b   : > { %529 = vmatpush2.msra.mxu0 %v458_v10  ;;  %552 = vmatprep.mubr.f32.mxu0 %v1946_v21  ;;  %v413_v63 = vld [vmem:[%s1850_s26 + $0x3a8] sm:$0xff]  ;;  %v379_v0 = vld [vmem:[%s1850_s26 + $0x298] sm:$0xff]  ;;  %v412_v1 = vld [vmem:[%s1850_s26 + $0x3a0] sm:$0xff] }
  0x9c   : > { %530 = vmatprep.subr.mxu0 %v453_v12  ;;  %602 = vmatpush2.msra.mxu1 %v472_v23  ;;  %v378_v2 = vld [vmem:[%s1850_s26 + $0x290] sm:$0xff]  ;;  %v1998_v3 = vld [vmem:[%s1842_s7 + $0x18] sm:$0xff]  ;;  %v373_v4 = vld [vmem:[%s1850_s26 + $0x268] sm:$0xff] }
  0x9d   : > { %531 = vmatpush2.msra.mxu0 %v452_v14  ;;  %603 = vmatprep.subr.mxu1 %v467_v25  ;;  %v407_v5 = vld [vmem:[%s1850_s26 + $0x378] sm:$0xff]  ;;  %v372_v6 = vld [vmem:[%s1850_s26 + $0x260] sm:$0xff]  ;;  %v406_v7 = vld [vmem:[%s1850_s26 + $0x370] sm:$0xff] }
  0x9e   : > { %532 = vmatprep.subr.mxu0 %v447_v16  ;;  %604 = vmatpush2.msra.mxu1 %v466_v27  ;;  %v367_v8 = vld [vmem:[%s1850_s26 + $0x238] sm:$0xff]  ;;  %v2007_v9 = vld [vmem:[%s1842_s7 + $0x10] sm:$0xff]  ;;  %v401_v11 = vld [vmem:[%s1850_s26 + $0x348] sm:$0xff] }
  0x9f   : > { %533 = vmatpush2.msra.mxu0 %v446_v18  ;;  %605 = vmatprep.subr.mxu1 %v461_v29  ;;  %v366_v10 = vld [vmem:[%s1850_s26 + $0x230] sm:$0xff]  ;;  %v361_v12 = vld [vmem:[%s1850_s26 + $0x208] sm:$0xff]  ;;  %v400_v13 = vld [vmem:[%s1850_s26 + $0x340] sm:$0xff] }
  0xa0   : > { %534 = vmatprep.subr.mxu0 %v441_v20  ;;  %606 = vmatpush2.msra.mxu1 %v460_v31  ;;  %v360_v14 = vld [vmem:[%s1850_s26 + $0x200] sm:$0xff]  ;;  %v395_v15 = vld [vmem:[%s1850_s26 + $0x318] sm:$0xff]  ;;  %v394_v17 = vld [vmem:[%s1850_s26 + $0x310] sm:$0xff] }
  0xa1   : > { %535 = vmatpush2.msra.mxu0 %v440_v22  ;;  %607 = vmatprep.subr.mxu1 %v455_v33  ;;  %v355_v16 = vld [vmem:[%s1850_s26 + $0x1d8] sm:$0xff]  ;;  %v354_v18 = vld [vmem:[%s1850_s26 + $0x1d0] sm:$0xff]  ;;  %v349_v19 = vld [vmem:[%s1850_s26 + $0x1a8] sm:$0xff] }
  0xa2   : > { %536 = vmatprep.subr.mxu0 %v435_v24  ;;  %608 = vmatpush2.msra.mxu1 %v454_v35  ;;  %v348_v20 = vld [vmem:[%s1850_s26 + $0x1a0] sm:$0xff]  ;;  %v343_v22 = vld [vmem:[%s1850_s26 + $0x178] sm:$0xff]  ;;  %v342_v23 = vld [vmem:[%s1850_s26 + $0x170] sm:$0xff] }
  0xa3   : > { %537 = vmatpush2.msra.mxu0 %v434_v26  ;;  %609 = vmatprep.subr.mxu1 %v449_v37  ;;  %v337_v24 = vld [vmem:[%s1850_s26 + $0x148] sm:$0xff]  ;;  %v336_v25 = vld [vmem:[%s1850_s26 + $0x140] sm:$0xff]  ;;  %v331_v26 = vld [vmem:[%s1850_s26 + $0x118] sm:$0xff] }
  0xa4   : > { %538 = vmatprep.subr.mxu0 %v429_v28  ;;  %610 = vmatpush2.msra.mxu1 %v448_v39  ;;  %v330_v27 = vld [vmem:[%s1850_s26 + $0x110] sm:$0xff]  ;;  %v325_v28 = vld [vmem:[%s1850_s26 + $0xe8] sm:$0xff]  ;;  %v324_v29 = vld [vmem:[%s1850_s26 + $0xe0] sm:$0xff] }
  0xa5   : > { %539 = vmatpush2.msra.mxu0 %v428_v30  ;;  %611 = vmatprep.subr.mxu1 %v443_v41  ;;  %v319_v30 = vld [vmem:[%s1850_s26 + $0xb8] sm:$0xff]  ;;  %v313_v31 = vld [vmem:[%s1850_s26 + $0x88] sm:$0xff] }
  0xa6   : > { %540 = vmatprep.subr.mxu0 %v423_v32  ;;  %612 = vmatpush2.msra.mxu1 %v442_v43  ;;  %v312_v32 = vld [vmem:[%s1850_s26 + $0x80] sm:$0xff]  ;;  %v307_v33 = vld [vmem:[%s1850_s26 + $0x58] sm:$0xff]  ;;  %v301_v35 = vld [vmem:[%s1850_s26 + $0x28] sm:$0xff] }
  0xa7   : > { %541 = vmatpush2.msra.mxu0 %v422_v34  ;;  %613 = vmatprep.subr.mxu1 %v437_v45  ;;  %v306_v34 = vld [vmem:[%s1850_s26 + $0x50] sm:$0xff]  ;;  %v487_v37 = vld [vmem:[%s1850_s26 + $0x5f8] sm:$0xff]  ;;  %v481_v39 = vld [vmem:[%s1850_s26 + $0x5c8] sm:$0xff] }
  0xa8   : > { %542 = vmatprep.subr.mxu0 %v417_v36  ;;  %614 = vmatpush2.msra.mxu1 %v436_v47  ;;  %v300_v36 = vld [vmem:[%s1850_s26 + $0x20] sm:$0xff]  ;;  %v475_v41 = vld [vmem:[%s1850_s26 + $0x598] sm:$0xff]  ;;  %v469_v43 = vld [vmem:[%s1850_s26 + $0x568] sm:$0xff] }
  0xa9   : > { %543 = vmatpush2.msra.mxu0 %v416_v38  ;;  %615 = vmatprep.subr.mxu1 %v431_v49  ;;  %v486_v38 = vld [vmem:[%s1850_s26 + $0x5f0] sm:$0xff]  ;;  %v463_v45 = vld [vmem:[%s1850_s26 + $0x538] sm:$0xff]  ;;  %v457_v47 = vld [vmem:[%s1850_s26 + $0x508] sm:$0xff] }
  0xaa   : > { %544 = vmatprep.subr.mxu0 %v411_v40  ;;  %616 = vmatpush2.msra.mxu1 %v430_v51  ;;  %v480_v40 = vld [vmem:[%s1850_s26 + $0x5c0] sm:$0xff]  ;;  %v451_v49 = vld [vmem:[%s1850_s26 + $0x4d8] sm:$0xff]  ;;  %v445_v51 = vld [vmem:[%s1850_s26 + $0x4a8] sm:$0xff] }
  0xab   : > { %545 = vmatpush2.msra.mxu0 %v410_v42  ;;  %617 = vmatprep.subr.mxu1 %v425_v53  ;;  %v474_v42 = vld [vmem:[%s1850_s26 + $0x590] sm:$0xff]  ;;  %v439_v53 = vld [vmem:[%s1850_s26 + $0x478] sm:$0xff] }
  0xac   : > { %546 = vmatprep.subr.mxu0 %v405_v44  ;;  %618 = vmatpush2.msra.mxu1 %v424_v55  ;;  %v468_v44 = vld [vmem:[%s1850_s26 + $0x560] sm:$0xff]  ;;  %v433_v55 = vld [vmem:[%s1850_s26 + $0x448] sm:$0xff] }
  0xad   : > { %547 = vmatpush2.msra.mxu0 %v404_v46  ;;  %619 = vmatprep.subr.mxu1 %v419_v59  ;;  %v462_v46 = vld [vmem:[%s1850_s26 + $0x530] sm:$0xff] }
  0xae   : > { %548 = vmatprep.subr.mxu0 %v399_v48  ;;  %620 = vmatpush2.msra.mxu1 %v418_v61  ;;  %v456_v48 = vld [vmem:[%s1850_s26 + $0x500] sm:$0xff]  ;;  %v426_v59 = vld [vmem:[%s1850_s26 + $0x410] sm:$0xff] }
  0xaf   : > { %549 = vmatpush2.msra.mxu0 %v398_v50  ;;  %621 = vmatprep.subr.mxu1 %v413_v63  ;;  %v450_v50 = vld [vmem:[%s1850_s26 + $0x4d0] sm:$0xff]  ;;  %v420_v61 = vld [vmem:[%s1850_s26 + $0x3e0] sm:$0xff] }
  0xb0   : > { %550 = vmatprep.subr.mxu0 %v393_v52  ;;  %622 = vmatpush2.msra.mxu1 %v412_v1  ;;  %v444_v52 = vld [vmem:[%s1850_s26 + $0x4a0] sm:$0xff]  ;;  %v414_v63 = vld [vmem:[%s1850_s26 + $0x3b0] sm:$0xff] }
  0xb1   : > { %551 = vmatpush2.msra.mxu0 %v392_v54  ;;  %623 = vmatprep.subr.mxu1 %v407_v5  ;;  %v438_v54 = vld [vmem:[%s1850_s26 + $0x470] sm:$0xff]  ;;  %v408_v1 = vld [vmem:[%s1850_s26 + $0x380] sm:$0xff]  ;;  %v397_v5 = vld [vmem:[%s1850_s26 + $0x328] sm:$0xff] }
  0xb2   : > { %553 = vmatmul.mubr.f32.vlgmr.msra.gmra.mxu0 %v1984_v56  ;;  %642 = vmatprep.subr.mxu0 %v391_v57  ;;  %v432_v57 = vld [vmem:[%s1850_s26 + $0x440] sm:$0xff] }
  0xb3   : > { %643 = vmatpush1.msra.mxu0 %v390_v58  ;;  %558 = vmatprep.mubr.f32.mxu0 %v1998_v3  ;;  %v427_v58 = vld [vmem:[%s1850_s26 + $0x418] sm:$0xff] }
  0xb4   : > { %644 = vmatprep.subr.mxu0 %v385_v60  ;;  %624 = vmatpush2.msra.mxu1 %v406_v7  ;;  %v421_v60 = vld [vmem:[%s1850_s26 + $0x3e8] sm:$0xff]  ;;  %v802_v7 = vld [vmem:[%s1856_s9 + $0xf8] sm:$0xff] }
  0xb5   : > { %645 = vmatpush1.msra.mxu0 %v384_v62  ;;  %625 = vmatprep.subr.mxu1 %v401_v11  ;;  %v415_v62 = vld [vmem:[%s1850_s26 + $0x3b8] sm:$0xff]  ;;  %v799_v11 = vld [vmem:[%s1856_s9 + $0xe0] sm:$0xff] }
  0xb6   : > { %646 = vmatprep.subr.mxu0 %v379_v0  ;;  %559 = vmatmul.mubr.f32.gmra.mxu0 %v2007_v9  ;;  %v409_v0 = vld [vmem:[%s1850_s26 + $0x388] sm:$0xff] }
  0xb7   : > { %647 = vmatpush1.msra.mxu0 %v378_v2  ;;  %626 = vmatpush2.msra.mxu1 %v400_v13  ;;  %v403_v2 = vld [vmem:[%s1850_s26 + $0x358] sm:$0xff]  ;;  %v795_v13 = vld [vmem:[%s1856_s9 + $0xc0] sm:$0xff] }
  0xb8   : > { %648 = vmatprep.subr.mxu0 %v373_v4  ;;  %627 = vmatprep.subr.mxu1 %v395_v15  ;;  %v402_v4 = vld [vmem:[%s1850_s26 + $0x350] sm:$0xff]  ;;  %v792_v15 = vld [vmem:[%s1856_s9 + $0xa8] sm:$0xff] }
  0xb9   : > { %649 = vmatpush1.msra.mxu0 %v372_v6  ;;  %628 = vmatpush2.msra.mxu1 %v394_v17  ;;  %v396_v6 = vld [vmem:[%s1850_s26 + $0x320] sm:$0xff]  ;;  %v790_v17 = vld [vmem:[%s1856_s9 + $0x98] sm:$0xff] }
  0xba   : > { %650 = vmatprep.subr.mxu0 %v367_v8  ;;  %629 = vmatprep.mubr.f32.mxu1 %v1946_v21  ;;  %v801_v8 = vld [vmem:[%s1856_s9 + $0xf0] sm:$0xff] }
  0xbb   : > { %651 = vmatpush1.msra.mxu0 %v366_v10  ;;  %630 = vmatmul.mubr.f32.vlgmr.msra.gmra.mxu1 %v1984_v56  ;;  %v800_v10 = vld [vmem:[%s1856_s9 + $0xe8] sm:$0xff] }
  0xbc   : > { %652 = vmatprep.subr.mxu0 %v361_v12  ;;  %635 = vmatprep.mubr.f32.mxu1 %v1998_v3  ;;  %v798_v12 = vld [vmem:[%s1856_s9 + $0xd8] sm:$0xff] }
  0xbd   : > { %653 = vmatpush1.msra.mxu0 %v360_v14  ;;  %706 = vmatprep.mubr.f32.mxu0 %v1946_v21  ;;  %v318_v21 = vld [vmem:[%s1850_s26 + $0xb0] sm:$0xff] }
  0xbe   : > { %654 = vmatprep.subr.mxu0 %v355_v16  ;;  %867 = vmatprep.subr.mxu1 %v802_v7  ;;  %v793_v14 = vld [vmem:[%s1856_s9 + $0xb0] sm:$0xff]  ;;  %v791_v16 = vld [vmem:[%s1856_s9 + $0xa0] sm:$0xff] }
  0xbf   : > { %655 = vmatpush1.msra.mxu0 %v354_v18  ;;  %636 = vmatmul.mubr.f32.gmra.mxu1 %v2007_v9  ;;  %v789_v18 = vld [vmem:[%s1856_s9 + $0x90] sm:$0xff] }
  0xc0   : > { %656 = vmatprep.subr.mxu0 %v349_v19  ;;  %868 = vmatpush1.msra.mxu1 %v801_v8  ;;  %v788_v19 = vld [vmem:[%s1856_s9 + $0x88] sm:$0xff]  ;;  %v817_v7 = vld [vmem:[%s1856_s9 + $0x170] sm:$0xff]  ;;  %v2188_v8 = vld [vmem:[%s1856_s9 + $0x280] sm:$0xff] }
  0xc1   : > { %657 = vmatpush1.msra.mxu0 %v348_v20  ;;  %869 = vmatprep.subr.mxu1 %v800_v10  ;;  %v787_v20 = vld [vmem:[%s1856_s9 + $0x80] sm:$0xff]  ;;  %v816_v10 = vld [vmem:[%s1856_s9 + $0x168] sm:$0xff] }
  0xc2   : > { %658 = vmatprep.subr.mxu0 %v343_v22  ;;  %870 = vmatpush1.msra.mxu1 %v799_v11  ;;  %v786_v22 = vld [vmem:[%s1856_s9 + $0x78] sm:$0xff] }
  0xc3   : > { %659 = vmatpush1.msra.mxu0 %v342_v23  ;;  %871 = vmatprep.subr.mxu1 %v798_v12  ;;  %v785_v23 = vld [vmem:[%s1856_s9 + $0x70] sm:$0xff]  ;;  %v2193_v11 = vld [vmem:[%s1856_s9 + $0x278] sm:$0xff]  ;;  %v815_v12 = vld [vmem:[%s1856_s9 + $0x160] sm:$0xff] }
  0xc4   : > { %660 = vmatprep.subr.mxu0 %v337_v24  ;;  %v784_v24 = vld [vmem:[%s1856_s9 + $0x68] sm:$0xff] }
  0xc5   : > { %661 = vmatpush1.msra.mxu0 %v336_v25  ;;  %v783_v25 = vld [vmem:[%s1856_s9 + $0x60] sm:$0xff] }
  0xc6   : > { %662 = vmatprep.subr.mxu0 %v331_v26  ;;  %v782_v26 = vld [vmem:[%s1856_s9 + $0x58] sm:$0xff] }
  0xc7   : > { %663 = vmatpush1.msra.mxu0 %v330_v27  ;;  %v781_v27 = vld [vmem:[%s1856_s9 + $0x50] sm:$0xff] }
  0xc8   : > { %664 = vmatprep.subr.mxu0 %v325_v28  ;;  %v780_v28 = vld [vmem:[%s1856_s9 + $0x48] sm:$0xff] }
  0xc9   : > { %665 = vmatpush1.msra.mxu0 %v324_v29  ;;  %v779_v29 = vld [vmem:[%s1856_s9 + $0x40] sm:$0xff] }
  0xca   : > { %666 = vmatprep.subr.mxu0 %v319_v30  ;;  %v778_v30 = vld [vmem:[%s1856_s9 + $0x38] sm:$0xff] }
  0xcb   : > { %667 = vmatpush1.msra.mxu0 %v318_v21  ;;  %v777_v21 = vld [vmem:[%s1856_s9 + $0x30] sm:$0xff] }
  0xcc   : > { %668 = vmatprep.subr.mxu0 %v313_v31  ;;  %v776_v31 = vld [vmem:[%s1856_s9 + $0x28] sm:$0xff] }
  0xcd   : > { %669 = vmatpush1.msra.mxu0 %v312_v32  ;;  %v775_v32 = vld [vmem:[%s1856_s9 + $0x20] sm:$0xff] }
  0xce   : > { %670 = vmatprep.subr.mxu0 %v307_v33  ;;  %v774_v33 = vld [vmem:[%s1856_s9 + $0x18] sm:$0xff] }
  0xcf   : > { %671 = vmatpush1.msra.mxu0 %v306_v34  ;;  %v773_v34 = vld [vmem:[%s1856_s9 + $0x10] sm:$0xff] }
  0xd0   : > { %672 = vmatprep.subr.mxu0 %v301_v35  ;;  %v772_v35 = vld [vmem:[%s1856_s9 + $0x8] sm:$0xff] }
  0xd1   : > { %673 = vmatpush1.msra.mxu0 %v300_v36  ;;  %v771_v36 = vld [vmem:[%s1856_s9] sm:$0xff] }
  0xd2   : > { %674 = vmatprep.subr.mxu0 %v487_v37  ;;  %v834_v37 = vld [vmem:[%s1856_s9 + $0x1f8] sm:$0xff] }
  0xd3   : > { %675 = vmatpush2.msra.mxu0 %v486_v38  ;;  %v833_v38 = vld [vmem:[%s1856_s9 + $0x1f0] sm:$0xff] }
  0xd4   : > { %676 = vmatprep.subr.mxu0 %v481_v39  ;;  %v832_v39 = vld [vmem:[%s1856_s9 + $0x1e8] sm:$0xff] }
  0xd5   : > { %677 = vmatpush2.msra.mxu0 %v480_v40  ;;  %v2113_v40 = vld [vmem:[%s1856_s9 + $0x2f8] sm:$0xff] }
  0xd6   : > { %678 = vmatprep.subr.mxu0 %v475_v41  ;;  %v831_v41 = vld [vmem:[%s1856_s9 + $0x1e0] sm:$0xff] }
  0xd7   : > { %679 = vmatpush2.msra.mxu0 %v474_v42  ;;  %v2118_v42 = vld [vmem:[%s1856_s9 + $0x2f0] sm:$0xff] }
  0xd8   : > { %680 = vmatprep.subr.mxu0 %v469_v43  ;;  %v830_v43 = vld [vmem:[%s1856_s9 + $0x1d8] sm:$0xff] }
  0xd9   : > { %681 = vmatpush2.msra.mxu0 %v468_v44  ;;  %v2123_v44 = vld [vmem:[%s1856_s9 + $0x2e8] sm:$0xff] }
  0xda   : > { %682 = vmatprep.subr.mxu0 %v463_v45  ;;  %v829_v45 = vld [vmem:[%s1856_s9 + $0x1d0] sm:$0xff] }
  0xdb   : > { %683 = vmatpush2.msra.mxu0 %v462_v46  ;;  %v2128_v46 = vld [vmem:[%s1856_s9 + $0x2e0] sm:$0xff] }
  0xdc   : > { %684 = vmatprep.subr.mxu0 %v457_v47  ;;  %v828_v47 = vld [vmem:[%s1856_s9 + $0x1c8] sm:$0xff] }
  0xdd   : > { %685 = vmatpush2.msra.mxu0 %v456_v48  ;;  %v2133_v48 = vld [vmem:[%s1856_s9 + $0x2d8] sm:$0xff] }
  0xde   : > { %686 = vmatprep.subr.mxu0 %v451_v49  ;;  %v827_v49 = vld [vmem:[%s1856_s9 + $0x1c0] sm:$0xff] }
  0xdf   : > { %687 = vmatpush2.msra.mxu0 %v450_v50  ;;  %v2138_v50 = vld [vmem:[%s1856_s9 + $0x2d0] sm:$0xff] }
  0xe0   : > { %688 = vmatprep.subr.mxu0 %v445_v51  ;;  %v826_v51 = vld [vmem:[%s1856_s9 + $0x1b8] sm:$0xff] }
  0xe1   : > { %689 = vmatpush2.msra.mxu0 %v444_v52  ;;  %v2143_v52 = vld [vmem:[%s1856_s9 + $0x2c8] sm:$0xff] }
  0xe2   : > { %690 = vmatprep.subr.mxu0 %v439_v53  ;;  %v825_v53 = vld [vmem:[%s1856_s9 + $0x1b0] sm:$0xff] }
  0xe3   : > { %691 = vmatpush2.msra.mxu0 %v438_v54  ;;  %v2148_v54 = vld [vmem:[%s1856_s9 + $0x2c0] sm:$0xff] }
  0xe4   : > { %692 = vmatprep.subr.mxu0 %v433_v55  ;;  %v824_v55 = vld [vmem:[%s1856_s9 + $0x1a8] sm:$0xff] }
  0xe5   : > { %693 = vmatpush2.msra.mxu0 %v432_v57  ;;  %v2153_v57 = vld [vmem:[%s1856_s9 + $0x2b8] sm:$0xff] }
  0xe6   : > { %694 = vmatprep.subr.mxu0 %v427_v58  ;;  %v823_v58 = vld [vmem:[%s1856_s9 + $0x1a0] sm:$0xff] }
  0xe7   : > { %695 = vmatpush2.msra.mxu0 %v426_v59  ;;  %v2158_v59 = vld [vmem:[%s1856_s9 + $0x2b0] sm:$0xff] }
  0xe8   : > { %696 = vmatprep.subr.mxu0 %v421_v60  ;;  %v822_v60 = vld [vmem:[%s1856_s9 + $0x198] sm:$0xff] }
  0xe9   : > { %697 = vmatpush2.msra.mxu0 %v420_v61  ;;  %v2163_v61 = vld [vmem:[%s1856_s9 + $0x2a8] sm:$0xff] }
  0xea   : > { %698 = vmatprep.subr.mxu0 %v415_v62  ;;  %v821_v62 = vld [vmem:[%s1856_s9 + $0x190] sm:$0xff] }
  0xeb   : > { %699 = vmatpush2.msra.mxu0 %v414_v63  ;;  %v2168_v63 = vld [vmem:[%s1856_s9 + $0x2a0] sm:$0xff] }
  0xec   : > { %700 = vmatprep.subr.mxu0 %v409_v0  ;;  %v820_v0 = vld [vmem:[%s1856_s9 + $0x188] sm:$0xff] }
  0xed   : > { %701 = vmatpush2.msra.mxu0 %v408_v1  ;;  %v2173_v1 = vld [vmem:[%s1856_s9 + $0x298] sm:$0xff] }
  0xee   : > { %702 = vmatprep.subr.mxu0 %v403_v2  ;;  %v819_v2 = vld [vmem:[%s1856_s9 + $0x180] sm:$0xff] }
  0xef   : > { %703 = vmatpush2.msra.mxu0 %v402_v4  ;;  %v2178_v4 = vld [vmem:[%s1856_s9 + $0x290] sm:$0xff] }
  0xf0   : > { %704 = vmatprep.subr.mxu0 %v397_v5  ;;  %v818_v5 = vld [vmem:[%s1856_s9 + $0x178] sm:$0xff] }
  0xf1   : > { %705 = vmatpush2.msra.mxu0 %v396_v6  ;;  %v2183_v6 = vld [vmem:[%s1856_s9 + $0x288] sm:$0xff] }
  0xf2   : > { %707 = vmatmul.mubr.f32.vlgmr.msra.gmra.mxu0 %v1984_v56  ;;  %v797_v56 = vld [vmem:[%s1856_s9 + $0xd0] sm:$0xff]  ;;  %944 = vmatprep.subr.mxu0 %v2113_v40 }
  0xf3   : > { %712 = vmatprep.mubr.f32.mxu0 %v1998_v3  ;;  %872 = vmatpush1.msra.mxu1 %v797_v56  ;;  %v796_v3 = vld [vmem:[%s1856_s9 + $0xc8] sm:$0xff]  ;;  %v2198_v56 = vld [vmem:[%s1856_s9 + $0x270] sm:$0xff] }
  0xf4   : > { %873 = vmatprep.subr.mxu1 %v796_v3  ;;  %945 = vmatpush1.msra.mxu0 %v2118_v42  ;;  %v814_v3 = vld [vmem:[%s1856_s9 + $0x158] sm:$0xff] }
  0xf5   : > { %874 = vmatpush1.msra.mxu1 %v795_v13  ;;  %946 = vmatprep.subr.mxu0 %v2123_v44  ;;  %v2202_v13 = vld [vmem:[%s1856_s9 + $0x268] sm:$0xff] }
  0xf6   : > { %713 = vmatmul.mubr.f32.gmra.mxu0 %v2007_v9  ;;  %v794_v9 = vld [vmem:[%s1856_s9 + $0xb8] sm:$0xff] }
  0xf7   : > { %875 = vmatprep.subr.mxu1 %v794_v9  ;;  %947 = vmatpush1.msra.mxu0 %v2128_v46  ;;  %v813_v9 = vld [vmem:[%s1856_s9 + $0x150] sm:$0xff] }
  0xf8   : > { %876 = vmatpush1.msra.mxu1 %v793_v14  ;;  %948 = vmatprep.subr.mxu0 %v2133_v48  ;;  %v2207_v14 = vld [vmem:[%s1856_s9 + $0x260] sm:$0xff] }
  0xf9   : > { %877 = vmatprep.subr.mxu1 %v792_v15  ;;  %949 = vmatpush1.msra.mxu0 %v2138_v50  ;;  %v812_v15 = vld [vmem:[%s1856_s9 + $0x148] sm:$0xff] }
  0xfa   : > { %878 = vmatpush1.msra.mxu1 %v791_v16  ;;  %950 = vmatprep.subr.mxu0 %v2143_v52  ;;  %v2212_v16 = vld [vmem:[%s1856_s9 + $0x258] sm:$0xff] }
  0xfb   : > { %879 = vmatprep.subr.mxu1 %v790_v17  ;;  %951 = vmatpush1.msra.mxu0 %v2148_v54  ;;  %v811_v17 = vld [vmem:[%s1856_s9 + $0x140] sm:$0xff] }
  0xfc   : > { %880 = vmatpush1.msra.mxu1 %v789_v18  ;;  %952 = vmatprep.subr.mxu0 %v2153_v57  ;;  %v2216_v18 = vld [vmem:[%s1856_s9 + $0x250] sm:$0xff] }
  0xfd   : > { %881 = vmatprep.subr.mxu1 %v788_v19  ;;  %953 = vmatpush1.msra.mxu0 %v2158_v59  ;;  %v810_v19 = vld [vmem:[%s1856_s9 + $0x138] sm:$0xff] }
  0xfe   : > { %882 = vmatpush1.msra.mxu1 %v787_v20  ;;  %954 = vmatprep.subr.mxu0 %v2163_v61  ;;  %v2221_v20 = vld [vmem:[%s1856_s9 + $0x248] sm:$0xff] }
  0xff   : > { %883 = vmatprep.subr.mxu1 %v786_v22  ;;  %955 = vmatpush1.msra.mxu0 %v2168_v63  ;;  %v809_v22 = vld [vmem:[%s1856_s9 + $0x130] sm:$0xff] }
 0x100   : > { %884 = vmatpush1.msra.mxu1 %v785_v23  ;;  %956 = vmatprep.subr.mxu0 %v2173_v1  ;;  %v2226_v23 = vld [vmem:[%s1856_s9 + $0x240] sm:$0xff] }
 0x101   : > { %885 = vmatprep.subr.mxu1 %v784_v24  ;;  %957 = vmatpush1.msra.mxu0 %v2178_v4  ;;  %v808_v24 = vld [vmem:[%s1856_s9 + $0x128] sm:$0xff] }
 0x102   : > { %886 = vmatpush1.msra.mxu1 %v783_v25  ;;  %958 = vmatprep.subr.mxu0 %v2183_v6  ;;  %v2231_v25 = vld [vmem:[%s1856_s9 + $0x238] sm:$0xff] }
 0x103   : > { %887 = vmatprep.subr.mxu1 %v782_v26  ;;  %959 = vmatpush1.msra.mxu0 %v2188_v8  ;;  %v807_v26 = vld [vmem:[%s1856_s9 + $0x120] sm:$0xff] }
 0x104   : > { %888 = vmatpush1.msra.mxu1 %v781_v27  ;;  %960 = vmatprep.subr.mxu0 %v2193_v11  ;;  %v2236_v27 = vld [vmem:[%s1856_s9 + $0x230] sm:$0xff] }
 0x105   : > { %889 = vmatprep.subr.mxu1 %v780_v28  ;;  %961 = vmatpush1.msra.mxu0 %v2198_v56  ;;  %v806_v28 = vld [vmem:[%s1856_s9 + $0x118] sm:$0xff] }
 0x106   : > { %890 = vmatpush1.msra.mxu1 %v779_v29  ;;  %962 = vmatprep.subr.mxu0 %v2202_v13  ;;  %v2241_v29 = vld [vmem:[%s1856_s9 + $0x228] sm:$0xff] }
 0x107   : > { %891 = vmatprep.subr.mxu1 %v778_v30  ;;  %963 = vmatpush1.msra.mxu0 %v2207_v14  ;;  %v805_v30 = vld [vmem:[%s1856_s9 + $0x110] sm:$0xff] }
 0x108   : > { %892 = vmatpush1.msra.mxu1 %v777_v21  ;;  %964 = vmatprep.subr.mxu0 %v2212_v16  ;;  %v2248_v21 = vld [vmem:[%s1856_s9 + $0x220] sm:$0xff] }
 0x109   : > { %893 = vmatprep.subr.mxu1 %v776_v31  ;;  %965 = vmatpush1.msra.mxu0 %v2216_v18  ;;  %v804_v31 = vld [vmem:[%s1856_s9 + $0x108] sm:$0xff] }
 0x10a   : > { %894 = vmatpush1.msra.mxu1 %v775_v32  ;;  %966 = vmatprep.subr.mxu0 %v2221_v20  ;;  %v2253_v32 = vld [vmem:[%s1856_s9 + $0x218] sm:$0xff] }
 0x10b   : > { %895 = vmatprep.subr.mxu1 %v774_v33  ;;  %967 = vmatpush1.msra.mxu0 %v2226_v23  ;;  %v803_v33 = vld [vmem:[%s1856_s9 + $0x100] sm:$0xff] }
 0x10c   : > { %896 = vmatpush1.msra.mxu1 %v773_v34  ;;  %968 = vmatprep.subr.mxu0 %v2231_v25  ;;  %v2258_v34 = vld [vmem:[%s1856_s9 + $0x210] sm:$0xff] }
 0x10d   : > { %897 = vmatprep.subr.mxu1 %v772_v35  ;;  %969 = vmatpush1.msra.mxu0 %v2236_v27  ;;  %v2262_v35 = vld [vmem:[%s1856_s9 + $0x208] sm:$0xff] }
 0x10e   : > { %898 = vmatpush1.msra.mxu1 %v771_v36  ;;  %970 = vmatprep.subr.mxu0 %v2241_v29  ;;  %v2267_v36 = vld [vmem:[%s1856_s9 + $0x200] sm:$0xff] }
 0x10f   : > { %899 = vmatprep.subr.mxu1 %v834_v37  ;;  %971 = vmatpush1.msra.mxu0 %v2248_v21  ;;  %v1619_v37 = vmov 0.0  }
 0x110   : > { %900 = vmatpush2.msra.mxu1 %v833_v38  ;;  %972 = vmatprep.subr.mxu0 %v2253_v32 }
 0x111   : > { %901 = vmatprep.subr.mxu1 %v832_v39  ;;  %973 = vmatpush1.msra.mxu0 %v2258_v34 }
 0x112   : > { %902 = vmatpush2.msra.mxu1 %v831_v41  ;;  %974 = vmatprep.subr.mxu0 %v2262_v35 }
 0x113   : > { %903 = vmatprep.subr.mxu1 %v830_v43  ;;  %975 = vmatpush1.msra.mxu0 %v2267_v36 }
 0x114   : > { %904 = vmatpush2.msra.mxu1 %v829_v45  ;;  %1008 = vmatprep.mubr.f32.mxu0 %v1619_v37 }
 0x115   : > { %905 = vmatprep.subr.mxu1 %v828_v47 }
 0x116   : > { %906 = vmatpush2.msra.mxu1 %v827_v49 }
 0x117   : > { %907 = vmatprep.subr.mxu1 %v826_v51 }
 0x118   : > { %908 = vmatpush2.msra.mxu1 %v825_v53 }
 0x119   : > { %909 = vmatprep.subr.mxu1 %v824_v55 }
 0x11a   : > { %910 = vmatpush2.msra.mxu1 %v823_v58 }
 0x11b   : > { %911 = vmatprep.subr.mxu1 %v822_v60 }
 0x11c   : > { %912 = vmatpush2.msra.mxu1 %v821_v62 }
 0x11d   : > { %913 = vmatprep.subr.mxu1 %v820_v0 }
 0x11e   : > { %914 = vmatpush2.msra.mxu1 %v819_v2 }
 0x11f   : > { %915 = vmatprep.subr.mxu1 %v818_v5 }
 0x120   : > { %916 = vmatpush2.msra.mxu1 %v817_v7 }
 0x121   : > { %917 = vmatprep.subr.mxu1 %v816_v10 }
 0x122   : > { %918 = vmatpush2.msra.mxu1 %v815_v12 }
 0x123   : > { %919 = vmatprep.subr.mxu1 %v814_v3 }
 0x124   : > { %920 = vmatpush2.msra.mxu1 %v813_v9 }
 0x125   : > { %921 = vmatprep.subr.mxu1 %v812_v15 }
 0x126   : > { %922 = vmatpush2.msra.mxu1 %v811_v17 }
 0x127   : > { %923 = vmatprep.subr.mxu1 %v810_v19 }
 0x128   : > { %924 = vmatpush2.msra.mxu1 %v809_v22 }
 0x129   : > { %925 = vmatprep.subr.mxu1 %v808_v24 }
 0x12a   : > { %926 = vmatpush2.msra.mxu1 %v807_v26 }
 0x12b   : > { %927 = vmatprep.subr.mxu1 %v806_v28 }
 0x12c   : > { %928 = vmatpush2.msra.mxu1 %v805_v30 }
 0x12d   : > { %929 = vmatprep.subr.mxu1 %v804_v31 }
 0x12e   : > { %930 = vmatpush2.msra.mxu1 %v803_v33 }
 0x12f   : > { %1219 = vmatprep.subr.mxu1 %v2113_v40 }
 0x172   : > { %v554_v38 = vpop.f32.mrf.mxu0 }
 0x173   : > { %v1198_v43 = vmul.f32 -1.442695, %v554_v38 }
 0x174   : > { %v556_v39 = vpop.f32.mrf.mxu0 }
 0x175   : > { %v1199_v47 = vmul.f32 -1.442695, %v556_v39  ;;  %1376 = vpow2.f32 %v1198_v43 }
 0x176   : > { %v560_v41 = vpop.f32.mrf.mxu0 }
 0x177   : > { %v1201_v53 = vmul.f32 -1.442695, %v560_v41  ;;  %1378 = vpow2.f32 %v1199_v47 }
 0x178   : > { %v562_v49 = vpop.f32.mrf.mxu0 }
 0x179   : > { %v1202_v40 = vmul.f32 -1.442695, %v562_v49 }
 0x17b   : > { %v631_v45 = vpop.f32.mrf.mxu1 }
 0x17c   : > { %v1200_v51 = vmul.f32 -1.442695, %v631_v45 }
 0x17d   : > { %v633_v3 = vpop.f32.mrf.mxu1 }
 0x17e   : > { %1380 = vpow2.f32 %v1200_v51 }
 0x17f   : > { %1382 = vpow2.f32 %v1201_v53  ;;  %v637_v9 = vpop.f32.mrf.mxu1 }
 0x180   : > { %1384 = vpow2.f32 %v1202_v40  ;;  %v1203_v15 = vmul.f32 -1.442695, %v637_v9 }
 0x182   : > { %v1377_v55 = vpop.eup %1376 }
 0x183   : > { %v737_v62 = vadd.f32 1.0, %v1377_v55  ;;  %v639_v55 = vpop.f32.mrf.mxu1 }
 0x184   : > { %v1379_v58 = vpop.eup %1378 }
 0x185   : > { %v738_v2 = vadd.f32 1.0, %v1379_v58  ;;  %1386 = vrcp.f32 %v737_v62 }
 0x187   : > { %1388 = vrcp.f32 %v738_v2 }
 0x18b   : > { %v1381_v60 = vpop.eup %1380 }
 0x18c   : > { %v1383_v0 = vpop.eup %1382  ;;  %v739_v7 = vadd.f32 1.0, %v1381_v60 }
 0x18d   : > { %v1385_v5 = vpop.eup %1384  ;;  %v740_v10 = vadd.f32 1.0, %v1383_v0 }
 0x18e   : > { %v741_v12 = vadd.f32 1.0, %v1385_v5  ;;  %1390 = vrcp.f32 %v739_v7 }
 0x18f   : > { %1392 = vrcp.f32 %v740_v10 }
 0x190   : > { %1394 = vrcp.f32 %v741_v12 }
 0x191   : > { %1396 = vpow2.f32 %v1203_v15 }
 0x192   : > { %v1387_v17 = vpop.eup %1386 }
 0x193   : > { %v755_v24 = vmul.f32 %v1387_v17, %v554_v38 }
 0x194   : > { %v1389_v19 = vpop.eup %1388 }
 0x195   : > { %v756_v28 = vmul.f32 %v1389_v19, %v556_v39  ;;  %v761_v51 = vmul.f32 %v755_v24, %v633_v3 }
 0x19b   : > { %v1391_v22 = vpop.eup %1390 }
 0x19c   : > { %v1393_v26 = vpop.eup %1392  ;;  %v757_v33 = vmul.f32 %v1391_v22, %v631_v45 }
 0x19d   : > { %v1395_v30 = vpop.eup %1394  ;;  %v758_v47 = vmul.f32 %v1393_v26, %v560_v41 }
 0x19e   : > { %v759_v40 = vmul.f32 %v1395_v30, %v562_v49  ;;  %v1397_v39 = vpop.eup %1396 }
 0x19f   : > { %v764_v38 = vmul.f32 %v758_v47, %v639_v55 }
 0x1b2   : > { %v708_v31 = vpop.f32.mrf.mxu0 }
 0x1b3   : > { %v762_v43 = vmul.f32 %v756_v28, %v708_v31 }
 0x1b4   : > { %v710_v53 = vpop.f32.mrf.mxu0 }
 0x1b5   : > { %v763_v58 = vmul.f32 %v757_v33, %v710_v53  ;;  %931 = vmatprep.mubr.f32.mxu1 %v762_v43 }
 0x1b6   : > { %v714_v60 = vpop.f32.mrf.mxu0  ;;  %932 = vmatmul.mubr.f32.vlgmr.msra.gmra.mxu1 %v761_v51 }
 0x1b7   : > { %v765_v62 = vmul.f32 %v759_v40, %v714_v60  ;;  %1235 = vmatpush1.msra.mxu1 %v2118_v42  ;;  %1009 = vmatmul.mubr.f32.vlgmr.msra.gmra.mxu0 %v763_v58  ;;  %v742_v42 = vadd.f32 1.0, %v1397_v39 }
 0x1b8   : > { %1220 = vmatprep.subr.mxu1 %v2123_v44 }
 0x1b9   : > { %1236 = vmatpush1.msra.mxu1 %v2128_v46  ;;  %937 = vmatprep.mubr.f32.mxu1 %v765_v62  ;;  %1398 = vrcp.f32 %v742_v42  ;;  %v716_v46 = vpop.f32.mrf.mxu0 }
 0x1ba   : > { %1221 = vmatprep.subr.mxu1 %v2133_v48  ;;  %938 = vmatmul.mubr.f32.gmra.mxu1 %v764_v38 }
 0x1bb   : > { %1237 = vmatpush1.msra.mxu1 %v2138_v50  ;;  %1014 = vmatprep.mubr.f32.mxu1 %v1619_v37 }
 0x1bc   : > { %1222 = vmatprep.subr.mxu1 %v2143_v52 }
 0x1bd   : > { %1238 = vmatpush1.msra.mxu1 %v2148_v54  ;;  %v767_v54 = vld [vmem:[#allocation2 + $0x10] sm:$0xff] }
 0x1be   : > { %1223 = vmatprep.subr.mxu1 %v2153_v57 }
 0x1bf   : > { %1239 = vmatpush1.msra.mxu1 %v2158_v59 }
 0x1c0   : > { %1224 = vmatprep.subr.mxu1 %v2163_v61 }
 0x1c1   : > { %1240 = vmatpush1.msra.mxu1 %v2168_v63  ;;  %v768_v63 = vld [vmem:[#allocation2] sm:$0xff] }
 0x1c2   : > { %1225 = vmatprep.subr.mxu1 %v2173_v1 }
 0x1c3   : > { %1241 = vmatpush1.msra.mxu1 %v2178_v4 }
 0x1c4   : > { %1226 = vmatprep.subr.mxu1 %v2183_v6 }
 0x1c5   : > { %1242 = vmatpush1.msra.mxu1 %v2188_v8 }
 0x1c6   : > { %1227 = vmatprep.subr.mxu1 %v2193_v11  ;;  %v1399_v44 = vpop.eup %1398 }
 0x1c7   : > { %1243 = vmatpush1.msra.mxu1 %v2198_v56  ;;  %v760_v48 = vmul.f32 %v1399_v44, %v637_v9 }
 0x1c8   : > { %1228 = vmatprep.subr.mxu1 %v2202_v13  ;;  %v769_v13 = vld [vmem:[#allocation2 + $0x18] sm:$0xff] }
 0x1c9   : > { %1244 = vmatpush1.msra.mxu1 %v2207_v14  ;;  %v766_v50 = vmul.f32 %v760_v48, %v716_v46 }
 0x1ca   : > { %1229 = vmatprep.subr.mxu1 %v2212_v16 }
 0x1cb   : > { %1245 = vmatpush1.msra.mxu1 %v2216_v18  ;;  %v770_v18 = vld [vmem:[#allocation2 + $0x8] sm:$0xff] }
 0x1cc   : > { %1230 = vmatprep.subr.mxu1 %v2221_v20 }
 0x1cd   : > { %1246 = vmatpush1.msra.mxu1 %v2226_v23 }
 0x1ce   : > { %1231 = vmatprep.subr.mxu1 %v2231_v25 }
 0x1cf   : > { %1247 = vmatpush1.msra.mxu1 %v2236_v27 }
 0x1d0   : > { %1232 = vmatprep.subr.mxu1 %v2241_v29 }
 0x1d1   : > { %1248 = vmatpush1.msra.mxu1 %v2248_v21 }
 0x1d2   : > { %1233 = vmatprep.subr.mxu1 %v2253_v32 }
 0x1d3   : > { %1249 = vmatpush1.msra.mxu1 %v2258_v34 }
 0x1d4   : > { %1234 = vmatprep.subr.mxu1 %v2262_v35 }
 0x1d5   : > { %1250 = vmatpush1.msra.mxu1 %v2267_v36 }
 0x1d6   : > { %1015 = vmatmul.mubr.f32.vlgmr.msra.gmra.mxu1 %v766_v50 }
 0x276   : > { %v933_v52 = vpop.f32.mrf.mxu1 }
 0x277   : > { %v1010_v57 = vpop.f32.mrf.mxu0 }
 0x278   : > { %v1011_v59 = vadd.f32 %v1010_v57, %v933_v52  ;;  %v935_v61 = vpop.f32.mrf.mxu1 }
 0x279   : > { %v1012_v1 = vpop.f32.mrf.mxu0 }
 0x27a   : > { %v1021_v4 = vadd.f32 %v1011_v59, %v767_v54  ;;  %v1013_v6 = vadd.f32 %v1012_v1, %v935_v61  ;;  %v939_v11 = vpop.f32.mrf.mxu1 }
 0x27c   : > { %1025 = vst [vmem:[#allocation2 + $0x10] sm:$0xff] %v1021_v4  ;;  %v1022_v8 = vadd.f32 %v1013_v6, %v768_v63  ;;  %v941_v56 = vpop.f32.mrf.mxu1 }
 0x27e   : > { %1026 = vst [vmem:[#allocation2] sm:$0xff] %v1022_v8 }
 0x296   : > { %v1016_v14 = vpop.f32.mrf.mxu1 }
 0x297   : > { %v1017_v16 = vadd.f32 %v1016_v14, %v939_v11 }
 0x298   : > { %v1018_v20 = vpop.f32.mrf.mxu1 }
 0x299   : > { %v1023_v23 = vadd.f32 %v1017_v16, %v769_v13  ;;  %v1019_v25 = vadd.f32 %v1018_v20, %v941_v56  ;;  %1032 = sbr.rel (%p1204_p11) target bundleno = 678 (0x2a6), region = 52 }
 0x29b   : > { %1027 = vst [vmem:[#allocation2 + $0x18] sm:$0xff] %v1023_v23  ;;  %v1024_v27 = vadd.f32 %v1019_v25, %v770_v18 }
 0x29d   : > { %1028 = vst [vmem:[#allocation2 + $0x8] sm:$0xff] %v1024_v27 }
 0x29e   : > { %v1033_v29 = vld [vmem:[#allocation2 + $0x10] sm:$0xff]  ;;  %v1034_v21 = vld [vmem:[#allocation2] sm:$0xff] }
 0x29f   : > { %1037 = vst [vmem:[%s1858_s23] sm:$0xff] %v1033_v29  ;;  %1038 = vst [vmem:[%s1858_s23 + $0x8] sm:$0xff] %v1034_v21 }
 0x2a2   : > { %v1035_v32 = vld [vmem:[#allocation2 + $0x18] sm:$0xff] }
 0x2a3   : > { %1039 = vst [vmem:[%s1858_s23 + $0x10] sm:$0xff] %v1035_v32 }
 0x2a4   : > { %v1036_v34 = vld [vmem:[#allocation2 + $0x8] sm:$0xff] }
 0x2a5   : > { %1040 = vst [vmem:[%s1858_s23 + $0x18] sm:$0xff] %v1036_v34 }
 0x2a6 PF: > { %s1217_s24 = sshll.u32 %s1596_s19, 9  ;;  %s2420_s30 = sld [smem:[#allocation24_spill]] }
 0x2a7   : > { %s1056_s6 = sshll.u32 %s1858_s23, 4  ;;  %s1042_s25 = scalar_lea.sflag [#allocation5], %s1838_s0  ;;  %s2315_s6 = int_to_ptr.vmem [resolvable:$true] %s1056_s6 }
 0x2a8   : > { %s1484_s3 = scalar_lea.vmem %s2315_s6, 512  ;;  %s1620_s29 = smov [#allocation9]  }
 0x2a9   : > { %p1485_p1 = scmp.ne.s32.totalorder %s2315_s6, %s1484_s3  ;;  %s1488_s17 = sshll.u32 %s1620_s29, 4  ;;  %s1489_s17 = int_to_ptr.vmem [resolvable:$false] %s1488_s17 }
 0x2aa   : > { %s1490_s19 = scalar_lea.vmem %s1489_s17, 1024  ;;  %p1491_p9 = scmp.lt.s32.totalorder %s2315_s6, %s1489_s17 }
 0x2ab   : > { %p1486_p10 = pnand %p1485_p1, %p1792_p0  ;;  %p1492_p13 = scmp.lt.s32.totalorder %s1490_s19, %s1484_s3 }
 0x2ac   : > { %s2312_s12 = scalar_lea.hbm %s2420_s30, %s1217_s24 }
 0x2ad   : > { %p1487_p3 = pneg %p1486_p10  ;;  %p1493_p5 = por %p1492_p13, %p1491_p9 }
 0x2af   : > { %p1494_p2 = pnand %p1493_p5, %p1487_p3 }
 0x2b1   : > { %1497 = shalt.err (!%p1494_p2)
}
 0x2b2   : > { %s1498_s8 = scalar_lea.hbm %s2312_s12, 512  ;;  %s1502_s7 = scalar_lea.hbm %s2420_s30, 1024 }
 0x2b3   : > { %p1499_p6 = scmp.ne.s32.totalorder %s2312_s12, %s1498_s8  ;;  %p1503_p8 = scmp.lt.s32.totalorder %s2312_s12, %s2420_s30 }
 0x2b4   : > { %p1504_p7 = scmp.lt.s32.totalorder %s1502_s7, %s1498_s8 }
 0x2b5   : > { %p1500_p12 = pnand %p1499_p6, %p1792_p0 }
 0x2b6   : > { %p1505_p11 = por %p1504_p7, %p1503_p8 }
 0x2b7   : > { %p1501_p4 = pneg %p1500_p12 }
 0x2b9   : > { %p1506_p1 = pnand %p1505_p11, %p1501_p4 }
 0x2bb   : > { %1509 = shalt.err (!%p1506_p1)
}
 0x2bc   : > { %s1621_s11 = smov 256   ;;  %s1622_s28 = smov 16  }
 0x2bd   : > { %1261 = dma.vmem_to_hbm [thread:$0]  (%p1792_p0), %s2315_s6, 512, %s2312_s12, %s1042_s25, %s1621_s11, %s1621_s11, %s1622_s28  }
 0x2be PF: > { %s2421_s26 = sld [smem:[#allocation21_spill]]  ;;  %p1278_p10 = scmp.ge.s32.totalorder %s1608_s22, 2 }
 0x2bf   : > { %s1071_s27 = sand.u32 1, %s1580_s15  }
 0x2c0   : > { %s1072_s9 = scalar_lea.sflag [#allocation5], %s1071_s27 }
 0x2c4   : > { %p2422_p3 = scmp.ne.s32.totalorder %s2421_s26, 0 }
 0x2c6   : > { %p1274_p9 = pnand %p1278_p10, %p2422_p3 }
 0x2c8   : > { %p1275_p13 = pneg %p1274_p9 }
 0x2ca   : > { %1563 = dma.done.wait (%p1275_p13), %s1072_s9, 512  }
 0x2cb   : > { %1565 = vsyncadd (%p1275_p13), %s1072_s9, 4294966784  ;;  %s22_s22 = sadd.s32 1, %s1608_s22   ;;  %s2423_s23 = sld [smem:[#allocation13_spill]] }
 0x2cc   : > { %p19_p5 = scmp.ge.s32.totalorder %s22_s22, 6   ;;  %s2424_s14 = sld [smem:[#allocation17_spill]] }
 0x2cd   : > { %s2425_s0 = sld [smem:[#allocation14_spill]]  ;;  %s2430_s12 = smov %s1572_s13 }
 0x2ce   : > { %s2426_s17 = sld [smem:[#allocation20_spill]]  ;;  %s2432_s15 = smov %s1584_s16 }
 0x2cf   : > { %s2427_s19 = sld [smem:[#allocation15_spill]]  ;;  %s2434_s18 = smov %s1600_s20 }
 0x2d0   : > { %s2428_s5 = sld [smem:[#allocation16_spill]] }
 0x2d1   : > { %s2429_s21 = sld [smem:[#allocation18_spill]]  ;;  %s2431_s13 = smov %s2423_s23 }
 0x2d2   :  { %21 = sbr.rel (!%p19_p5) target bundleno = 15 (0xf), region = 109 }
 0x2d3   : > { %s2433_s16 = smov %s2425_s0 }
 0x2d6   : > { %s2435_s20 = smov %s2428_s5 }
 0x2d7   :  { %1077 = vsyncpa [#allocation4], 1 }
 0x2d8   :  { %1079 = vsyncpa [#allocation4 + $0x1], 1 }
 0x2d9   :  { %1080 = vsyncpa [#allocation7], 1 }
 0x2da   :  { %1082 = vsyncpa [#allocation7 + $0x1], 1 }
 0x2db   :  { %1083 = vsyncpa [#allocation5], 1 }
 0x2dc   :  { %1085 = vsyncpa [#allocation5 + $0x1], 1 }

</bundles_post_ra>
